<compile_context>
chip_gen: v5e
topology: v5e:2x2
jax: 0.10.0
libtpu: 0.0.40
codegen_flags: <defaults>
</compile_context>

<pallas_src>
import numpy as np
import jax
import jax.numpy as jnp
from jax import lax
from jax.experimental import pallas as pl
from jax.experimental.pallas import tpu as pltpu

# ------------- hyper-parameters (small, but consistent with EEGNet.__init__) -------------
SAMPLE_RATE = 26   # int(sr/2)=13 and int(sr/8)=3 are odd -> "same"-width temporal convs
CHANNELS = 4       # EEG channels
TIME = 64          # time samples (divisible by 32, like 1001//32 logic in the module's fc)
F1, D, F2 = 8, 2, 16
CLASS_NUM = 4
BN_EPS = 1e-5

K1 = SAMPLE_RATE // 2        # 13  block_1 temporal kernel width
PAD1 = SAMPLE_RATE // 4      # 6   block_1 zero pad (left/right)
K3 = SAMPLE_RATE // 8        # 3   block_3 depthwise temporal kernel width
PAD3 = SAMPLE_RATE // 16     # 1   block_3 zero pad
DF1 = D * F1                 # 16
T4 = TIME // 4               # 16  width after block_2 avg pool
T32 = T4 // 8                # 2   width after block_3 avg pool (== TIME // 32)
TPAD3 = T4 + 2 * PAD3        # 18
CK1 = CHANNELS * K1          # 52  im2col rows for block_1

BT = 128                     # batch elements per grid step -> every lane dim % 128 == 0
NT = TIME * BT               # 8192 lanes for block_1/2 activations
NT4 = T4 * BT                # 2048 lanes for block_3 activations

HP = lax.Precision.HIGHEST   # used only by the pure-JAX f32 reference


# ----------------------------------- Pallas kernel ---------------------------------------
def eegnet_kernel(xt_ref, w1_ref, beff_ref, w43_ref, d3_ref, wfc_ref, bfc_ref, out_ref):
    f32 = jnp.float32
    bf16 = jnp.bfloat16

    # ---- block_1 conv + BN1 + block_2 grouped conv + BN2, fully folded:
    #      one deep (DF1, C*K1) x (C*K1, TIME*BT) MXU matmul on the host-built im2col tile.
    h2 = jnp.dot(w1_ref[...], xt_ref[...], preferred_element_type=f32)      # (DF1, TIME*BT)
    h2 = h2 + beff_ref[...]
    # ELU; exp(min(h,0))-1 keeps exp finite (expm1 lowering is not guaranteed in Mosaic,
    # and the difference near 0 is far below the test tolerance).
    h2 = jnp.where(h2 > 0, h2, jnp.exp(jnp.minimum(h2, 0.0)) - 1.0)

    # ---- avgpool(1,4) + block_3 ZeroPad2d: 128-aligned BT-wide slice adds on the VPU
    #      (no O(BT^2) pooling matmul); the 1/4 factor is folded into w43 host-side.
    zpad = jnp.zeros((DF1, BT), f32)
    pieces = [zpad] * PAD3
    for t4 in range(T4):
        a = 4 * t4 * BT
        pieces.append(h2[:, a:a + BT] + h2[:, a + BT:a + 2 * BT]
                      + h2[:, a + 2 * BT:a + 3 * BT] + h2[:, a + 3 * BT:a + 4 * BT])
    pieces += [zpad] * PAD3
    h2pp = jnp.concatenate(pieces, axis=1).astype(bf16)                     # (DF1, TPAD3*BT)

    # ---- block_3 depthwise conv + pointwise 1x1 conv + BN3, folded: the K3 shifted
    #      (128-aligned) slices are stacked along sublanes -> one (F2, K3*DF1) matmul.
    rhs3 = jnp.concatenate([h2pp[:, k * BT:k * BT + NT4] for k in range(K3)], axis=0)
    h4 = jnp.dot(w43_ref[...], rhs3, preferred_element_type=f32)            # (F2, T4*BT)
    h4 = h4 + d3_ref[...]
    h4 = jnp.where(h4 > 0, h4, jnp.exp(jnp.minimum(h4, 0.0)) - 1.0)         # ELU

    # ---- avgpool(1,8) folded into fc (1/8 absorbed into wfc2): sum 8 aligned lane groups
    #      per output step, stack the T32 groups along sublanes -> one fc matmul.
    rows = []
    for u in range(T32):
        a = 8 * u * BT
        s = h4[:, a:a + BT]
        for j in range(1, 8):
            s = s + h4[:, a + j * BT:a + (j + 1) * BT]
        rows.append(s)
    h5 = jnp.concatenate(rows, axis=0).astype(bf16)                         # (T32*F2, BT)

    out_ref[...] = jnp.dot(wfc_ref[...], h5, preferred_element_type=f32) + bfc_ref[...]


def eegnet_forward(x, folded):
    """x: (B, 1, C, T) float32 (NCHW, same as the PyTorch module). Returns (B, class_num)."""
    B = x.shape[0]
    G = pl.cdiv(B, BT)
    Bpad = G * BT
    if Bpad != B:                                     # support arbitrary batch sizes
        x = jnp.pad(x, ((0, Bpad - B), (0, 0), (0, 0), (0, 0)))

    x2 = x[:, 0]                                                    # (Bpad, C, T)
    xp = jnp.pad(x2, ((0, 0), (0, 0), (PAD1, PAD1)))                # (Bpad, C, T+2*PAD1)
    # host-side im2col for the block_1 temporal conv: row = c*K1 + k, lane = t*BT + b
    win = jnp.stack([xp[:, :, k:k + TIME] for k in range(K1)], axis=2)  # (Bpad, C, K1, TIME)
    xt = (win.reshape(G, BT, CHANNELS, K1, TIME)
             .transpose(0, 2, 3, 4, 1)
             .reshape(G, CK1, NT)
             .astype(jnp.bfloat16))

    w1eff, beff, w43, d3, wfc2, bfc = folded

    def const_spec(a):
        nd = a.ndim
        return pl.BlockSpec(a.shape, lambda i, nd=nd: (0,) * nd)    # resident across steps

    flops = int(G * 2 * (DF1 * CK1 * NT + F2 * K3 * DF1 * NT4 + CLASS_NUM * T32 * F2 * BT))
    transc = int(G * (DF1 * NT + F2 * NT4))
    bytes_acc = int(G * (CK1 * NT * 2 + CLASS_NUM * BT * 4)
                    + sum(int(np.prod(a.shape)) * a.dtype.itemsize for a in folded))

    out3 = pl.pallas_call(
        eegnet_kernel,
        out_shape=jax.ShapeDtypeStruct((G, CLASS_NUM, BT), jnp.float32),
        grid=(G,),
        in_specs=[
            pl.BlockSpec((pl.Squeezed(), CK1, NT), lambda i: (i, 0, 0)),
            const_spec(w1eff), const_spec(beff), const_spec(w43),
            const_spec(d3), const_spec(wfc2), const_spec(bfc),
        ],
        out_specs=pl.BlockSpec((pl.Squeezed(), CLASS_NUM, BT), lambda i: (i, 0, 0)),
        compiler_params=pltpu.CompilerParams(
            dimension_semantics=("parallel",),        # batch-step axis; 2 TensorCores on v7x
            vmem_limit_bytes=32 * 1024 * 1024),
        cost_estimate=pl.CostEstimate(flops=flops, transcendentals=transc,
                                      bytes_accessed=bytes_acc),
    )(xt, w1eff, beff, w43, d3, wfc2, bfc)

    out = out3.transpose(0, 2, 1).reshape(Bpad, CLASS_NUM)          # sample = g*BT + b
    return out[:B]


# --------------------------- parameters (deterministic, synthetic) ------------------------
def init_raw_params(key):
    ks = jax.random.split(key, 22)
    r = lambda i, shape, s: jax.random.normal(ks[i], shape, jnp.float32) * s
    p = dict(
        w1=r(0, (F1, K1), 0.3), b1=r(1, (F1,), 0.1),                        # block_1 conv (F1,1,1,K1)
        g1=1.0 + r(2, (F1,), 0.2), be1=r(3, (F1,), 0.1),
        m1=r(4, (F1,), 0.1), v1=jnp.abs(r(5, (F1,), 0.3)) + 0.5,            # block_1 bn
        w2=r(6, (DF1, CHANNELS), 0.3), b2=r(7, (DF1,), 0.1),                # block_2 conv (DF1,1,C,1)
        g2=1.0 + r(8, (DF1,), 0.2), be2=r(9, (DF1,), 0.1),
        m2=r(10, (DF1,), 0.1), v2=jnp.abs(r(11, (DF1,), 0.3)) + 0.5,        # block_2 bn
        w3=r(12, (DF1, K3), 0.3), b3=r(13, (DF1,), 0.1),                    # block_3 depthwise conv
        w4=r(14, (F2, DF1), 0.3), b4=r(15, (F2,), 0.1),                     # block_3 pointwise conv
        g3=1.0 + r(16, (F2,), 0.2), be3=r(17, (F2,), 0.1),
        m3=r(18, (F2,), 0.1), v3=jnp.abs(r(19, (F2,), 0.3)) + 0.5,          # block_3 bn
        wfc=r(20, (CLASS_NUM, F2 * T32), 0.3), bfc=r(21, (CLASS_NUM,), 0.1),
    )
    return p


def fold_params(p):
    """Fold BN(eval), conv biases, conv chains and the avgpool scales into bf16 matmul weights."""
    a1 = p['g1'] / jnp.sqrt(p['v1'] + BN_EPS)                      # (F1,)
    c1 = a1 * (p['b1'] - p['m1']) + p['be1']                       # (F1,)
    a2 = p['g2'] / jnp.sqrt(p['v2'] + BN_EPS)                      # (DF1,)
    c2 = a2 * (p['b2'] - p['m2']) + p['be2']                       # (DF1,)

    grp = jnp.arange(DF1) // D                                     # group index f(j)
    w1g, a1g, c1g = p['w1'][grp], a1[grp], c1[grp]                 # (DF1,K1), (DF1,), (DF1,)
    # W1eff[j, c*K1+k] = a2[j]*w2[j,c]*a1[f(j)]*w1[f(j),k]   (block_1+BN1+block_2+BN2)
    w1eff = ((a2 * a1g)[:, None, None] * p['w2'][:, :, None] * w1g[:, None, :]
             ).reshape(DF1, CK1).astype(jnp.bfloat16)
    beff = (a2 * c1g * jnp.sum(p['w2'], axis=1) + c2)[:, None]     # (DF1, 1) f32

    a3 = p['g3'] / jnp.sqrt(p['v3'] + BN_EPS)                      # (F2,)
    # W43[f, k*DF1+j] = 0.25 * a3[f]*w4[f,j]*w3[j,k]   (avgpool4 scale + dw+pw conv + BN3)
    w43 = a3[:, None, None] * p['w4'][:, None, :] * p['w3'].T[None, :, :]   # (F2, K3, DF1)
    w43 = (0.25 * w43).reshape(F2, K3 * DF1).astype(jnp.bfloat16)
    d3 = (a3 * (p['w4'] @ p['b3'] + p['b4'] - p['m3']) + p['be3'])[:, None]  # (F2, 1) f32

    # fc with PyTorch flatten order (f, u) and the 1/8 avgpool folded in; kernel h5 rows
    # are ordered u*F2 + f, so wfc2[n, u*F2+f] = wfc[n, f*T32+u] / 8.
    wfc2 = (0.125 * p['wfc'].reshape(CLASS_NUM, F2, T32).transpose(0, 2, 1)
            ).reshape(CLASS_NUM, T32 * F2).astype(jnp.bfloat16)
    bfc = p['bfc'][:, None]                                                  # (CLASS, 1) f32
    return (w1eff, beff, w43, d3, wfc2, bfc)


# -------------------------- pure-JAX reference (same semantics) ---------------------------
def reference_forward(x, p):
    B = x.shape[0]
    x2 = x[:, 0]                                                      # (B, C, T)
    xp = jnp.pad(x2, ((0, 0), (0, 0), (PAD1, PAD1)))
    # block_1
    win = jnp.stack([xp[:, :, k:k + TIME] for k in range(K1)], axis=-1)            # (B,C,T,K1)
    h1 = jnp.einsum('bctk,fk->bfct', win, p['w1'], precision=HP) + p['b1'][None, :, None, None]
    h1 = (h1 - p['m1'][None, :, None, None]) / jnp.sqrt(p['v1'] + BN_EPS)[None, :, None, None] \
         * p['g1'][None, :, None, None] + p['be1'][None, :, None, None]
    # block_2
    w2g = p['w2'].reshape(F1, D, CHANNELS)
    h2 = jnp.einsum('bgct,gdc->bgdt', h1, w2g, precision=HP).reshape(B, DF1, TIME) \
         + p['b2'][None, :, None]
    h2 = (h2 - p['m2'][None, :, None]) / jnp.sqrt(p['v2'] + BN_EPS)[None, :, None] \
         * p['g2'][None, :, None] + p['be2'][None, :, None]
    h2 = jnp.where(h2 > 0, h2, jnp.exp(h2) - 1.0)
    h2 = h2.reshape(B, DF1, T4, 4).mean(axis=-1)
    # block_3
    h2p = jnp.pad(h2, ((0, 0), (0, 0), (PAD3, PAD3)))
    win3 = jnp.stack([h2p[:, :, k:k + T4] for k in range(K3)], axis=-1)            # (B,DF1,T4,K3)
    h3 = jnp.einsum('bjtk,jk->bjt', win3, p['w3'], precision=HP) + p['b3'][None, :, None]
    h4 = jnp.einsum('bjt,fj->bft', h3, p['w4'], precision=HP) + p['b4'][None, :, None]
    h4 = (h4 - p['m3'][None, :, None]) / jnp.sqrt(p['v3'] + BN_EPS)[None, :, None] \
         * p['g3'][None, :, None] + p['be3'][None, :, None]
    h4 = jnp.where(h4 > 0, h4, jnp.exp(h4) - 1.0)
    h5 = h4.reshape(B, F2, T32, 8).mean(axis=-1)
    flat = h5.reshape(B, F2 * T32)
    return jnp.dot(flat, p['wfc'].T, precision=HP) + p['bfc'][None, :]


# ------------------------------------------ main ------------------------------------------
if __name__ == "__main__":
    # TODO(synk): BatchNorm is implemented in eval mode (running stats) and Dropout as
    # identity; PyTorch's train-mode batch statistics / stochastic dropout are not modeled.
    key = jax.random.PRNGKey(0)
    kx, kp = jax.random.split(key)
    B = 200          # deliberately NOT a multiple of BT: exercises the batch-padding path
    x = jax.random.normal(kx, (B, 1, CHANNELS, TIME), jnp.float32)   # NCHW, like PyTorch

    raw = init_raw_params(kp)
    folded = fold_params(raw)

    out = eegnet_forward(x, folded)
    out = jax.block_until_ready(out)

    ref = reference_forward(x, raw)                               # f32 (HIGHEST) reference
    assert out.shape == (B, CLASS_NUM)
    assert bool(jnp.all(jnp.isfinite(out)))
    # Kernel matmuls use bf16 operands (per the perf review) with f32 accumulation;
    # tolerance budgets for bf16 rounding vs. the f32 HIGHEST reference (outputs are O(1)).
    np.testing.assert_allclose(np.asarray(out), np.asarray(ref), rtol=5e-2, atol=5e-2)
    print("KERNEL_OK")
</pallas_src>

<mosaic_0001>
module attributes {stable_mosaic.version = 11 : i64} {
  func.func @eegnet_kernel(%arg0: i32, %arg1: memref<1x52x8192xbf16, #tpu.memory_space<vmem>>, %arg2: memref<16x52xbf16, #tpu.memory_space<vmem>>, %arg3: memref<16x1xf32, #tpu.memory_space<vmem>>, %arg4: memref<16x48xbf16, #tpu.memory_space<vmem>>, %arg5: memref<16x1xf32, #tpu.memory_space<vmem>>, %arg6: memref<4x32xbf16, #tpu.memory_space<vmem>>, %arg7: memref<4x1xf32, #tpu.memory_space<vmem>>, %arg8: memref<1x4x128xf32, #tpu.memory_space<vmem>>) attributes {dimension_semantics = [#tpu.dimension_semantics<parallel>], iteration_bounds = array<i64: 2>, scalar_prefetch = 0 : i64, scratch_operands = 0 : i64, tpu.core_type = #tpu.core_type<tc>, window_params = [{transform_indices = @transform_0, window_bounds = array<i64: 1, 52, 8192>}, {pipeline_mode = #tpu.pipeline_mode<synchronous>, transform_indices = @transform_1, window_bounds = array<i64: 16, 52>}, {pipeline_mode = #tpu.pipeline_mode<synchronous>, transform_indices = @transform_2, window_bounds = array<i64: 16, 1>}, {pipeline_mode = #tpu.pipeline_mode<synchronous>, transform_indices = @transform_3, window_bounds = array<i64: 16, 48>}, {pipeline_mode = #tpu.pipeline_mode<synchronous>, transform_indices = @transform_4, window_bounds = array<i64: 16, 1>}, {pipeline_mode = #tpu.pipeline_mode<synchronous>, transform_indices = @transform_5, window_bounds = array<i64: 4, 32>}, {pipeline_mode = #tpu.pipeline_mode<synchronous>, transform_indices = @transform_6, window_bounds = array<i64: 4, 1>}, {transform_indices = @transform_7, window_bounds = array<i64: 1, 4, 128>}]} {
    %c0 = arith.constant 0 : index
    %c0_0 = arith.constant 0 : index
    %0 = vector.load %arg2[%c0, %c0_0] : memref<16x52xbf16, #tpu.memory_space<vmem>>, vector<16x52xbf16>
    %c0_1 = arith.constant 0 : index
    %c0_2 = arith.constant 0 : index
    %c0_3 = arith.constant 0 : index
    %1 = vector.load %arg1[%c0_1, %c0_2, %c0_3] : memref<1x52x8192xbf16, #tpu.memory_space<vmem>>, vector<1x52x8192xbf16>
    %2 = vector.shape_cast %1 : vector<1x52x8192xbf16> to vector<52x8192xbf16>
    %cst = arith.constant dense<0.000000e+00> : vector<16x8192xf32>
    %3 = tpu.matmul %0, %2, %cst {dimension_numbers = #tpu.dot_dimension_numbers<[1], [0], [0], [1], [0, 0, 1, 1], [], []>} : vector<16x52xbf16>, vector<52x8192xbf16>, vector<16x8192xf32> -> vector<16x8192xf32>
    %c0_4 = arith.constant 0 : index
    %c0_5 = arith.constant 0 : index
    %4 = vector.load %arg3[%c0_4, %c0_5] : memref<16x1xf32, #tpu.memory_space<vmem>>, vector<16x1xf32>
    %5 = vector.broadcast %4 : vector<16x1xf32> to vector<16x8192xf32>
    %6 = arith.addf %3, %5 : vector<16x8192xf32>
    %cst_6 = arith.constant 0.000000e+00 : f32
    %7 = vector.broadcast %cst_6 : f32 to vector<16x8192xf32>
    %8 = arith.cmpf ogt, %6, %7 : vector<16x8192xf32>
    %cst_7 = arith.constant 0.000000e+00 : f32
    %9 = vector.broadcast %cst_7 : f32 to vector<16x8192xf32>
    %10 = arith.minimumf %6, %9 : vector<16x8192xf32>
    %11 = math.exp %10 : vector<16x8192xf32>
    %cst_8 = arith.constant 1.000000e+00 : f32
    %12 = vector.broadcast %cst_8 : f32 to vector<16x8192xf32>
    %13 = arith.subf %11, %12 : vector<16x8192xf32>
    %14 = arith.select %8, %6, %13 : vector<16x8192xi1>, vector<16x8192xf32>
    %cst_9 = arith.constant 0.000000e+00 : f32
    %15 = vector.broadcast %cst_9 : f32 to vector<16x128xf32>
    %16 = vector.extract_strided_slice %14 {offsets = [0, 0], sizes = [16, 128], strides = [1, 1]} : vector<16x8192xf32> to vector<16x128xf32>
    %17 = vector.extract_strided_slice %14 {offsets = [0, 128], sizes = [16, 128], strides = [1, 1]} : vector<16x8192xf32> to vector<16x128xf32>
    %18 = arith.addf %16, %17 : vector<16x128xf32>
    %19 = vector.extract_strided_slice %14 {offsets = [0, 256], sizes = [16, 128], strides = [1, 1]} : vector<16x8192xf32> to vector<16x128xf32>
    %20 = arith.addf %18, %19 : vector<16x128xf32>
    %21 = vector.extract_strided_slice %14 {offsets = [0, 384], sizes = [16, 128], strides = [1, 1]} : vector<16x8192xf32> to vector<16x128xf32>
    %22 = arith.addf %20, %21 : vector<16x128xf32>
    %23 = vector.extract_strided_slice %14 {offsets = [0, 512], sizes = [16, 128], strides = [1, 1]} : vector<16x8192xf32> to vector<16x128xf32>
    %24 = vector.extract_strided_slice %14 {offsets = [0, 640], sizes = [16, 128], strides = [1, 1]} : vector<16x8192xf32> to vector<16x128xf32>
    %25 = arith.addf %23, %24 : vector<16x128xf32>
    %26 = vector.extract_strided_slice %14 {offsets = [0, 768], sizes = [16, 128], strides = [1, 1]} : vector<16x8192xf32> to vector<16x128xf32>
    %27 = arith.addf %25, %26 : vector<16x128xf32>
    %28 = vector.extract_strided_slice %14 {offsets = [0, 896], sizes = [16, 128], strides = [1, 1]} : vector<16x8192xf32> to vector<16x128xf32>
    %29 = arith.addf %27, %28 : vector<16x128xf32>
    %30 = vector.extract_strided_slice %14 {offsets = [0, 1024], sizes = [16, 128], strides = [1, 1]} : vector<16x8192xf32> to vector<16x128xf32>
    %31 = vector.extract_strided_slice %14 {offsets = [0, 1152], sizes = [16, 128], strides = [1, 1]} : vector<16x8192xf32> to vector<16x128xf32>
    %32 = arith.addf %30, %31 : vector<16x128xf32>
    %33 = vector.extract_strided_slice %14 {offsets = [0, 1280], sizes = [16, 128], strides = [1, 1]} : vector<16x8192xf32> to vector<16x128xf32>
    %34 = arith.addf %32, %33 : vector<16x128xf32>
    %35 = vector.extract_strided_slice %14 {offsets = [0, 1408], sizes = [16, 128], strides = [1, 1]} : vector<16x8192xf32> to vector<16x128xf32>
    %36 = arith.addf %34, %35 : vector<16x128xf32>
    %37 = vector.extract_strided_slice %14 {offsets = [0, 1536], sizes = [16, 128], strides = [1, 1]} : vector<16x8192xf32> to vector<16x128xf32>
    %38 = vector.extract_strided_slice %14 {offsets = [0, 1664], sizes = [16, 128], strides = [1, 1]} : vector<16x8192xf32> to vector<16x128xf32>
    %39 = arith.addf %37, %38 : vector<16x128xf32>
    %40 = vector.extract_strided_slice %14 {offsets = [0, 1792], sizes = [16, 128], strides = [1, 1]} : vector<16x8192xf32> to vector<16x128xf32>
    %41 = arith.addf %39, %40 : vector<16x128xf32>
    %42 = vector.extract_strided_slice %14 {offsets = [0, 1920], sizes = [16, 128], strides = [1, 1]} : vector<16x8192xf32> to vector<16x128xf32>
    %43 = arith.addf %41, %42 : vector<16x128xf32>
    %44 = vector.extract_strided_slice %14 {offsets = [0, 2048], sizes = [16, 128], strides = [1, 1]} : vector<16x8192xf32> to vector<16x128xf32>
    %45 = vector.extract_strided_slice %14 {offsets = [0, 2176], sizes = [16, 128], strides = [1, 1]} : vector<16x8192xf32> to vector<16x128xf32>
    %46 = arith.addf %44, %45 : vector<16x128xf32>
    %47 = vector.extract_strided_slice %14 {offsets = [0, 2304], sizes = [16, 128], strides = [1, 1]} : vector<16x8192xf32> to vector<16x128xf32>
    %48 = arith.addf %46, %47 : vector<16x128xf32>
    %49 = vector.extract_strided_slice %14 {offsets = [0, 2432], sizes = [16, 128], strides = [1, 1]} : vector<16x8192xf32> to vector<16x128xf32>
    %50 = arith.addf %48, %49 : vector<16x128xf32>
    %51 = vector.extract_strided_slice %14 {offsets = [0, 2560], sizes = [16, 128], strides = [1, 1]} : vector<16x8192xf32> to vector<16x128xf32>
    %52 = vector.extract_strided_slice %14 {offsets = [0, 2688], sizes = [16, 128], strides = [1, 1]} : vector<16x8192xf32> to vector<16x128xf32>
    %53 = arith.addf %51, %52 : vector<16x128xf32>
    %54 = vector.extract_strided_slice %14 {offsets = [0, 2816], sizes = [16, 128], strides = [1, 1]} : vector<16x8192xf32> to vector<16x128xf32>
    %55 = arith.addf %53, %54 : vector<16x128xf32>
    %56 = vector.extract_strided_slice %14 {offsets = [0, 2944], sizes = [16, 128], strides = [1, 1]} : vector<16x8192xf32> to vector<16x128xf32>
    %57 = arith.addf %55, %56 : vector<16x128xf32>
    %58 = vector.extract_strided_slice %14 {offsets = [0, 3072], sizes = [16, 128], strides = [1, 1]} : vector<16x8192xf32> to vector<16x128xf32>
    %59 = vector.extract_strided_slice %14 {offsets = [0, 3200], sizes = [16, 128], strides = [1, 1]} : vector<16x8192xf32> to vector<16x128xf32>
    %60 = arith.addf %58, %59 : vector<16x128xf32>
    %61 = vector.extract_strided_slice %14 {offsets = [0, 3328], sizes = [16, 128], strides = [1, 1]} : vector<16x8192xf32> to vector<16x128xf32>
    %62 = arith.addf %60, %61 : vector<16x128xf32>
    %63 = vector.extract_strided_slice %14 {offsets = [0, 3456], sizes = [16, 128], strides = [1, 1]} : vector<16x8192xf32> to vector<16x128xf32>
    %64 = arith.addf %62, %63 : vector<16x128xf32>
    %65 = vector.extract_strided_slice %14 {offsets = [0, 3584], sizes = [16, 128], strides = [1, 1]} : vector<16x8192xf32> to vector<16x128xf32>
    %66 = vector.extract_strided_slice %14 {offsets = [0, 3712], sizes = [16, 128], strides = [1, 1]} : vector<16x8192xf32> to vector<16x128xf32>
    %67 = arith.addf %65, %66 : vector<16x128xf32>
    %68 = vector.extract_strided_slice %14 {offsets = [0, 3840], sizes = [16, 128], strides = [1, 1]} : vector<16x8192xf32> to vector<16x128xf32>
    %69 = arith.addf %67, %68 : vector<16x128xf32>
    %70 = vector.extract_strided_slice %14 {offsets = [0, 3968], sizes = [16, 128], strides = [1, 1]} : vector<16x8192xf32> to vector<16x128xf32>
    %71 = arith.addf %69, %70 : vector<16x128xf32>
    %72 = vector.extract_strided_slice %14 {offsets = [0, 4096], sizes = [16, 128], strides = [1, 1]} : vector<16x8192xf32> to vector<16x128xf32>
    %73 = vector.extract_strided_slice %14 {offsets = [0, 4224], sizes = [16, 128], strides = [1, 1]} : vector<16x8192xf32> to vector<16x128xf32>
    %74 = arith.addf %72, %73 : vector<16x128xf32>
    %75 = vector.extract_strided_slice %14 {offsets = [0, 4352], sizes = [16, 128], strides = [1, 1]} : vector<16x8192xf32> to vector<16x128xf32>
    %76 = arith.addf %74, %75 : vector<16x128xf32>
    %77 = vector.extract_strided_slice %14 {offsets = [0, 4480], sizes = [16, 128], strides = [1, 1]} : vector<16x8192xf32> to vector<16x128xf32>
    %78 = arith.addf %76, %77 : vector<16x128xf32>
    %79 = vector.extract_strided_slice %14 {offsets = [0, 4608], sizes = [16, 128], strides = [1, 1]} : vector<16x8192xf32> to vector<16x128xf32>
    %80 = vector.extract_strided_slice %14 {offsets = [0, 4736], sizes = [16, 128], strides = [1, 1]} : vector<16x8192xf32> to vector<16x128xf32>
    %81 = arith.addf %79, %80 : vector<16x128xf32>
    %82 = vector.extract_strided_slice %14 {offsets = [0, 4864], sizes = [16, 128], strides = [1, 1]} : vector<16x8192xf32> to vector<16x128xf32>
    %83 = arith.addf %81, %82 : vector<16x128xf32>
    %84 = vector.extract_strided_slice %14 {offsets = [0, 4992], sizes = [16, 128], strides = [1, 1]} : vector<16x8192xf32> to vector<16x128xf32>
    %85 = arith.addf %83, %84 : vector<16x128xf32>
    %86 = vector.extract_strided_slice %14 {offsets = [0, 5120], sizes = [16, 128], strides = [1, 1]} : vector<16x8192xf32> to vector<16x128xf32>
    %87 = vector.extract_strided_slice %14 {offsets = [0, 5248], sizes = [16, 128], strides = [1, 1]} : vector<16x8192xf32> to vector<16x128xf32>
    %88 = arith.addf %86, %87 : vector<16x128xf32>
    %89 = vector.extract_strided_slice %14 {offsets = [0, 5376], sizes = [16, 128], strides = [1, 1]} : vector<16x8192xf32> to vector<16x128xf32>
    %90 = arith.addf %88, %89 : vector<16x128xf32>
    %91 = vector.extract_strided_slice %14 {offsets = [0, 5504], sizes = [16, 128], strides = [1, 1]} : vector<16x8192xf32> to vector<16x128xf32>
    %92 = arith.addf %90, %91 : vector<16x128xf32>
    %93 = vector.extract_strided_slice %14 {offsets = [0, 5632], sizes = [16, 128], strides = [1, 1]} : vector<16x8192xf32> to vector<16x128xf32>
    %94 = vector.extract_strided_slice %14 {offsets = [0, 5760], sizes = [16, 128], strides = [1, 1]} : vector<16x8192xf32> to vector<16x128xf32>
    %95 = arith.addf %93, %94 : vector<16x128xf32>
    %96 = vector.extract_strided_slice %14 {offsets = [0, 5888], sizes = [16, 128], strides = [1, 1]} : vector<16x8192xf32> to vector<16x128xf32>
    %97 = arith.addf %95, %96 : vector<16x128xf32>
    %98 = vector.extract_strided_slice %14 {offsets = [0, 6016], sizes = [16, 128], strides = [1, 1]} : vector<16x8192xf32> to vector<16x128xf32>
    %99 = arith.addf %97, %98 : vector<16x128xf32>
    %100 = vector.extract_strided_slice %14 {offsets = [0, 6144], sizes = [16, 128], strides = [1, 1]} : vector<16x8192xf32> to vector<16x128xf32>
    %101 = vector.extract_strided_slice %14 {offsets = [0, 6272], sizes = [16, 128], strides = [1, 1]} : vector<16x8192xf32> to vector<16x128xf32>
    %102 = arith.addf %100, %101 : vector<16x128xf32>
    %103 = vector.extract_strided_slice %14 {offsets = [0, 6400], sizes = [16, 128], strides = [1, 1]} : vector<16x8192xf32> to vector<16x128xf32>
    %104 = arith.addf %102, %103 : vector<16x128xf32>
    %105 = vector.extract_strided_slice %14 {offsets = [0, 6528], sizes = [16, 128], strides = [1, 1]} : vector<16x8192xf32> to vector<16x128xf32>
    %106 = arith.addf %104, %105 : vector<16x128xf32>
    %107 = vector.extract_strided_slice %14 {offsets = [0, 6656], sizes = [16, 128], strides = [1, 1]} : vector<16x8192xf32> to vector<16x128xf32>
    %108 = vector.extract_strided_slice %14 {offsets = [0, 6784], sizes = [16, 128], strides = [1, 1]} : vector<16x8192xf32> to vector<16x128xf32>
    %109 = arith.addf %107, %108 : vector<16x128xf32>
    %110 = vector.extract_strided_slice %14 {offsets = [0, 6912], sizes = [16, 128], strides = [1, 1]} : vector<16x8192xf32> to vector<16x128xf32>
    %111 = arith.addf %109, %110 : vector<16x128xf32>
    %112 = vector.extract_strided_slice %14 {offsets = [0, 7040], sizes = [16, 128], strides = [1, 1]} : vector<16x8192xf32> to vector<16x128xf32>
    %113 = arith.addf %111, %112 : vector<16x128xf32>
    %114 = vector.extract_strided_slice %14 {offsets = [0, 7168], sizes = [16, 128], strides = [1, 1]} : vector<16x8192xf32> to vector<16x128xf32>
    %115 = vector.extract_strided_slice %14 {offsets = [0, 7296], sizes = [16, 128], strides = [1, 1]} : vector<16x8192xf32> to vector<16x128xf32>
    %116 = arith.addf %114, %115 : vector<16x128xf32>
    %117 = vector.extract_strided_slice %14 {offsets = [0, 7424], sizes = [16, 128], strides = [1, 1]} : vector<16x8192xf32> to vector<16x128xf32>
    %118 = arith.addf %116, %117 : vector<16x128xf32>
    %119 = vector.extract_strided_slice %14 {offsets = [0, 7552], sizes = [16, 128], strides = [1, 1]} : vector<16x8192xf32> to vector<16x128xf32>
    %120 = arith.addf %118, %119 : vector<16x128xf32>
    %121 = vector.extract_strided_slice %14 {offsets = [0, 7680], sizes = [16, 128], strides = [1, 1]} : vector<16x8192xf32> to vector<16x128xf32>
    %122 = vector.extract_strided_slice %14 {offsets = [0, 7808], sizes = [16, 128], strides = [1, 1]} : vector<16x8192xf32> to vector<16x128xf32>
    %123 = arith.addf %121, %122 : vector<16x128xf32>
    %124 = vector.extract_strided_slice %14 {offsets = [0, 7936], sizes = [16, 128], strides = [1, 1]} : vector<16x8192xf32> to vector<16x128xf32>
    %125 = arith.addf %123, %124 : vector<16x128xf32>
    %126 = vector.extract_strided_slice %14 {offsets = [0, 8064], sizes = [16, 128], strides = [1, 1]} : vector<16x8192xf32> to vector<16x128xf32>
    %127 = arith.addf %125, %126 : vector<16x128xf32>
    %128 = tpu.concatenate %15, %22, %29, %36, %43, %50, %57, %64, %71, %78, %85, %92, %99, %106, %113, %120 in 1 : vector<16x128xf32>, vector<16x128xf32>, vector<16x128xf32>, vector<16x128xf32>, vector<16x128xf32>, vector<16x128xf32>, vector<16x128xf32>, vector<16x128xf32>, vector<16x128xf32>, vector<16x128xf32>, vector<16x128xf32>, vector<16x128xf32>, vector<16x128xf32>, vector<16x128xf32>, vector<16x128xf32>, vector<16x128xf32> -> vector<16x2048xf32>
    %129 = tpu.concatenate %127, %15 in 1 : vector<16x128xf32>, vector<16x128xf32> -> vector<16x256xf32>
    %130 = tpu.concatenate %128, %129 in 1 : vector<16x2048xf32>, vector<16x256xf32> -> vector<16x2304xf32>
    %131 = arith.truncf %130 : vector<16x2304xf32> to vector<16x2304xbf16>
    %132 = vector.extract_strided_slice %131 {offsets = [0, 0], sizes = [16, 2048], strides = [1, 1]} : vector<16x2304xbf16> to vector<16x2048xbf16>
    %133 = vector.extract_strided_slice %131 {offsets = [0, 128], sizes = [16, 2048], strides = [1, 1]} : vector<16x2304xbf16> to vector<16x2048xbf16>
    %134 = vector.extract_strided_slice %131 {offsets = [0, 256], sizes = [16, 2048], strides = [1, 1]} : vector<16x2304xbf16> to vector<16x2048xbf16>
    %135 = tpu.concatenate %132, %133, %134 in 0 : vector<16x2048xbf16>, vector<16x2048xbf16>, vector<16x2048xbf16> -> vector<48x2048xbf16>
    %c0_10 = arith.constant 0 : index
    %c0_11 = arith.constant 0 : index
    %136 = vector.load %arg4[%c0_10, %c0_11] : memref<16x48xbf16, #tpu.memory_space<vmem>>, vector<16x48xbf16>
    %cst_12 = arith.constant dense<0.000000e+00> : vector<16x2048xf32>
    %137 = tpu.matmul %136, %135, %cst_12 {dimension_numbers = #tpu.dot_dimension_numbers<[1], [0], [0], [1], [0, 0, 1, 1], [], []>} : vector<16x48xbf16>, vector<48x2048xbf16>, vector<16x2048xf32> -> vector<16x2048xf32>
    %c0_13 = arith.constant 0 : index
    %c0_14 = arith.constant 0 : index
    %138 = vector.load %arg5[%c0_13, %c0_14] : memref<16x1xf32, #tpu.memory_space<vmem>>, vector<16x1xf32>
    %139 = vector.broadcast %138 : vector<16x1xf32> to vector<16x2048xf32>
    %140 = arith.addf %137, %139 : vector<16x2048xf32>
    %cst_15 = arith.constant 0.000000e+00 : f32
    %141 = vector.broadcast %cst_15 : f32 to vector<16x2048xf32>
    %142 = arith.cmpf ogt, %140, %141 : vector<16x2048xf32>
    %cst_16 = arith.constant 0.000000e+00 : f32
    %143 = vector.broadcast %cst_16 : f32 to vector<16x2048xf32>
    %144 = arith.minimumf %140, %143 : vector<16x2048xf32>
    %145 = math.exp %144 : vector<16x2048xf32>
    %cst_17 = arith.constant 1.000000e+00 : f32
    %146 = vector.broadcast %cst_17 : f32 to vector<16x2048xf32>
    %147 = arith.subf %145, %146 : vector<16x2048xf32>
    %148 = arith.select %142, %140, %147 : vector<16x2048xi1>, vector<16x2048xf32>
    %149 = vector.extract_strided_slice %148 {offsets = [0, 0], sizes = [16, 128], strides = [1, 1]} : vector<16x2048xf32> to vector<16x128xf32>
    %150 = vector.extract_strided_slice %148 {offsets = [0, 128], sizes = [16, 128], strides = [1, 1]} : vector<16x2048xf32> to vector<16x128xf32>
    %151 = arith.addf %149, %150 : vector<16x128xf32>
    %152 = vector.extract_strided_slice %148 {offsets = [0, 256], sizes = [16, 128], strides = [1, 1]} : vector<16x2048xf32> to vector<16x128xf32>
    %153 = arith.addf %151, %152 : vector<16x128xf32>
    %154 = vector.extract_strided_slice %148 {offsets = [0, 384], sizes = [16, 128], strides = [1, 1]} : vector<16x2048xf32> to vector<16x128xf32>
    %155 = arith.addf %153, %154 : vector<16x128xf32>
    %156 = vector.extract_strided_slice %148 {offsets = [0, 512], sizes = [16, 128], strides = [1, 1]} : vector<16x2048xf32> to vector<16x128xf32>
    %157 = arith.addf %155, %156 : vector<16x128xf32>
    %158 = vector.extract_strided_slice %148 {offsets = [0, 640], sizes = [16, 128], strides = [1, 1]} : vector<16x2048xf32> to vector<16x128xf32>
    %159 = arith.addf %157, %158 : vector<16x128xf32>
    %160 = vector.extract_strided_slice %148 {offsets = [0, 768], sizes = [16, 128], strides = [1, 1]} : vector<16x2048xf32> to vector<16x128xf32>
    %161 = arith.addf %159, %160 : vector<16x128xf32>
    %162 = vector.extract_strided_slice %148 {offsets = [0, 896], sizes = [16, 128], strides = [1, 1]} : vector<16x2048xf32> to vector<16x128xf32>
    %163 = arith.addf %161, %162 : vector<16x128xf32>
    %164 = vector.extract_strided_slice %148 {offsets = [0, 1024], sizes = [16, 128], strides = [1, 1]} : vector<16x2048xf32> to vector<16x128xf32>
    %165 = vector.extract_strided_slice %148 {offsets = [0, 1152], sizes = [16, 128], strides = [1, 1]} : vector<16x2048xf32> to vector<16x128xf32>
    %166 = arith.addf %164, %165 : vector<16x128xf32>
    %167 = vector.extract_strided_slice %148 {offsets = [0, 1280], sizes = [16, 128], strides = [1, 1]} : vector<16x2048xf32> to vector<16x128xf32>
    %168 = arith.addf %166, %167 : vector<16x128xf32>
    %169 = vector.extract_strided_slice %148 {offsets = [0, 1408], sizes = [16, 128], strides = [1, 1]} : vector<16x2048xf32> to vector<16x128xf32>
    %170 = arith.addf %168, %169 : vector<16x128xf32>
    %171 = vector.extract_strided_slice %148 {offsets = [0, 1536], sizes = [16, 128], strides = [1, 1]} : vector<16x2048xf32> to vector<16x128xf32>
    %172 = arith.addf %170, %171 : vector<16x128xf32>
    %173 = vector.extract_strided_slice %148 {offsets = [0, 1664], sizes = [16, 128], strides = [1, 1]} : vector<16x2048xf32> to vector<16x128xf32>
    %174 = arith.addf %172, %173 : vector<16x128xf32>
    %175 = vector.extract_strided_slice %148 {offsets = [0, 1792], sizes = [16, 128], strides = [1, 1]} : vector<16x2048xf32> to vector<16x128xf32>
    %176 = arith.addf %174, %175 : vector<16x128xf32>
    %177 = vector.extract_strided_slice %148 {offsets = [0, 1920], sizes = [16, 128], strides = [1, 1]} : vector<16x2048xf32> to vector<16x128xf32>
    %178 = arith.addf %176, %177 : vector<16x128xf32>
    %179 = tpu.concatenate %163, %178 in 0 : vector<16x128xf32>, vector<16x128xf32> -> vector<32x128xf32>
    %180 = arith.truncf %179 : vector<32x128xf32> to vector<32x128xbf16>
    %c0_18 = arith.constant 0 : index
    %c0_19 = arith.constant 0 : index
    %181 = vector.load %arg6[%c0_18, %c0_19] : memref<4x32xbf16, #tpu.memory_space<vmem>>, vector<4x32xbf16>
    %cst_20 = arith.constant dense<0.000000e+00> : vector<4x128xf32>
    %182 = tpu.matmul %181, %180, %cst_20 {dimension_numbers = #tpu.dot_dimension_numbers<[1], [0], [0], [1], [0, 0, 1, 1], [], []>} : vector<4x32xbf16>, vector<32x128xbf16>, vector<4x128xf32> -> vector<4x128xf32>
    %c0_21 = arith.constant 0 : index
    %c0_22 = arith.constant 0 : index
    %183 = vector.load %arg7[%c0_21, %c0_22] : memref<4x1xf32, #tpu.memory_space<vmem>>, vector<4x1xf32>
    %184 = vector.broadcast %183 : vector<4x1xf32> to vector<4x128xf32>
    %185 = arith.addf %182, %184 : vector<4x128xf32>
    %c0_23 = arith.constant 0 : index
    %c0_24 = arith.constant 0 : index
    %c0_25 = arith.constant 0 : index
    %186 = vector.load %arg8[%c0_23, %c0_24, %c0_25] : memref<1x4x128xf32, #tpu.memory_space<vmem>>, vector<1x4x128xf32>
    %187 = vector.shape_cast %186 : vector<1x4x128xf32> to vector<4x128xf32>
    %188 = vector.shape_cast %185 : vector<4x128xf32> to vector<1x4x128xf32>
    tpu.vector_store %arg8[%c0_23, %c0_24, %c0_25], %188 {strides = array<i32>} : memref<1x4x128xf32, #tpu.memory_space<vmem>>, vector<1x4x128xf32>,
    return
  }
  func.func @transform_0(%arg0: i32) -> (i32, i32, i32) {
    %c0_i32 = arith.constant 0 : i32
    %c0_i32_0 = arith.constant 0 : i32
    %c0_i32_1 = arith.constant 0 : i32
    return %arg0, %c0_i32, %c0_i32_0 : i32, i32, i32
  }
  func.func @transform_1(%arg0: i32) -> (i32, i32) {
    %c0_i32 = arith.constant 0 : i32
    %c0_i32_0 = arith.constant 0 : i32
    %c0_i32_1 = arith.constant 0 : i32
    return %c0_i32, %c0_i32_0 : i32, i32
  }
  func.func @transform_2(%arg0: i32) -> (i32, i32) {
    %c0_i32 = arith.constant 0 : i32
    %c0_i32_0 = arith.constant 0 : i32
    %c0_i32_1 = arith.constant 0 : i32
    return %c0_i32, %c0_i32_0 : i32, i32
  }
  func.func @transform_3(%arg0: i32) -> (i32, i32) {
    %c0_i32 = arith.constant 0 : i32
    %c0_i32_0 = arith.constant 0 : i32
    %c0_i32_1 = arith.constant 0 : i32
    return %c0_i32, %c0_i32_0 : i32, i32
  }
  func.func @transform_4(%arg0: i32) -> (i32, i32) {
    %c0_i32 = arith.constant 0 : i32
    %c0_i32_0 = arith.constant 0 : i32
    %c0_i32_1 = arith.constant 0 : i32
    return %c0_i32, %c0_i32_0 : i32, i32
  }
  func.func @transform_5(%arg0: i32) -> (i32, i32) {
    %c0_i32 = arith.constant 0 : i32
    %c0_i32_0 = arith.constant 0 : i32
    %c0_i32_1 = arith.constant 0 : i32
    return %c0_i32, %c0_i32_0 : i32, i32
  }
  func.func @transform_6(%arg0: i32) -> (i32, i32) {
    %c0_i32 = arith.constant 0 : i32
    %c0_i32_0 = arith.constant 0 : i32
    %c0_i32_1 = arith.constant 0 : i32
    return %c0_i32, %c0_i32_0 : i32, i32
  }
  func.func @transform_7(%arg0: i32) -> (i32, i32, i32) {
    %c0_i32 = arith.constant 0 : i32
    %c0_i32_0 = arith.constant 0 : i32
    %c0_i32_1 = arith.constant 0 : i32
    return %arg0, %c0_i32, %c0_i32_0 : i32, i32, i32
  }
}

</mosaic_0001>

<bundles_post_ra>
// kernel: tpu_custom_call.1
= control target key start
LH: loop header
LB: loop body
LE: loop exit
PB: predicated region body
PF: predicated region fallthrough
CT: control target
= control target key end

     0   :  { %12 = vsyncpa [#allocation3], 0  ;;  %s8426_s0 = inlined_call_operand.vmem [shape: bf16[2,52,8192], index: 0, kind: input, shape index: {}]   ;;  %s8427_s1 = inlined_call_operand.vmem [shape: bf16[16,52], index: 1, kind: input, shape index: {}]   ;;  %s8428_s2 = inlined_call_operand.vmem [shape: f32[16,1], index: 2, kind: input, shape index: {}]   ;;  %s8429_s3 = inlined_call_operand.vmem [shape: bf16[16,48], index: 3, kind: input, shape index: {}]   ;;  %s8430_s4 = inlined_call_operand.vmem [shape: f32[16,1], index: 4, kind: input, shape index: {}]   ;;  %s8431_s5 = inlined_call_operand.vmem [shape: bf16[4,32], index: 5, kind: input, shape index: {}]   ;;  %s8432_s6 = inlined_call_operand.vmem [shape: f32[4,1], index: 6, kind: input, shape index: {}]   ;;  %s8433_s7 = inlined_call_operand.hbm [shape: f32[2,4,128], index: 7, kind: output, shape index: {}]  }
   0x1   :  { %14 = vsyncpa [#allocation3 + $0x1], 0  ;;  %s5969_s24 = smov 0   ;;  %s5971_s25 = smov 0  }
   0x2   :  { %s5973_s26 = smov 0   ;;  %s5975_s27 = smov 0  }
   0x3 LB: > { %s5990_s28 = sadd.s32 4294967295, %s5925_s27   ;;  %s4275_s29 = sadd.s32 4294967294, %s5925_s27   ;;  %s5925_s27 = sphi %s5975_s27, %s8439_s27   ;;  %s5921_s26 = sphi %s5973_s26, %s8438_s26   ;;  %s5917_s25 = sphi %s5971_s25, %s8437_s25   ;;  %s5913_s24 = sphi %s5969_s24, %s8436_s24  }
   0x4   : > { %s5994_s30 = sadd.s32 1, %s5925_s27   ;;  %s179_s8 = sadd.s32 1, %s5921_s26 }
   0x5   : > { %s176_s9 = ssub.s32 %s5925_s27, %s5994_s30  ;;  %p189_p0 = scmp.ne.s32.totalorder %s5921_s26, %s5917_s25 }
   0x6   : > { %p177_p1 = scmp.eq.s32.totalorder %s176_s9, 0  ;;  %p190_p2 = scmp.eq.s32.totalorder %s5990_s28, 1 }
   0x7   : > { %p195_p3 = scmp.ne.s32.totalorder %s5917_s25, %s5913_s24  ;;  %p196_p4 = scmp.eq.s32.totalorder %s4275_s29, 1 }
   0x8   : > { %s6005_s10 = scalar_select %p177_p1, %s5921_s26, %s179_s8  }
   0x9   : > { %p6007_p5 = por %p190_p2, %p189_p0  ;;  %p6011_p6 = por %p196_p4, %p195_p3 }
   0xa   : > { %p4278_p7 = scmp.ge.s32.totalorder %s5925_s27, 1  ;;  %p240_p8 = scmp.lt.s32.totalorder %s5925_s27, 3 }
   0xc   : > { %p241_p9 = pnand %p4278_p7, %p240_p8 }
   0xd   : > { %p272_p10 = scmp.lt.s32.totalorder (!%p241_p9), %s5990_s28, 1  ;;  %s269_s29 = sand.u32 (!%p241_p9), 1, %s5917_s25  }
   0xe   : > { %244 = sbr.rel (%p241_p9) target bundleno = 802 (0x322), region = 48  ;;  %s5299_s8 = sshll.u32 (!%p241_p9), %s5990_s28, 2 }
   0xf   : > { %s4279_s9 = sshll.u32 (!%p241_p9), %s269_s29, 2  ;;  %s4211_s15 = scalar_lea.hbm (!%p241_p9), %s8433_s7, %s5299_s8 }
  0x10   : > { %s271_s16 = scalar_lea.vmem (!%p241_p9), [#allocation2], %s4279_s9  ;;  %s4215_s18 = sshll.u32 (!%p241_p9), %s4211_s15, 4  ;;  %s4216_s18 = int_to_ptr.hbm [resolvable:$true] %s4215_s18 }
  0x11   : > { %s4201_s19 = scalar_lea.sflag (!%p241_p9), [#allocation3], %s269_s29  ;;  %s5877_s20 = sshra.s32 (!%p241_p9), %s4216_s18, 4  ;;  %s5878_s20 = int_to_ptr.hbm [resolvable:$true] %s5877_s20 }
  0x12   : > { %s5879_s21 = scalar_lea.hbm (!%p241_p9), %s5878_s20, 4  ;;  %s5883_s23 = scalar_lea.hbm (!%p241_p9), %s8433_s7, 8 }
  0x13   : > { %s273_s13 = scalar_select %p272_p10, %s5990_s28, 1  ;;  %v504_v0 = vld [vmem:[%s8428_s2] sm:$0xff]  ;;  %v5927_v3 = vmov 0   ;;  %vm1645_vm0 = vcmask 1041408   ;;  %v505_v58 = vld [vmem:[%s8428_s2 + $0x8] sm:$0xff]  ;;  %vm1641_vm1 = vcmask 424960  }
  0x14   : > { %5538 = vset.pattern.permute.xlu0 %v5927_v3  ;;  %5539 = vset.pattern.permute.xlu1 %v5927_v3  ;;  %v6065_v61 = vld [vmem:[%s8427_s1] sm:$0xff]  ;;  %p5880_p11 = scmp.ne.s32.totalorder %s5878_s20, %s5879_s21  ;;  %p5884_p0 = scmp.lt.s32.totalorder %s5878_s20, %s8433_s7 }
  0x15   : > { %s5496_s14 = smul.u32 1792, %s273_s13  ;;  %508 = vperm.xlu0 %5538, %v504_v0   ;;  %5540 = vset.pattern.permute.xlu2 %v5927_v3  ;;  %p5885_p1 = scmp.lt.s32.totalorder %s5883_s23, %s5879_s21 }
  0x16   : > { %p5881_p12 = pnand %p5880_p11, %p6007_p5 }
  0x17   : > { %s6022_s17 = scalar_lea.vmem %s8426_s0, %s5496_s14  ;;  %p5886_p2 = por %p5885_p1, %p5884_p0 }
  0x18   : > { %v472_v1 = vld [vmem:[%s6022_s17 + $0x600] sm:$0x33]  ;;  %v473_v2 = vld [vmem:[%s6022_s17 + $0x608] sm:$0x33]  ;;  %v474_v36 = vld [vmem:[%s6022_s17 + $0x610] sm:$0x33]  ;;  %p5882_p13 = pneg %p5881_p12 }
  0x19   : > { %v1129_v4 = vunpack.c.l.b16 %v472_v1  ;;  %v1130_v5 = vunpack.c.h.b16 %v472_v1  ;;  %v1131_v6 = vunpack.c.l.b16 %v473_v2  ;;  %v1132_v7 = vunpack.c.h.b16 %v473_v2  ;;  %v4799_v8 = vld [vmem:[%s6022_s17 + $0x400] sm:$0xf]  ;;  %v5431_v14 = vld [vmem:[%s6022_s17 + $0x404] sm:$0xf]  ;;  %v4807_v16 = vld [vmem:[%s6022_s17 + $0x408] sm:$0xf] }
  0x1a   : > { %v5463_v9 = vld [vmem:[%s6022_s17 + $0x4fc] sm:$0xf0]  ;;  %v4801_v15 = vld [vmem:[%s6022_s17 + $0x500] sm:$0xf0]  ;;  %v5464_v17 = vld [vmem:[%s6022_s17 + $0x504] sm:$0xf0]  ;;  %v1133_v42 = vunpack.c.l.b16 %v474_v36  ;;  %v1134_v43 = vunpack.c.h.b16 %v474_v36  ;;  %p5887_p3 = pnand %p5886_p2, %p5882_p13 }
  0x1b   : > { %v1385_v10 = vpack.c.b16 %v1129_v4, %v1129_v4  ;;  %v1386_v11 = vpack.c.b16 %v1130_v5, %v1130_v5  ;;  %v1387_v12 = vpack.c.b16 %v1131_v6, %v1131_v6  ;;  %v1388_v13 = vpack.c.b16 %v1132_v7, %v1132_v7  ;;  %v5432_v18 = vld [vmem:[%s6022_s17 + $0x40c] sm:$0xf]  ;;  %v4543_v26 = vld [vmem:[%s6022_s17 + $0x200] sm:$0xf]  ;;  %v5367_v30 = vld [vmem:[%s6022_s17 + $0x204] sm:$0xf] }
  0x1c   : > { %v4809_v19 = vld [vmem:[%s6022_s17 + $0x508] sm:$0xf0]  ;;  %v4800_v24 = vor.u32 %v5463_v9, %v4799_v8  ;;  %v4804_v25 = vor.u32 %v5431_v14, %v4801_v15  ;;  %v5399_v27 = vld [vmem:[%s6022_s17 + $0x2fc] sm:$0xf0]  ;;  %v4808_v28 = vor.u32 %v5464_v17, %v4807_v16  ;;  %v4545_v31 = vld [vmem:[%s6022_s17 + $0x300] sm:$0xf0]  ;;  %v1389_v54 = vpack.c.b16 %v1133_v42, %v1133_v42 }
  0x1d   : > { %v1647_v20 = vsel %vm1645_vm0, %v1385_v10, 0  ;;  %v1650_v21 = vsel %vm1645_vm0, %v1386_v11, 0  ;;  %v1653_v22 = vsel %vm1645_vm0, %v1387_v12, 0  ;;  %v1656_v23 = vsel %vm1645_vm0, %v1388_v13, 0  ;;  %v4551_v32 = vld [vmem:[%s6022_s17 + $0x208] sm:$0xf]  ;;  %513 = vperm.xlu0 %5538, %v505_v58  }
  0x1e   : > { %1842 = vmatpush.bf16.msra.mxu0 %v1647_v20  ;;  %1856 = vmatpush.bf16.msra.mxu1 %v1650_v21  ;;  %v4812_v29 = vor.u32 %v5432_v18, %v4809_v19  ;;  %v5400_v33 = vld [vmem:[%s6022_s17 + $0x304] sm:$0xf0]  ;;  %v5368_v34 = vld [vmem:[%s6022_s17 + $0x20c] sm:$0xf]  ;;  %v475_v37 = vld [vmem:[%s6022_s17 + $0x618] sm:$0x33]  ;;  %v4544_v38 = vor.u32 %v5399_v27, %v4543_v26  ;;  %v4548_v39 = vor.u32 %v5367_v30, %v4545_v31 }
  0x1f   : > { %1870 = vmatpush.bf16.msra.mxu2 %v1653_v22  ;;  %1884 = vmatpush.bf16.msra.mxu3 %v1656_v23  ;;  %v4553_v35 = vld [vmem:[%s6022_s17 + $0x308] sm:$0xf0]  ;;  %v4287_v40 = vld [vmem:[%s6022_s17] sm:$0xf]  ;;  %v4552_v44 = vor.u32 %v5400_v33, %v4551_v32  ;;  %v5303_v46 = vld [vmem:[%s6022_s17 + $0x4] sm:$0xf]  ;;  %v1135_v52 = vunpack.c.l.b16 %v475_v37  ;;  %v1136_v53 = vunpack.c.h.b16 %v475_v37  ;;  %v1390_v55 = vpack.c.b16 %v1134_v43, %v1134_v43 }
  0x20   : > { %v5335_v41 = vld [vmem:[%s6022_s17 + $0xfc] sm:$0xf0]  ;;  %v4556_v45 = vor.u32 %v5368_v34, %v4553_v35  ;;  %v4289_v47 = vld [vmem:[%s6022_s17 + $0x100] sm:$0xf0]  ;;  %v4295_v48 = vld [vmem:[%s6022_s17 + $0x8] sm:$0xf] }
  0x21   : > { %v5336_v49 = vld [vmem:[%s6022_s17 + $0x104] sm:$0xf0]  ;;  %v5304_v50 = vld [vmem:[%s6022_s17 + $0xc] sm:$0xf]  ;;  %v4288_v56 = vor.u32 %v5335_v41, %v4287_v40  ;;  %v4292_v57 = vor.u32 %v5303_v46, %v4289_v47  ;;  %v1391_v62 = vpack.c.b16 %v1135_v52, %v1135_v52  ;;  %v1392_v63 = vpack.c.b16 %v1136_v53, %v1136_v53  ;;  %v4815_v0 = vld [vmem:[%s6022_s17 + $0x410] sm:$0xf] }
  0x22   : > { %1843 = vmatpush.bf16.msra.mxu0 %v4800_v24  ;;  %1857 = vmatpush.bf16.msra.mxu1 %v4804_v25  ;;  %v4297_v51 = vld [vmem:[%s6022_s17 + $0x108] sm:$0xf0]  ;;  %v4296_v59 = vor.u32 %v5336_v49, %v4295_v48  ;;  %v5465_v1 = vld [vmem:[%s6022_s17 + $0x50c] sm:$0xf0]  ;;  %v1659_v2 = vsel %vm1645_vm0, %v1389_v54, 0  ;;  %v1662_v3 = vsel %vm1645_vm0, %v1390_v55, 0 }
  0x23   : > { %1871 = vmatpush.bf16.msra.mxu2 %v4808_v28  ;;  %1885 = vmatpush.bf16.msra.mxu3 %v4812_v29  ;;  %v4300_v60 = vor.u32 %v5304_v50, %v4297_v51  ;;  %v5433_v4 = vld [vmem:[%s6022_s17 + $0x414] sm:$0xf]  ;;  %v4823_v6 = vld [vmem:[%s6022_s17 + $0x418] sm:$0xf]  ;;  %v5434_v8 = vld [vmem:[%s6022_s17 + $0x41c] sm:$0xf]  ;;  %v4816_v12 = vor.u32 %v5465_v1, %v4815_v0 }
  0x24   : > { %v4817_v5 = vld [vmem:[%s6022_s17 + $0x510] sm:$0xf0]  ;;  %v5466_v7 = vld [vmem:[%s6022_s17 + $0x514] sm:$0xf0]  ;;  %v476_v9 = vld [vmem:[%s6022_s17 + $0x620] sm:$0x33] }
  0x25   : > { %v1665_v10 = vsel %vm1645_vm0, %v1391_v62, 0  ;;  %v1668_v11 = vsel %vm1645_vm0, %v1392_v63, 0  ;;  %v4820_v13 = vor.u32 %v5433_v4, %v4817_v5  ;;  %v4825_v14 = vld [vmem:[%s6022_s17 + $0x518] sm:$0xf0]  ;;  %v4559_v15 = vld [vmem:[%s6022_s17 + $0x210] sm:$0xf]  ;;  %v1137_v19 = vunpack.c.l.b16 %v476_v9 }
  0x26   : > { %1844 = vmatpush.bf16.msra.mxu0 %v4544_v38  ;;  %1858 = vmatpush.bf16.msra.mxu1 %v4548_v39  ;;  %v5401_v16 = vld [vmem:[%s6022_s17 + $0x30c] sm:$0xf0]  ;;  %v5369_v17 = vld [vmem:[%s6022_s17 + $0x214] sm:$0xf]  ;;  %v1138_v20 = vunpack.c.h.b16 %v476_v9  ;;  %v477_v21 = vld [vmem:[%s6022_s17 + $0x628] sm:$0x33]  ;;  %v4824_v22 = vor.u32 %v5466_v7, %v4823_v6  ;;  %v4828_v23 = vor.u32 %v5434_v8, %v4825_v14 }
  0x27   : > { %1872 = vmatpush.bf16.msra.mxu2 %v4552_v44  ;;  %1886 = vmatpush.bf16.msra.mxu3 %v4556_v45  ;;  %v4561_v18 = vld [vmem:[%s6022_s17 + $0x310] sm:$0xf0]  ;;  %v4567_v24 = vld [vmem:[%s6022_s17 + $0x218] sm:$0xf]  ;;  %v4560_v26 = vor.u32 %v5401_v16, %v4559_v15  ;;  %v5370_v28 = vld [vmem:[%s6022_s17 + $0x21c] sm:$0xf]  ;;  %v1139_v34 = vunpack.c.l.b16 %v477_v21  ;;  %v1140_v35 = vunpack.c.h.b16 %v477_v21  ;;  %v1393_v36 = vpack.c.b16 %v1137_v19, %v1137_v19 }
  0x28   : > { %v5402_v25 = vld [vmem:[%s6022_s17 + $0x314] sm:$0xf0]  ;;  %v4564_v27 = vor.u32 %v5369_v17, %v4561_v18  ;;  %v4569_v29 = vld [vmem:[%s6022_s17 + $0x318] sm:$0xf0]  ;;  %v4303_v30 = vld [vmem:[%s6022_s17 + $0x10] sm:$0xf]  ;;  %v1394_v37 = vpack.c.b16 %v1138_v20, %v1138_v20 }
  0x29   : > { %v5337_v31 = vld [vmem:[%s6022_s17 + $0x10c] sm:$0xf0]  ;;  %v5305_v32 = vld [vmem:[%s6022_s17 + $0x14] sm:$0xf]  ;;  %v4568_v38 = vor.u32 %v5402_v25, %v4567_v24  ;;  %v4572_v39 = vor.u32 %v5370_v28, %v4569_v29  ;;  %v4311_v40 = vld [vmem:[%s6022_s17 + $0x18] sm:$0xf]  ;;  %v1395_v46 = vpack.c.b16 %v1139_v34, %v1139_v34  ;;  %v1396_v47 = vpack.c.b16 %v1140_v35, %v1140_v35 }
  0x2a   : > { %1845 = vmatpush.bf16.msra.mxu0 %v4288_v56  ;;  %1859 = vmatpush.bf16.msra.mxu1 %v4292_v57  ;;  %v4305_v33 = vld [vmem:[%s6022_s17 + $0x110] sm:$0xf0]  ;;  %v4304_v41 = vor.u32 %v5337_v31, %v4303_v30  ;;  %v5338_v43 = vld [vmem:[%s6022_s17 + $0x114] sm:$0xf0]  ;;  %v5306_v44 = vld [vmem:[%s6022_s17 + $0x1c] sm:$0xf] }
  0x2b   : > { %1873 = vmatpush.bf16.msra.mxu2 %v4296_v59  ;;  %1887 = vmatpush.bf16.msra.mxu3 %v4300_v60  ;;  %v4308_v42 = vor.u32 %v5305_v32, %v4305_v33  ;;  %v4313_v45 = vld [vmem:[%s6022_s17 + $0x118] sm:$0xf0]  ;;  %v1671_v48 = vsel %vm1645_vm0, %v1393_v36, 0  ;;  %v1674_v49 = vsel %vm1645_vm0, %v1394_v37, 0  ;;  %v4312_v50 = vor.u32 %v5338_v43, %v4311_v40  ;;  %v4831_v52 = vld [vmem:[%s6022_s17 + $0x420] sm:$0xf] }
  0x2c   : > { %v4316_v51 = vor.u32 %v5306_v44, %v4313_v45  ;;  %v5467_v53 = vld [vmem:[%s6022_s17 + $0x51c] sm:$0xf0]  ;;  %v5435_v54 = vld [vmem:[%s6022_s17 + $0x424] sm:$0xf]  ;;  %v4839_v56 = vld [vmem:[%s6022_s17 + $0x428] sm:$0xf] }
  0x2d   : > { %5053 = vmatmul.msk.bf16.vlgmr.msra.gmra.mxu0 %vm1641_vm1, %v6065_v61  ;;  %5054 = vmatmul.msk.bf16.vlgmr.msra.gmra.mxu1 %vm1641_vm1, %v6065_v61  ;;  %v4833_v55 = vld [vmem:[%s6022_s17 + $0x520] sm:$0xf0]  ;;  %v5468_v57 = vld [vmem:[%s6022_s17 + $0x524] sm:$0xf0]  ;;  %v1677_v58 = vsel %vm1645_vm0, %v1395_v46, 0  ;;  %v1680_v59 = vsel %vm1645_vm0, %v1396_v47, 0  ;;  %v4832_v0 = vor.u32 %v5467_v53, %v4831_v52 }
  0x2e   : > { %1898 = vmatpush.bf16.msrb.mxu0 %v1659_v2  ;;  %1912 = vmatpush.bf16.msrb.mxu1 %v1662_v3  ;;  %v5436_v60 = vld [vmem:[%s6022_s17 + $0x42c] sm:$0xf]  ;;  %v4575_v63 = vld [vmem:[%s6022_s17 + $0x220] sm:$0xf]  ;;  %v4836_v1 = vor.u32 %v5435_v54, %v4833_v55  ;;  %v5371_v3 = vld [vmem:[%s6022_s17 + $0x224] sm:$0xf]  ;;  %v4840_v5 = vor.u32 %v5468_v57, %v4839_v56 }
  0x2f   : > { %5055 = vmatmul.msk.bf16.vlgmr.msra.gmra.mxu2 %vm1641_vm1, %v6065_v61  ;;  %5056 = vmatmul.msk.bf16.vlgmr.msra.gmra.mxu3 %vm1641_vm1, %v6065_v61  ;;  %v4841_v62 = vld [vmem:[%s6022_s17 + $0x528] sm:$0xf0]  ;;  %v5403_v2 = vld [vmem:[%s6022_s17 + $0x31c] sm:$0xf0]  ;;  %v478_v4 = vld [vmem:[%s6022_s17 + $0x630] sm:$0x33] }
  0x30   : > { %1926 = vmatpush.bf16.msrb.mxu2 %v1665_v10  ;;  %1940 = vmatpush.bf16.msrb.mxu3 %v1668_v11  ;;  %v4844_v6 = vor.u32 %v5436_v60, %v4841_v62  ;;  %v4577_v7 = vld [vmem:[%s6022_s17 + $0x320] sm:$0xf0]  ;;  %v4583_v8 = vld [vmem:[%s6022_s17 + $0x228] sm:$0xf]  ;;  %v479_v9 = vld [vmem:[%s6022_s17 + $0x638] sm:$0x33]  ;;  %v1142_v14 = vunpack.c.h.b16 %v478_v4  ;;  %v4576_v15 = vor.u32 %v5403_v2, %v4575_v63 }
  0x31   : > { %v5404_v10 = vld [vmem:[%s6022_s17 + $0x324] sm:$0xf0]  ;;  %v5372_v11 = vld [vmem:[%s6022_s17 + $0x22c] sm:$0xf]  ;;  %v4580_v16 = vor.u32 %v5371_v3, %v4577_v7  ;;  %v4319_v17 = vld [vmem:[%s6022_s17 + $0x20] sm:$0xf]  ;;  %v1143_v19 = vunpack.c.l.b16 %v479_v9  ;;  %v1144_v20 = vunpack.c.h.b16 %v479_v9 }
  0x32   : > { %1899 = vmatpush.bf16.msrb.mxu0 %v4816_v12  ;;  %1913 = vmatpush.bf16.msrb.mxu1 %v4820_v13  ;;  %v4585_v12 = vld [vmem:[%s6022_s17 + $0x328] sm:$0xf0]  ;;  %v1141_v13 = vunpack.c.l.b16 %v478_v4  ;;  %v5339_v18 = vld [vmem:[%s6022_s17 + $0x11c] sm:$0xf0]  ;;  %v4584_v21 = vor.u32 %v5404_v10, %v4583_v8  ;;  %v4321_v24 = vld [vmem:[%s6022_s17 + $0x120] sm:$0xf0]  ;;  %v1398_v31 = vpack.c.b16 %v1142_v14, %v1142_v14 }
  0x33   : > { %v4327_v25 = vld [vmem:[%s6022_s17 + $0x28] sm:$0xf]  ;;  %v4329_v28 = vld [vmem:[%s6022_s17 + $0x128] sm:$0xf0]  ;;  %v4320_v29 = vor.u32 %v5339_v18, %v4319_v17  ;;  %v1399_v33 = vpack.c.b16 %v1143_v19, %v1143_v19  ;;  %v1400_v34 = vpack.c.b16 %v1144_v20, %v1144_v20  ;;  %v5437_v43 = vld [vmem:[%s6022_s17 + $0x434] sm:$0xf] }
  0x34   : > { %1927 = vmatpush.bf16.msrb.mxu2 %v4824_v22  ;;  %1941 = vmatpush.bf16.msrb.mxu3 %v4828_v23  ;;  %v4588_v22 = vor.u32 %v5372_v11, %v4585_v12  ;;  %v5307_v23 = vld [vmem:[%s6022_s17 + $0x24] sm:$0xf]  ;;  %v1397_v30 = vpack.c.b16 %v1141_v13, %v1141_v13  ;;  %v4849_v44 = vld [vmem:[%s6022_s17 + $0x530] sm:$0xf0]  ;;  %v4855_v45 = vld [vmem:[%s6022_s17 + $0x438] sm:$0xf] }
  0x35   : > { %v4324_v32 = vor.u32 %v5307_v23, %v4321_v24  ;;  %v1692_v40 = vsel %vm1645_vm0, %v1400_v34, 0  ;;  %v5470_v46 = vld [vmem:[%s6022_s17 + $0x534] sm:$0xf0]  ;;  %v5438_v47 = vld [vmem:[%s6022_s17 + $0x43c] sm:$0xf] }
  0x36   : > { %1900 = vmatpush.bf16.msrb.mxu0 %v4560_v26  ;;  %1914 = vmatpush.bf16.msrb.mxu1 %v4564_v27  ;;  %v5340_v26 = vld [vmem:[%s6022_s17 + $0x124] sm:$0xf0]  ;;  %v5308_v27 = vld [vmem:[%s6022_s17 + $0x2c] sm:$0xf]  ;;  %v1683_v37 = vsel %vm1645_vm0, %v1397_v30, 0  ;;  %v4856_v55 = vor.u32 %v5470_v46, %v4855_v45 }
  0x37   : > { %v4328_v35 = vor.u32 %v5340_v26, %v4327_v25  ;;  %v4332_v36 = vor.u32 %v5308_v27, %v4329_v28  ;;  %v5405_v52 = vld [vmem:[%s6022_s17 + $0x32c] sm:$0xf0]  ;;  %v5373_v53 = vld [vmem:[%s6022_s17 + $0x234] sm:$0xf]  ;;  %v480_v54 = vld [vmem:[%s6022_s17 + $0x640] sm:$0x33] }
  0x38   : > { %1928 = vmatpush.bf16.msrb.mxu2 %v4568_v38  ;;  %1942 = vmatpush.bf16.msrb.mxu3 %v4572_v39  ;;  %v1686_v38 = vsel %vm1645_vm0, %v1398_v31, 0  ;;  %v1689_v39 = vsel %vm1645_vm0, %v1399_v33, 0  ;;  %v4593_v57 = vld [vmem:[%s6022_s17 + $0x330] sm:$0xf0]  ;;  %v5406_v60 = vld [vmem:[%s6022_s17 + $0x334] sm:$0xf0] }
  0x39   : > { %v5374_v62 = vld [vmem:[%s6022_s17 + $0x23c] sm:$0xf]  ;;  %v4596_v3 = vor.u32 %v5373_v53, %v4593_v57  ;;  %v4335_v4 = vld [vmem:[%s6022_s17 + $0x30] sm:$0xf]  ;;  %v5309_v10 = vld [vmem:[%s6022_s17 + $0x34] sm:$0xf] }
  0x3a   : > { %1901 = vmatpush.bf16.msrb.mxu0 %v4304_v41  ;;  %1915 = vmatpush.bf16.msrb.mxu1 %v4308_v42  ;;  %v4847_v41 = vld [vmem:[%s6022_s17 + $0x430] sm:$0xf]  ;;  %v4601_v63 = vld [vmem:[%s6022_s17 + $0x338] sm:$0xf0]  ;;  %v4337_v11 = vld [vmem:[%s6022_s17 + $0x130] sm:$0xf0] }
  0x3b   : > { %v5469_v42 = vld [vmem:[%s6022_s17 + $0x52c] sm:$0xf0]  ;;  %v4604_v9 = vor.u32 %v5374_v62, %v4601_v63  ;;  %v4343_v12 = vld [vmem:[%s6022_s17 + $0x38] sm:$0xf]  ;;  %v5310_v14 = vld [vmem:[%s6022_s17 + $0x3c] sm:$0xf]  ;;  %v4340_v19 = vor.u32 %v5309_v10, %v4337_v11 }
  0x3c   : > { %1929 = vmatpush.bf16.msrb.mxu2 %v4312_v50  ;;  %1943 = vmatpush.bf16.msrb.mxu3 %v4316_v51  ;;  %v4848_v50 = vor.u32 %v5469_v42, %v4847_v41  ;;  %v4852_v51 = vor.u32 %v5437_v43, %v4849_v44  ;;  %v5342_v13 = vld [vmem:[%s6022_s17 + $0x134] sm:$0xf0]  ;;  %v4863_v28 = vld [vmem:[%s6022_s17 + $0x440] sm:$0xf]  ;;  %v5439_v30 = vld [vmem:[%s6022_s17 + $0x444] sm:$0xf] }
  0x3d   : > { %5057 = vmatmul.msk.bf16.vlgmr.msrb.gmra.mxu0 %vm1641_vm1, %v6065_v61  ;;  %5058 = vmatmul.msk.bf16.vlgmr.msrb.gmra.mxu1 %vm1641_vm1, %v6065_v61  ;;  %v4865_v31 = vld [vmem:[%s6022_s17 + $0x540] sm:$0xf0]  ;;  %v5472_v33 = vld [vmem:[%s6022_s17 + $0x544] sm:$0xf0]  ;;  %v5440_v34 = vld [vmem:[%s6022_s17 + $0x44c] sm:$0xf] }
  0x3e   : > { %1954 = vmatpush.bf16.msra.mxu0 %v1671_v48  ;;  %1968 = vmatpush.bf16.msra.mxu1 %v1674_v49  ;;  %v4857_v48 = vld [vmem:[%s6022_s17 + $0x538] sm:$0xf0]  ;;  %v4591_v49 = vld [vmem:[%s6022_s17 + $0x230] sm:$0xf]  ;;  %v4609_v44 = vld [vmem:[%s6022_s17 + $0x340] sm:$0xf0] }
  0x3f   : > { %5059 = vmatmul.msk.bf16.vlgmr.msrb.gmra.mxu2 %vm1641_vm1, %v6065_v61  ;;  %5060 = vmatmul.msk.bf16.vlgmr.msrb.gmra.mxu3 %vm1641_vm1, %v6065_v61  ;;  %v4860_v56 = vor.u32 %v5438_v47, %v4857_v48  ;;  %v4592_v2 = vor.u32 %v5405_v52, %v4591_v49  ;;  %v482_v41 = vld [vmem:[%s6022_s17 + $0x650] sm:$0x33]  ;;  %v4615_v45 = vld [vmem:[%s6022_s17 + $0x248] sm:$0xf]  ;;  %v483_v46 = vld [vmem:[%s6022_s17 + $0x658] sm:$0x33] }
  0x40   : > { %1982 = vmatpush.bf16.msra.mxu2 %v1677_v58  ;;  %1996 = vmatpush.bf16.msra.mxu3 %v1680_v59  ;;  %v4599_v58 = vld [vmem:[%s6022_s17 + $0x238] sm:$0xf]  ;;  %v481_v59 = vld [vmem:[%s6022_s17 + $0x648] sm:$0x33]  ;;  %v1152_v57 = vunpack.c.h.b16 %v483_v46  ;;  %v4353_v62 = vld [vmem:[%s6022_s17 + $0x140] sm:$0xf0] }
  0x41   : > { %v1148_v7 = vunpack.c.h.b16 %v481_v59  ;;  %v4600_v8 = vor.u32 %v5406_v60, %v4599_v58  ;;  %v5408_v47 = vld [vmem:[%s6022_s17 + $0x344] sm:$0xf0]  ;;  %v5376_v48 = vld [vmem:[%s6022_s17 + $0x24c] sm:$0xf]  ;;  %v5311_v60 = vld [vmem:[%s6022_s17 + $0x44] sm:$0xf] }
  0x42   : > { %1955 = vmatpush.bf16.msra.mxu0 %v4832_v0  ;;  %1969 = vmatpush.bf16.msra.mxu1 %v4836_v1  ;;  %v1145_v0 = vunpack.c.l.b16 %v480_v54  ;;  %v1146_v1 = vunpack.c.h.b16 %v480_v54  ;;  %v4617_v49 = vld [vmem:[%s6022_s17 + $0x348] sm:$0xf0]  ;;  %v4351_v54 = vld [vmem:[%s6022_s17 + $0x40] sm:$0xf]  ;;  %v4616_v58 = vor.u32 %v5408_v47, %v4615_v45  ;;  %v4359_v63 = vld [vmem:[%s6022_s17 + $0x48] sm:$0xf] }
  0x43   : > { %v5313_v47 = vld [vmem:[%s6022_s17 + $0x54] sm:$0xf] }
  0x44   : > { %1983 = vmatpush.bf16.msra.mxu2 %v4840_v5  ;;  %1997 = vmatpush.bf16.msra.mxu3 %v4844_v6  ;;  %v5341_v5 = vld [vmem:[%s6022_s17 + $0x12c] sm:$0xf0]  ;;  %v1147_v6 = vunpack.c.l.b16 %v481_v59  ;;  %v1401_v17 = vpack.c.b16 %v1145_v0, %v1145_v0  ;;  %v1402_v18 = vpack.c.b16 %v1146_v1, %v1146_v1  ;;  %v4620_v59 = vor.u32 %v5376_v48, %v4617_v49  ;;  %v5344_v0 = vld [vmem:[%s6022_s17 + $0x144] sm:$0xf0]  ;;  %v5312_v1 = vld [vmem:[%s6022_s17 + $0x4c] sm:$0xf] }
  0x45   : > { %v4369_v48 = vld [vmem:[%s6022_s17 + $0x150] sm:$0xf0]  ;;  %v4375_v49 = vld [vmem:[%s6022_s17 + $0x58] sm:$0xf] }
  0x46   : > { %1956 = vmatpush.bf16.msra.mxu0 %v4576_v15  ;;  %1970 = vmatpush.bf16.msra.mxu1 %v4580_v16  ;;  %v4345_v15 = vld [vmem:[%s6022_s17 + $0x138] sm:$0xf0]  ;;  %v4336_v16 = vor.u32 %v5341_v5, %v4335_v4  ;;  %v1403_v20 = vpack.c.b16 %v1147_v6, %v1147_v6  ;;  %v1695_v24 = vsel %vm1645_vm0, %v1401_v17, 0  ;;  %v1698_v25 = vsel %vm1645_vm0, %v1402_v18, 0  ;;  %v5441_v17 = vld [vmem:[%s6022_s17 + $0x454] sm:$0xf] }
  0x47   : > { %v4348_v23 = vor.u32 %v5310_v14, %v4345_v15  ;;  %v4356_v6 = vor.u32 %v5311_v60, %v4353_v62  ;;  %v4879_v15 = vld [vmem:[%s6022_s17 + $0x450] sm:$0xf]  ;;  %v4881_v18 = vld [vmem:[%s6022_s17 + $0x550] sm:$0xf0] }
  0x48   : > { %1984 = vmatpush.bf16.msra.mxu2 %v4584_v21  ;;  %1998 = vmatpush.bf16.msra.mxu3 %v4588_v22  ;;  %v1404_v21 = vpack.c.b16 %v1148_v7, %v1148_v7  ;;  %v4344_v22 = vor.u32 %v5342_v13, %v4343_v12  ;;  %v1701_v26 = vsel %vm1645_vm0, %v1403_v20, 0  ;;  %v5474_v20 = vld [vmem:[%s6022_s17 + $0x554] sm:$0xf0] }
  0x4a   : > { %1957 = vmatpush.bf16.msra.mxu0 %v4320_v29  ;;  %1971 = vmatpush.bf16.msra.mxu1 %v4324_v32  ;;  %v1704_v27 = vsel %vm1645_vm0, %v1404_v21, 0  ;;  %v5471_v29 = vld [vmem:[%s6022_s17 + $0x53c] sm:$0xf0]  ;;  %v4871_v32 = vld [vmem:[%s6022_s17 + $0x448] sm:$0xf] }
  0x4b   : > { %v4872_v42 = vor.u32 %v5472_v33, %v4871_v32  ;;  %v5442_v21 = vld [vmem:[%s6022_s17 + $0x45c] sm:$0xf]  ;;  %v4631_v32 = vld [vmem:[%s6022_s17 + $0x258] sm:$0xf]  ;;  %v485_v33 = vld [vmem:[%s6022_s17 + $0x668] sm:$0x33] }
  0x4c   : > { %1985 = vmatpush.bf16.msra.mxu2 %v4328_v35  ;;  %1999 = vmatpush.bf16.msra.mxu3 %v4332_v36  ;;  %v4873_v35 = vld [vmem:[%s6022_s17 + $0x548] sm:$0xf0]  ;;  %v4607_v36 = vld [vmem:[%s6022_s17 + $0x240] sm:$0xf] }
  0x4d   : > { %5061 = vmatmul.msk.bf16.vlgmr.msra.gmra.mxu0 %vm1641_vm1, %v6065_v61  ;;  %5062 = vmatmul.msk.bf16.vlgmr.msra.gmra.mxu1 %vm1641_vm1, %v6065_v61  ;;  %v4876_v43 = vor.u32 %v5440_v34, %v4873_v35  ;;  %v5410_v34 = vld [vmem:[%s6022_s17 + $0x354] sm:$0xf0]  ;;  %v5378_v35 = vld [vmem:[%s6022_s17 + $0x25c] sm:$0xf] }
  0x4e   : > { %2010 = vmatpush.bf16.msrb.mxu0 %v1683_v37  ;;  %2024 = vmatpush.bf16.msrb.mxu1 %v1686_v38  ;;  %v4864_v37 = vor.u32 %v5471_v29, %v4863_v28  ;;  %v4868_v38 = vor.u32 %v5439_v30, %v4865_v31  ;;  %v484_v28 = vld [vmem:[%s6022_s17 + $0x660] sm:$0x33]  ;;  %v4625_v31 = vld [vmem:[%s6022_s17 + $0x350] sm:$0xf0]  ;;  %v4632_v45 = vor.u32 %v5410_v34, %v4631_v32 }
  0x4f   : > { %5063 = vmatmul.msk.bf16.vlgmr.msra.gmra.mxu2 %vm1641_vm1, %v6065_v61  ;;  %5064 = vmatmul.msk.bf16.vlgmr.msra.gmra.mxu3 %vm1641_vm1, %v6065_v61  ;;  %v5315_v34 = vld [vmem:[%s6022_s17 + $0x64] sm:$0xf] }
  0x50   : > { %2038 = vmatpush.bf16.msrb.mxu2 %v1689_v39  ;;  %2052 = vmatpush.bf16.msrb.mxu3 %v1692_v40  ;;  %v5407_v39 = vld [vmem:[%s6022_s17 + $0x33c] sm:$0xf0]  ;;  %v5375_v40 = vld [vmem:[%s6022_s17 + $0x244] sm:$0xf] }
  0x51   : > { %v4608_v52 = vor.u32 %v5407_v39, %v4607_v36  ;;  %v4612_v53 = vor.u32 %v5375_v40, %v4609_v44  ;;  %v4633_v36 = vld [vmem:[%s6022_s17 + $0x358] sm:$0xf0]  ;;  %v1156_v44 = vunpack.c.h.b16 %v485_v33 }
  0x52   : > { %2011 = vmatpush.bf16.msrb.mxu0 %v4848_v50  ;;  %2025 = vmatpush.bf16.msrb.mxu1 %v4852_v51  ;;  %v1149_v50 = vunpack.c.l.b16 %v482_v41  ;;  %v1150_v51 = vunpack.c.h.b16 %v482_v41  ;;  %v4367_v41 = vld [vmem:[%s6022_s17 + $0x50] sm:$0xf] }
  0x54   : > { %2039 = vmatpush.bf16.msrb.mxu2 %v4856_v55  ;;  %2053 = vmatpush.bf16.msrb.mxu3 %v4860_v56  ;;  %v5343_v55 = vld [vmem:[%s6022_s17 + $0x13c] sm:$0xf0]  ;;  %v1151_v56 = vunpack.c.l.b16 %v483_v46  ;;  %v1405_v4 = vpack.c.b16 %v1149_v50, %v1149_v50  ;;  %v1406_v5 = vpack.c.b16 %v1150_v51, %v1150_v51  ;;  %v4636_v46 = vor.u32 %v5378_v35, %v4633_v36  ;;  %v5346_v50 = vld [vmem:[%s6022_s17 + $0x154] sm:$0xf0]  ;;  %v5314_v51 = vld [vmem:[%s6022_s17 + $0x5c] sm:$0xf] }
  0x55   : > { %v4385_v35 = vld [vmem:[%s6022_s17 + $0x160] sm:$0xf0]  ;;  %v4391_v36 = vld [vmem:[%s6022_s17 + $0x68] sm:$0xf] }
  0x56   : > { %2012 = vmatpush.bf16.msrb.mxu0 %v4592_v2  ;;  %2026 = vmatpush.bf16.msrb.mxu1 %v4596_v3  ;;  %v4361_v2 = vld [vmem:[%s6022_s17 + $0x148] sm:$0xf0]  ;;  %v4352_v3 = vor.u32 %v5343_v55, %v4351_v54  ;;  %v1407_v7 = vpack.c.b16 %v1151_v56, %v1151_v56  ;;  %v1707_v11 = vsel %vm1645_vm0, %v1405_v4, 0  ;;  %v1710_v12 = vsel %vm1645_vm0, %v1406_v5, 0  ;;  %v5443_v4 = vld [vmem:[%s6022_s17 + $0x464] sm:$0xf] }
  0x57   : > { %v4364_v10 = vor.u32 %v5312_v1, %v4361_v2  ;;  %v4372_v56 = vor.u32 %v5313_v47, %v4369_v48  ;;  %v4895_v2 = vld [vmem:[%s6022_s17 + $0x460] sm:$0xf]  ;;  %v4897_v5 = vld [vmem:[%s6022_s17 + $0x560] sm:$0xf0] }
  0x58   : > { %2040 = vmatpush.bf16.msrb.mxu2 %v4600_v8  ;;  %2054 = vmatpush.bf16.msrb.mxu3 %v4604_v9  ;;  %v1408_v8 = vpack.c.b16 %v1152_v57, %v1152_v57  ;;  %v4360_v9 = vor.u32 %v5344_v0, %v4359_v63  ;;  %v1713_v13 = vsel %vm1645_vm0, %v1407_v7, 0  ;;  %v5476_v7 = vld [vmem:[%s6022_s17 + $0x564] sm:$0xf0] }
  0x5a   : > { %2013 = vmatpush.bf16.msrb.mxu0 %v4336_v16  ;;  %2027 = vmatpush.bf16.msrb.mxu1 %v4340_v19  ;;  %v1716_v14 = vsel %vm1645_vm0, %v1408_v8, 0  ;;  %v5473_v16 = vld [vmem:[%s6022_s17 + $0x54c] sm:$0xf0]  ;;  %v4887_v19 = vld [vmem:[%s6022_s17 + $0x458] sm:$0xf] }
  0x5b   : > { %v4888_v29 = vor.u32 %v5474_v20, %v4887_v19  ;;  %v5444_v8 = vld [vmem:[%s6022_s17 + $0x46c] sm:$0xf]  ;;  %v4647_v19 = vld [vmem:[%s6022_s17 + $0x268] sm:$0xf]  ;;  %v487_v20 = vld [vmem:[%s6022_s17 + $0x678] sm:$0x33] }
  0x5c   : > { %2041 = vmatpush.bf16.msrb.mxu2 %v4344_v22  ;;  %2055 = vmatpush.bf16.msrb.mxu3 %v4348_v23  ;;  %v4889_v22 = vld [vmem:[%s6022_s17 + $0x558] sm:$0xf0]  ;;  %v4623_v23 = vld [vmem:[%s6022_s17 + $0x250] sm:$0xf] }
  0x5d   : > { %5065 = vmatmul.msk.bf16.vlgmr.msrb.gmra.mxu0 %vm1641_vm1, %v6065_v61  ;;  %5066 = vmatmul.msk.bf16.vlgmr.msrb.gmra.mxu1 %vm1641_vm1, %v6065_v61  ;;  %v4892_v30 = vor.u32 %v5442_v21, %v4889_v22  ;;  %v5412_v21 = vld [vmem:[%s6022_s17 + $0x364] sm:$0xf0]  ;;  %v5380_v22 = vld [vmem:[%s6022_s17 + $0x26c] sm:$0xf] }
  0x5e   : > { %2066 = vmatpush.bf16.msra.mxu0 %v1695_v24  ;;  %2080 = vmatpush.bf16.msra.mxu1 %v1698_v25  ;;  %v4880_v24 = vor.u32 %v5473_v16, %v4879_v15  ;;  %v4884_v25 = vor.u32 %v5441_v17, %v4881_v18  ;;  %v486_v15 = vld [vmem:[%s6022_s17 + $0x670] sm:$0x33]  ;;  %v4641_v18 = vld [vmem:[%s6022_s17 + $0x360] sm:$0xf0]  ;;  %v4648_v32 = vor.u32 %v5412_v21, %v4647_v19 }
  0x5f   : > { %5067 = vmatmul.msk.bf16.vlgmr.msrb.gmra.mxu2 %vm1641_vm1, %v6065_v61  ;;  %5068 = vmatmul.msk.bf16.vlgmr.msrb.gmra.mxu3 %vm1641_vm1, %v6065_v61  ;;  %v4401_v21 = vld [vmem:[%s6022_s17 + $0x170] sm:$0xf0] }
  0x60   : > { %2094 = vmatpush.bf16.msra.mxu2 %v1701_v26  ;;  %2108 = vmatpush.bf16.msra.mxu3 %v1704_v27  ;;  %v5409_v26 = vld [vmem:[%s6022_s17 + $0x34c] sm:$0xf0]  ;;  %v5377_v27 = vld [vmem:[%s6022_s17 + $0x254] sm:$0xf] }
  0x61   : > { %v4624_v39 = vor.u32 %v5409_v26, %v4623_v23  ;;  %v4628_v40 = vor.u32 %v5377_v27, %v4625_v31  ;;  %v4649_v23 = vld [vmem:[%s6022_s17 + $0x368] sm:$0xf0]  ;;  %v1160_v31 = vunpack.c.h.b16 %v487_v20 }
  0x62   : > { %2067 = vmatpush.bf16.msra.mxu0 %v4864_v37  ;;  %2081 = vmatpush.bf16.msra.mxu1 %v4868_v38  ;;  %v1153_v37 = vunpack.c.l.b16 %v484_v28  ;;  %v1154_v38 = vunpack.c.h.b16 %v484_v28  ;;  %v4383_v28 = vld [vmem:[%s6022_s17 + $0x60] sm:$0xf] }
  0x64   : > { %2095 = vmatpush.bf16.msra.mxu2 %v4872_v42  ;;  %2109 = vmatpush.bf16.msra.mxu3 %v4876_v43  ;;  %v5345_v42 = vld [vmem:[%s6022_s17 + $0x14c] sm:$0xf0]  ;;  %v1155_v43 = vunpack.c.l.b16 %v485_v33  ;;  %v1409_v54 = vpack.c.b16 %v1153_v37, %v1153_v37  ;;  %v1410_v55 = vpack.c.b16 %v1154_v38, %v1154_v38  ;;  %v4652_v33 = vor.u32 %v5380_v22, %v4649_v23  ;;  %v5348_v37 = vld [vmem:[%s6022_s17 + $0x164] sm:$0xf0]  ;;  %v5316_v38 = vld [vmem:[%s6022_s17 + $0x6c] sm:$0xf] }
  0x65   : > { %v4407_v22 = vld [vmem:[%s6022_s17 + $0x78] sm:$0xf] }
  0x66   : > { %2068 = vmatpush.bf16.msra.mxu0 %v4608_v52  ;;  %2082 = vmatpush.bf16.msra.mxu1 %v4612_v53  ;;  %v4377_v52 = vld [vmem:[%s6022_s17 + $0x158] sm:$0xf0]  ;;  %v4368_v53 = vor.u32 %v5345_v42, %v4367_v41  ;;  %v1411_v57 = vpack.c.b16 %v1155_v43, %v1155_v43  ;;  %v1719_v62 = vsel %vm1645_vm0, %v1409_v54, 0  ;;  %v1722_v63 = vsel %vm1645_vm0, %v1410_v55, 0  ;;  %v5445_v54 = vld [vmem:[%s6022_s17 + $0x474] sm:$0xf] }
  0x67   : > { %v4380_v60 = vor.u32 %v5314_v51, %v4377_v52  ;;  %v4388_v43 = vor.u32 %v5315_v34, %v4385_v35  ;;  %v4911_v52 = vld [vmem:[%s6022_s17 + $0x470] sm:$0xf]  ;;  %v4913_v55 = vld [vmem:[%s6022_s17 + $0x570] sm:$0xf0]  ;;  %v5350_v23 = vld [vmem:[%s6022_s17 + $0x174] sm:$0xf0] }
  0x68   : > { %2096 = vmatpush.bf16.msra.mxu2 %v4616_v58  ;;  %2110 = vmatpush.bf16.msra.mxu3 %v4620_v59  ;;  %v1412_v58 = vpack.c.b16 %v1156_v44, %v1156_v44  ;;  %v4376_v59 = vor.u32 %v5346_v50, %v4375_v49  ;;  %v1725_v0 = vsel %vm1645_vm0, %v1411_v57, 0  ;;  %v5478_v57 = vld [vmem:[%s6022_s17 + $0x574] sm:$0xf0] }
  0x6a   : > { %2069 = vmatpush.bf16.msra.mxu0 %v4352_v3  ;;  %2083 = vmatpush.bf16.msra.mxu1 %v4356_v6  ;;  %v1728_v1 = vsel %vm1645_vm0, %v1412_v58, 0  ;;  %v5475_v3 = vld [vmem:[%s6022_s17 + $0x55c] sm:$0xf0]  ;;  %v4903_v6 = vld [vmem:[%s6022_s17 + $0x468] sm:$0xf] }
  0x6b   : > { %v4904_v16 = vor.u32 %v5476_v7, %v4903_v6  ;;  %v5446_v58 = vld [vmem:[%s6022_s17 + $0x47c] sm:$0xf]  ;;  %v4663_v6 = vld [vmem:[%s6022_s17 + $0x278] sm:$0xf]  ;;  %v489_v7 = vld [vmem:[%s6022_s17 + $0x688] sm:$0x33] }
  0x6c   : > { %2097 = vmatpush.bf16.msra.mxu2 %v4360_v9  ;;  %2111 = vmatpush.bf16.msra.mxu3 %v4364_v10  ;;  %v4905_v9 = vld [vmem:[%s6022_s17 + $0x568] sm:$0xf0]  ;;  %v4639_v10 = vld [vmem:[%s6022_s17 + $0x260] sm:$0xf] }
  0x6d   : > { %5069 = vmatmul.msk.bf16.vlgmr.msra.gmra.mxu0 %vm1641_vm1, %v6065_v61  ;;  %5070 = vmatmul.msk.bf16.vlgmr.msra.gmra.mxu1 %vm1641_vm1, %v6065_v61  ;;  %v4908_v17 = vor.u32 %v5444_v8, %v4905_v9  ;;  %v5414_v8 = vld [vmem:[%s6022_s17 + $0x374] sm:$0xf0]  ;;  %v5382_v9 = vld [vmem:[%s6022_s17 + $0x27c] sm:$0xf] }
  0x6e   : > { %2122 = vmatpush.bf16.msrb.mxu0 %v1707_v11  ;;  %2136 = vmatpush.bf16.msrb.mxu1 %v1710_v12  ;;  %v4896_v11 = vor.u32 %v5475_v3, %v4895_v2  ;;  %v4900_v12 = vor.u32 %v5443_v4, %v4897_v5  ;;  %v488_v2 = vld [vmem:[%s6022_s17 + $0x680] sm:$0x33]  ;;  %v4657_v5 = vld [vmem:[%s6022_s17 + $0x370] sm:$0xf0]  ;;  %v4664_v19 = vor.u32 %v5414_v8, %v4663_v6 }
  0x6f   : > { %5071 = vmatmul.msk.bf16.vlgmr.msra.gmra.mxu2 %vm1641_vm1, %v6065_v61  ;;  %5072 = vmatmul.msk.bf16.vlgmr.msra.gmra.mxu3 %vm1641_vm1, %v6065_v61  ;;  %v5319_v8 = vld [vmem:[%s6022_s17 + $0x84] sm:$0xf] }
  0x70   : > { %2150 = vmatpush.bf16.msrb.mxu2 %v1713_v13  ;;  %2164 = vmatpush.bf16.msrb.mxu3 %v1716_v14  ;;  %v5411_v13 = vld [vmem:[%s6022_s17 + $0x35c] sm:$0xf0]  ;;  %v5379_v14 = vld [vmem:[%s6022_s17 + $0x264] sm:$0xf] }
  0x71   : > { %v4640_v26 = vor.u32 %v5411_v13, %v4639_v10  ;;  %v4644_v27 = vor.u32 %v5379_v14, %v4641_v18  ;;  %v4665_v10 = vld [vmem:[%s6022_s17 + $0x378] sm:$0xf0]  ;;  %v1164_v18 = vunpack.c.h.b16 %v489_v7 }
  0x72   : > { %2123 = vmatpush.bf16.msrb.mxu0 %v4880_v24  ;;  %2137 = vmatpush.bf16.msrb.mxu1 %v4884_v25  ;;  %v1157_v24 = vunpack.c.l.b16 %v486_v15  ;;  %v1158_v25 = vunpack.c.h.b16 %v486_v15  ;;  %v4399_v15 = vld [vmem:[%s6022_s17 + $0x70] sm:$0xf] }
  0x74   : > { %2151 = vmatpush.bf16.msrb.mxu2 %v4888_v29  ;;  %2165 = vmatpush.bf16.msrb.mxu3 %v4892_v30  ;;  %v5347_v29 = vld [vmem:[%s6022_s17 + $0x15c] sm:$0xf0]  ;;  %v1159_v30 = vunpack.c.l.b16 %v487_v20  ;;  %v1413_v41 = vpack.c.b16 %v1157_v24, %v1157_v24  ;;  %v1414_v42 = vpack.c.b16 %v1158_v25, %v1158_v25  ;;  %v4668_v20 = vor.u32 %v5382_v9, %v4665_v10  ;;  %v5318_v24 = vld [vmem:[%s6022_s17 + $0x7c] sm:$0xf]  ;;  %v4417_v9 = vld [vmem:[%s6022_s17 + $0x180] sm:$0xf0] }
  0x75   : > { %v4409_v25 = vld [vmem:[%s6022_s17 + $0x178] sm:$0xf0]  ;;  %v4423_v10 = vld [vmem:[%s6022_s17 + $0x88] sm:$0xf] }
  0x76   : > { %2124 = vmatpush.bf16.msrb.mxu0 %v4624_v39  ;;  %2138 = vmatpush.bf16.msrb.mxu1 %v4628_v40  ;;  %v4393_v39 = vld [vmem:[%s6022_s17 + $0x168] sm:$0xf0]  ;;  %v4384_v40 = vor.u32 %v5347_v29, %v4383_v28  ;;  %v1415_v44 = vpack.c.b16 %v1159_v30, %v1159_v30  ;;  %v1731_v48 = vsel %vm1645_vm0, %v1413_v41, 0  ;;  %v1734_v49 = vsel %vm1645_vm0, %v1414_v42, 0  ;;  %v4929_v41 = vld [vmem:[%s6022_s17 + $0x580] sm:$0xf0] }
  0x77   : > { %v4396_v47 = vor.u32 %v5316_v38, %v4393_v39  ;;  %v4927_v38 = vld [vmem:[%s6022_s17 + $0x480] sm:$0xf]  ;;  %v4935_v42 = vld [vmem:[%s6022_s17 + $0x488] sm:$0xf] }
  0x78   : > { %2152 = vmatpush.bf16.msrb.mxu2 %v4632_v45  ;;  %2166 = vmatpush.bf16.msrb.mxu3 %v4636_v46  ;;  %v1416_v45 = vpack.c.b16 %v1160_v31, %v1160_v31  ;;  %v4392_v46 = vor.u32 %v5348_v37, %v4391_v36  ;;  %v1737_v50 = vsel %vm1645_vm0, %v1415_v44, 0  ;;  %v1420_v31 = vpack.c.b16 %v1164_v18, %v1164_v18  ;;  %v5479_v39 = vld [vmem:[%s6022_s17 + $0x57c] sm:$0xf0]  ;;  %v5448_v44 = vld [vmem:[%s6022_s17 + $0x48c] sm:$0xf] }
  0x7a   : > { %2125 = vmatpush.bf16.msrb.mxu0 %v4368_v53  ;;  %2139 = vmatpush.bf16.msrb.mxu1 %v4372_v56  ;;  %v1740_v51 = vsel %vm1645_vm0, %v1416_v45, 0  ;;  %v5477_v53 = vld [vmem:[%s6022_s17 + $0x56c] sm:$0xf0]  ;;  %v4919_v56 = vld [vmem:[%s6022_s17 + $0x478] sm:$0xf]  ;;  %v1752_v37 = vsel %vm1645_vm0, %v1420_v31, 0 }
  0x7b   : > { %v4920_v3 = vor.u32 %v5478_v57, %v4919_v56  ;;  %v4937_v45 = vld [vmem:[%s6022_s17 + $0x588] sm:$0xf0]  ;;  %v4679_v56 = vld [vmem:[%s6022_s17 + $0x288] sm:$0xf]  ;;  %v6355_v57 = vld [vmem:[%s8427_s1] sm:$0xff] }
  0x7c   : > { %2153 = vmatpush.bf16.msrb.mxu2 %v4376_v59  ;;  %2167 = vmatpush.bf16.msrb.mxu3 %v4380_v60  ;;  %v4921_v59 = vld [vmem:[%s6022_s17 + $0x578] sm:$0xf0]  ;;  %v4655_v60 = vld [vmem:[%s6022_s17 + $0x270] sm:$0xf]  ;;  %v4951_v31 = vld [vmem:[%s6022_s17 + $0x498] sm:$0xf] }
  0x7d   : > { %5073 = vmatmul.msk.bf16.vlgmr.msrb.gmra.mxu0 %vm1641_vm1, %v6065_v61  ;;  %5074 = vmatmul.msk.bf16.vlgmr.msrb.gmra.mxu1 %vm1641_vm1, %v6065_v61  ;;  %v4924_v4 = vor.u32 %v5446_v58, %v4921_v59  ;;  %v5416_v58 = vld [vmem:[%s6022_s17 + $0x384] sm:$0xf0]  ;;  %v5384_v59 = vld [vmem:[%s6022_s17 + $0x28c] sm:$0xf] }
  0x7e   : > { %2178 = vmatpush.bf16.msra.mxu0 %v1719_v62  ;;  %2192 = vmatpush.bf16.msra.mxu1 %v1722_v63  ;;  %v4912_v62 = vor.u32 %v5477_v53, %v4911_v52  ;;  %v4916_v63 = vor.u32 %v5445_v54, %v4913_v55  ;;  %v4940_v53 = vor.u32 %v5448_v44, %v4937_v45  ;;  %v5383_v54 = vld [vmem:[%s6022_s17 + $0x284] sm:$0xf]  ;;  %v4687_v44 = vld [vmem:[%s6022_s17 + $0x290] sm:$0xf] }
  0x7f   : > { %5075 = vmatmul.msk.bf16.vlgmr.msrb.gmra.mxu2 %vm1641_vm1, %v6065_v61  ;;  %5076 = vmatmul.msk.bf16.vlgmr.msrb.gmra.mxu3 %vm1641_vm1, %v6065_v61  ;;  %v4673_v55 = vld [vmem:[%s6022_s17 + $0x380] sm:$0xf0]  ;;  %v4680_v6 = vor.u32 %v5416_v58, %v4679_v56  ;;  %v5417_v45 = vld [vmem:[%s6022_s17 + $0x38c] sm:$0xf0]  ;;  %v5386_v56 = vld [vmem:[%s6022_s17 + $0x29c] sm:$0xf] }
  0x80   : > { %2206 = vmatpush.bf16.msra.mxu2 %v1725_v0  ;;  %2220 = vmatpush.bf16.msra.mxu3 %v1728_v1  ;;  %v5413_v0 = vld [vmem:[%s6022_s17 + $0x36c] sm:$0xf0]  ;;  %v5381_v1 = vld [vmem:[%s6022_s17 + $0x274] sm:$0xf]  ;;  %v4697_v58 = vld [vmem:[%s6022_s17 + $0x398] sm:$0xf0] }
  0x81   : > { %v4656_v13 = vor.u32 %v5413_v0, %v4655_v60  ;;  %v4660_v14 = vor.u32 %v5381_v1, %v4657_v5  ;;  %v4681_v60 = vld [vmem:[%s6022_s17 + $0x388] sm:$0xf0]  ;;  %v5351_v5 = vld [vmem:[%s6022_s17 + $0x17c] sm:$0xf0] }
  0x82   : > { %2179 = vmatpush.bf16.msra.mxu0 %v4896_v11  ;;  %2193 = vmatpush.bf16.msra.mxu1 %v4900_v12  ;;  %v1161_v11 = vunpack.c.l.b16 %v488_v2  ;;  %v1162_v12 = vunpack.c.h.b16 %v488_v2 }
  0x84   : > { %2207 = vmatpush.bf16.msra.mxu2 %v4904_v16  ;;  %2221 = vmatpush.bf16.msra.mxu3 %v4908_v17  ;;  %v5349_v16 = vld [vmem:[%s6022_s17 + $0x16c] sm:$0xf0]  ;;  %v1163_v17 = vunpack.c.l.b16 %v489_v7  ;;  %v1418_v28 = vpack.c.b16 %v1162_v12, %v1162_v12  ;;  %v4684_v7 = vor.u32 %v5384_v59, %v4681_v60  ;;  %v5320_v12 = vld [vmem:[%s6022_s17 + $0x8c] sm:$0xf] }
  0x86   : > { %2180 = vmatpush.bf16.msra.mxu0 %v4640_v26  ;;  %2194 = vmatpush.bf16.msra.mxu1 %v4644_v27  ;;  %v4400_v26 = vor.u32 %v5349_v16, %v4399_v15  ;;  %v1417_v27 = vpack.c.b16 %v1161_v11, %v1161_v11  ;;  %v1419_v30 = vpack.c.b16 %v1163_v17, %v1163_v17  ;;  %v1746_v35 = vsel %vm1645_vm0, %v1418_v28, 0  ;;  %v5352_v11 = vld [vmem:[%s6022_s17 + $0x184] sm:$0xf0]  ;;  %v5481_v28 = vld [vmem:[%s6022_s17 + $0x58c] sm:$0xf0] }
  0x88   : > { %2208 = vmatpush.bf16.msra.mxu2 %v4648_v32  ;;  %2222 = vmatpush.bf16.msra.mxu3 %v4652_v33  ;;  %v4408_v32 = vor.u32 %v5350_v23, %v4407_v22  ;;  %v4412_v33 = vor.u32 %v5318_v24, %v4409_v25  ;;  %v1743_v34 = vsel %vm1645_vm0, %v1417_v27, 0  ;;  %v1749_v36 = vsel %vm1645_vm0, %v1419_v30, 0  ;;  %v4943_v27 = vld [vmem:[%s6022_s17 + $0x490] sm:$0xf]  ;;  %v4945_v30 = vld [vmem:[%s6022_s17 + $0x590] sm:$0xf0] }
  0x8a   : > { %2181 = vmatpush.bf16.msra.mxu0 %v4384_v40  ;;  %2195 = vmatpush.bf16.msra.mxu1 %v4388_v43  ;;  %v5447_v40 = vld [vmem:[%s6022_s17 + $0x484] sm:$0xf]  ;;  %v5480_v43 = vld [vmem:[%s6022_s17 + $0x584] sm:$0xf0] }
  0x8b   : > { %v4936_v52 = vor.u32 %v5480_v43, %v4935_v42  ;;  %v4944_v42 = vor.u32 %v5481_v28, %v4943_v27 }
  0x8c   : > { %2209 = vmatpush.bf16.msra.mxu2 %v4392_v46  ;;  %2223 = vmatpush.bf16.msra.mxu3 %v4396_v47  ;;  %v4671_v46 = vld [vmem:[%s6022_s17 + $0x280] sm:$0xf]  ;;  %v4928_v47 = vor.u32 %v5479_v39, %v4927_v38 }
  0x8d   : > { %5077 = vmatmul.msk.bf16.vlgmr.msra.gmra.mxu0 %vm1641_vm1, %v6065_v61  ;;  %5078 = vmatmul.msk.bf16.vlgmr.msra.gmra.mxu1 %vm1641_vm1, %v6065_v61 }
  0x8e   : > { %2234 = vmatpush.bf16.msrb.mxu0 %v1731_v48  ;;  %2248 = vmatpush.bf16.msrb.mxu1 %v1734_v49  ;;  %v4932_v48 = vor.u32 %v5447_v40, %v4929_v41  ;;  %v5415_v49 = vld [vmem:[%s6022_s17 + $0x37c] sm:$0xf0] }
  0x8f   : > { %5079 = vmatmul.msk.bf16.vlgmr.msra.gmra.mxu2 %vm1641_vm1, %v6065_v61  ;;  %5080 = vmatmul.msk.bf16.vlgmr.msra.gmra.mxu3 %vm1641_vm1, %v6065_v61  ;;  %v5317_v61 = vld [vmem:[%s6022_s17 + $0x74] sm:$0xf]  ;;  %v4672_v2 = vor.u32 %v5415_v49, %v4671_v46 }
  0x90   : > { %2262 = vmatpush.bf16.msrb.mxu2 %v1737_v50  ;;  %2276 = vmatpush.bf16.msrb.mxu3 %v1740_v51  ;;  %v4404_v29 = vor.u32 %v5317_v61, %v4401_v21  ;;  %v490_v50 = vld [vmem:[%s6022_s17 + $0x690] sm:$0x33]  ;;  %v491_v51 = vld [vmem:[%s6022_s17 + $0x698] sm:$0x33]  ;;  %v6376_v21 = vpop.permute.xlu0 %508 }
  0x91   : > { %v1167_v0 = vunpack.c.l.b16 %v491_v51  ;;  %v1168_v1 = vunpack.c.h.b16 %v491_v51  ;;  %v5385_v46 = vld [vmem:[%s6022_s17 + $0x294] sm:$0xf]  ;;  %v5418_v51 = vld [vmem:[%s6022_s17 + $0x394] sm:$0xf0] }
  0x92   : > { %2235 = vmatpush.bf16.msrb.mxu0 %v4912_v62  ;;  %2249 = vmatpush.bf16.msrb.mxu1 %v4916_v63  ;;  %v1165_v62 = vunpack.c.l.b16 %v490_v50  ;;  %v1166_v63 = vunpack.c.h.b16 %v490_v50  ;;  %v4689_v49 = vld [vmem:[%s6022_s17 + $0x390] sm:$0xf0]  ;;  %v4695_v50 = vld [vmem:[%s6022_s17 + $0x298] sm:$0xf] }
  0x93   : > { %v1423_v16 = vpack.c.b16 %v1167_v0, %v1167_v0  ;;  %v1424_v17 = vpack.c.b16 %v1168_v1, %v1168_v1 }
  0x94   : > { %2263 = vmatpush.bf16.msrb.mxu2 %v4920_v3  ;;  %2277 = vmatpush.bf16.msrb.mxu3 %v4924_v4  ;;  %v4676_v3 = vor.u32 %v5383_v54, %v4673_v55  ;;  %v4415_v4 = vld [vmem:[%s6022_s17 + $0x80] sm:$0xf]  ;;  %v1422_v15 = vpack.c.b16 %v1166_v63, %v1166_v63  ;;  %v6420_v63 = vld [vmem:[%s6022_s17 + $0x18c] sm:$0xf0] }
  0x95   : > { %v4416_v18 = vor.u32 %v5351_v5, %v4415_v4  ;;  %v1761_v24 = vsel %vm1645_vm0, %v1423_v16, 0  ;;  %v1764_v25 = vsel %vm1645_vm0, %v1424_v17, 0  ;;  %v5321_v4 = vld [vmem:[%s6022_s17 + $0x94] sm:$0xf] }
  0x96   : > { %2236 = vmatpush.bf16.msrb.mxu0 %v4656_v13  ;;  %2250 = vmatpush.bf16.msrb.mxu1 %v4660_v14  ;;  %v4425_v13 = vld [vmem:[%s6022_s17 + $0x188] sm:$0xf0]  ;;  %v1421_v14 = vpack.c.b16 %v1165_v62, %v1165_v62  ;;  %v1758_v23 = vsel %vm1645_vm0, %v1422_v15, 0  ;;  %v6417_v62 = vld [vmem:[%s6022_s17 + $0x90] sm:$0xf] }
  0x97   : > { %v4428_v61 = vor.u32 %v5320_v12, %v4425_v13  ;;  %v4441_v15 = vld [vmem:[%s6022_s17 + $0x198] sm:$0xf0] }
  0x98   : > { %2264 = vmatpush.bf16.msrb.mxu2 %v4664_v19  ;;  %2278 = vmatpush.bf16.msrb.mxu3 %v4668_v20  ;;  %v4420_v19 = vor.u32 %v5319_v8, %v4417_v9  ;;  %v4424_v20 = vor.u32 %v5352_v11, %v4423_v10  ;;  %v1755_v22 = vsel %vm1645_vm0, %v1421_v14, 0  ;;  %v6423_v5 = vpop.permute.xlu0 %513  ;;  %v4433_v8 = vld [vmem:[%s6022_s17 + $0x190] sm:$0xf0]  ;;  %v4439_v9 = vld [vmem:[%s6022_s17 + $0x98] sm:$0xf] }
  0x99   : > { %v5354_v10 = vld [vmem:[%s6022_s17 + $0x194] sm:$0xf0]  ;;  %v5322_v14 = vld [vmem:[%s6022_s17 + $0x9c] sm:$0xf] }
  0x9a   : > { %2237 = vmatpush.bf16.msrb.mxu0 %v4400_v26  ;;  %2251 = vmatpush.bf16.msrb.mxu1 %v4404_v29  ;;  %v492_v26 = vld [vmem:[%s6022_s17 + $0x6a0] sm:$0x33]  ;;  %v5449_v29 = vld [vmem:[%s6022_s17 + $0x494] sm:$0xf] }
  0x9b   : > { %v4948_v43 = vor.u32 %v5449_v29, %v4945_v30  ;;  %v4436_v29 = vor.u32 %v5321_v4, %v4433_v8  ;;  %v6460_v30 = vld [vmem:[%s6022_s17 + $0x5a0] sm:$0xf0] }
  0x9c   : > { %2265 = vmatpush.bf16.msrb.mxu2 %v4408_v32  ;;  %2279 = vmatpush.bf16.msrb.mxu3 %v4412_v33  ;;  %v5482_v32 = vld [vmem:[%s6022_s17 + $0x594] sm:$0xf0]  ;;  %v5450_v33 = vld [vmem:[%s6022_s17 + $0x49c] sm:$0xf] }
  0x9d   : > { %5081 = vmatmul.msk.bf16.vlgmr.msrb.gmra.mxu0 %vm1641_vm1, %v6355_v57  ;;  %5082 = vmatmul.msk.bf16.vlgmr.msrb.gmra.mxu1 %vm1641_vm1, %v6355_v57 }
  0x9e   : > { %2290 = vmatpush.bf16.msra.mxu0 %v1743_v34  ;;  %2304 = vmatpush.bf16.msra.mxu1 %v1746_v35  ;;  %v4953_v34 = vld [vmem:[%s6022_s17 + $0x598] sm:$0xf0]  ;;  %v1169_v35 = vunpack.c.l.b16 %v492_v26 }
  0x9f   : > { %5083 = vmatmul.msk.bf16.vlgmr.msrb.gmra.mxu2 %vm1641_vm1, %v6355_v57  ;;  %5084 = vmatmul.msk.bf16.vlgmr.msrb.gmra.mxu3 %vm1641_vm1, %v6355_v57 }
  0xa0   : > { %2318 = vmatpush.bf16.msra.mxu2 %v1749_v36  ;;  %2332 = vmatpush.bf16.msra.mxu3 %v1752_v37  ;;  %v1170_v36 = vunpack.c.h.b16 %v492_v26  ;;  %v493_v37 = vld [vmem:[%s6022_s17 + $0x6a8] sm:$0x33]  ;;  %v1425_v59 = vpack.c.b16 %v1169_v35, %v1169_v35  ;;  %v6451_v26 = vld [vmem:[%s6022_s17 + $0x4a4] sm:$0xf]  ;;  %v4440_v35 = vor.u32 %v5354_v10, %v4439_v9  ;;  %v6525_v10 = vld [vmem:[%s6022_s17 + $0xa0] sm:$0xf] }
  0xa2   : > { %2291 = vmatpush.bf16.msra.mxu0 %v4928_v47  ;;  %2305 = vmatpush.bf16.msra.mxu1 %v4932_v48  ;;  %v4952_v47 = vor.u32 %v5482_v32, %v4951_v31  ;;  %v4956_v48 = vor.u32 %v5450_v33, %v4953_v34  ;;  %v1426_v60 = vpack.c.b16 %v1170_v36, %v1170_v36  ;;  %v6431_v16 = vsel %vm1645_vm0, %v1425_v59, 0  ;;  %v6463_v31 = vld [vmem:[%s6022_s17 + $0x4a8] sm:$0xf]  ;;  %v6501_v59 = vld [vmem:[%s6022_s17 + $0x3a0] sm:$0xf0] }
  0xa3   : > { %v6466_v32 = vld [vmem:[%s6022_s17 + $0x5a4] sm:$0xf0]  ;;  %v4444_v36 = vor.u32 %v5322_v14, %v4441_v15 }
  0xa4   : > { %2319 = vmatpush.bf16.msra.mxu2 %v4936_v52  ;;  %2333 = vmatpush.bf16.msra.mxu3 %v4940_v53  ;;  %v1171_v52 = vunpack.c.l.b16 %v493_v37  ;;  %v1172_v53 = vunpack.c.h.b16 %v493_v37  ;;  %v6434_v17 = vsel %vm1645_vm0, %v1426_v60, 0  ;;  %v6471_v37 = vld [vmem:[%s6022_s17 + $0x4ac] sm:$0xf]  ;;  %v6504_v60 = vld [vmem:[%s6022_s17 + $0x2a8] sm:$0xf] }
  0xa6   : > { %2292 = vmatpush.bf16.msra.mxu0 %v4672_v2  ;;  %2306 = vmatpush.bf16.msra.mxu1 %v4676_v3  ;;  %v4688_v2 = vor.u32 %v5417_v45, %v4687_v44  ;;  %v4692_v3 = vor.u32 %v5385_v46, %v4689_v49  ;;  %v1427_v11 = vpack.c.b16 %v1171_v52, %v1171_v52  ;;  %v6481_v45 = vld [vmem:[%s6022_s17 + $0x6b0] sm:$0x33] }
  0xa7   : > { %v4964_v49 = vor.u32 %v6451_v26, %v6460_v30  ;;  %v1174_v4 = vunpack.c.h.b16 %v6481_v45 }
  0xa8   : > { %2320 = vmatpush.bf16.msra.mxu2 %v4680_v6  ;;  %2334 = vmatpush.bf16.msra.mxu3 %v4684_v7  ;;  %v4696_v6 = vor.u32 %v5418_v51, %v4695_v50  ;;  %v4700_v7 = vor.u32 %v5386_v56, %v4697_v58  ;;  %v6488_v50 = vld [vmem:[%s6022_s17 + $0x2a0] sm:$0xf]  ;;  %v6498_v58 = vld [vmem:[%s6022_s17 + $0x2a4] sm:$0xf] }
  0xa9   : > { %v6491_v51 = vld [vmem:[%s6022_s17 + $0x39c] sm:$0xf0] }
  0xaa   : > { %2293 = vmatpush.bf16.msra.mxu0 %v4416_v18  ;;  %2307 = vmatpush.bf16.msra.mxu1 %v4420_v19  ;;  %v1847_v38 = vpop.f32.mrf.mxu0  ;;  %v1861_v39 = vpop.f32.mrf.mxu1  ;;  %v1428_v18 = vpack.c.b16 %v1172_v53, %v1172_v53 }
  0xab   : > { %v6393_v40 = vadd.f32 %v1847_v38, %v6376_v21  ;;  %v6396_v41 = vadd.f32 %v1861_v39, %v6376_v21  ;;  %v6474_v38 = vld [vmem:[%s6022_s17 + $0x5a8] sm:$0xf0] }
  0xac   : > { %2321 = vmatpush.bf16.msra.mxu2 %v4424_v20  ;;  %2335 = vmatpush.bf16.msra.mxu3 %v4428_v61  ;;  %v1776_v44 = vsel %vm1645_vm0, %v1428_v18, 0  ;;  %v4972_v56 = vor.u32 %v6471_v37, %v6474_v38  ;;  %v6535_v18 = vld [vmem:[%s6022_s17 + $0x19c] sm:$0xf0] }
  0xad   : > { %v2862_v54 = vmin.f32 %v6393_v40, 0.0  ;;  %v2863_v55 = vmin.f32 %v6396_v41, 0.0  ;;  %5085 = vmatmul.msk.bf16.vlgmr.msra.gmra.mxu0 %vm1641_vm1, %v6355_v57  ;;  %5086 = vmatmul.msk.bf16.vlgmr.msra.gmra.mxu1 %vm1641_vm1, %v6355_v57  ;;  %vm2734_vm2 = vcmp.gt.f32.partialorder %v6393_v40, 0.0  ;;  %vm2735_vm3 = vcmp.gt.f32.partialorder %v6396_v41, 0.0 }
  0xae   : > { %2346 = vmatpush.bf16.msrb.mxu0 %v1755_v22  ;;  %2360 = vmatpush.bf16.msrb.mxu1 %v1758_v23  ;;  %v4432_v23 = vor.u32 %v6420_v63, %v6417_v62  ;;  %v6507_v62 = vld [vmem:[%s6022_s17 + $0x3a4] sm:$0xf0] }
  0xaf   : > { %5087 = vmatmul.msk.bf16.vlgmr.msra.gmra.mxu2 %vm1641_vm1, %v6355_v57  ;;  %5088 = vmatmul.msk.bf16.vlgmr.msra.gmra.mxu3 %vm1641_vm1, %v6355_v57  ;;  %v2990_v0 = vmul.f32 1.442695, %v2862_v54  ;;  %v2992_v1 = vmul.f32 1.442695, %v2863_v55  ;;  %v4968_v55 = vor.u32 %v6466_v32, %v6463_v31 }
  0xb0   : > { %2374 = vmatpush.bf16.msrb.mxu2 %v1761_v24  ;;  %2388 = vmatpush.bf16.msrb.mxu3 %v1764_v25  ;;  %v6445_v24 = vld [vmem:[%s6022_s17 + $0x4a0] sm:$0xf] }
  0xb1   : > { %5541 = vpow2.f32 %v2990_v0  ;;  %v6448_v25 = vld [vmem:[%s6022_s17 + $0x59c] sm:$0xf0] }
  0xb2   : > { %2347 = vmatpush.bf16.msrb.mxu0 %v4944_v42  ;;  %2361 = vmatpush.bf16.msrb.mxu1 %v4948_v43  ;;  %v1875_v12 = vpop.f32.mrf.mxu2  ;;  %v1889_v13 = vpop.f32.mrf.mxu3  ;;  %5543 = vpow2.f32 %v2992_v1  ;;  %v1773_v43 = vsel %vm1645_vm0, %v1427_v11, 0  ;;  %v6510_v1 = vld [vmem:[%s6022_s17 + $0x2ac] sm:$0xf] }
  0xb3   : > { %v6437_v19 = vadd.f32 %v1875_v12, %v6376_v21  ;;  %v6440_v20 = vadd.f32 %v1889_v13, %v6376_v21  ;;  %v1849_v61 = vpop.f32.mrf.mxu0  ;;  %v1863_v22 = vpop.f32.mrf.mxu1 }
  0xb4   : > { %2375 = vmatpush.bf16.msrb.mxu2 %v4952_v47  ;;  %2389 = vmatpush.bf16.msrb.mxu3 %v4956_v48  ;;  %v6454_v27 = vadd.f32 %v1849_v61, %v6423_v5  ;;  %v6457_v28 = vadd.f32 %v1863_v22, %v6423_v5  ;;  %v4960_v48 = vor.u32 %v6448_v25, %v6445_v24 }
  0xb5   : > { %v2864_v33 = vmin.f32 %v6437_v19, 0.0  ;;  %v2865_v34 = vmin.f32 %v6440_v20, 0.0  ;;  %v4704_v61 = vor.u32 %v6491_v51, %v6488_v50  ;;  %vm2736_vm4 = vcmp.gt.f32.partialorder %v6437_v19, 0.0 }
  0xb6   : > { %2348 = vmatpush.bf16.msrb.mxu0 %v4688_v2  ;;  %2362 = vmatpush.bf16.msrb.mxu1 %v4692_v3  ;;  %v2926_v39 = vmin.f32 %v6454_v27, 0.0  ;;  %v2927_v42 = vmin.f32 %v6457_v28, 0.0  ;;  %v6513_v2 = vld [vmem:[%s6022_s17 + $0x3a8] sm:$0xf0]  ;;  %v1173_v3 = vunpack.c.l.b16 %v6481_v45  ;;  %v1430_v45 = vpack.c.b16 %v1174_v4, %v1174_v4  ;;  %v5485_v4 = vld [vmem:[%s6022_s17 + $0x5ac] sm:$0xf0] }
  0xb7   : > { %v2994_v46 = vmul.f32 1.442695, %v2864_v33  ;;  %v2996_v47 = vmul.f32 1.442695, %v2865_v34  ;;  %v5542_v52 = vpop.eup %5541  ;;  %v4708_v33 = vor.u32 %v6498_v58, %v6501_v59  ;;  %v4712_v34 = vor.u32 %v6507_v62, %v6504_v60  ;;  %v4455_v58 = vld [vmem:[%s6022_s17 + $0xa8] sm:$0xf] }
  0xb8   : > { %2376 = vmatpush.bf16.msrb.mxu2 %v4696_v6  ;;  %2390 = vmatpush.bf16.msrb.mxu3 %v4700_v7  ;;  %v3118_v53 = vmul.f32 1.442695, %v2926_v39  ;;  %v3120_v54 = vmul.f32 1.442695, %v2927_v42  ;;  %v5544_v63 = vpop.eup %5543  ;;  %v5117_v0 = vadd.f32 -1.0, %v5542_v52  ;;  %vm2737_vm5 = vcmp.gt.f32.partialorder %v6440_v20, 0.0 }
  0xb9   : > { %5545 = vpow2.f32 %v2994_v46  ;;  %v6518_v6 = vld [vmem:[%s6022_s17 + $0x6b8] sm:$0x33]  ;;  %v5118_v7 = vadd.f32 -1.0, %v5544_v63  ;;  %vm2798_vm6 = vcmp.gt.f32.partialorder %v6454_v27, 0.0  ;;  %v5356_v59 = vld [vmem:[%s6022_s17 + $0x1a4] sm:$0xf0] }
  0xba   : > { %2349 = vmatpush.bf16.msrb.mxu0 %v4432_v23  ;;  %2363 = vmatpush.bf16.msrb.mxu1 %v4436_v29  ;;  %5547 = vpow2.f32 %v2996_v47  ;;  %v1877_v8 = vpop.f32.mrf.mxu2  ;;  %v1891_v9 = vpop.f32.mrf.mxu3  ;;  %v3374_v11 = vsel %vm2734_vm2, %v6393_v40, %v5117_v0  ;;  %v1175_v22 = vunpack.c.l.b16 %v6518_v6  ;;  %v1176_v46 = vunpack.c.h.b16 %v6518_v6  ;;  %v6612_v6 = vld [vmem:[%s6022_s17 + $0x4b4] sm:$0xf] }
  0xbb   : > { %5549 = vpow2.f32 %v3118_v53  ;;  %v6529_v12 = vadd.f32 %v1877_v8, %v6423_v5  ;;  %v6532_v13 = vadd.f32 %v1891_v9, %v6423_v5  ;;  %v1903_v14 = vpop.f32.mrf.mxu0  ;;  %v1917_v15 = vpop.f32.mrf.mxu1  ;;  %v3375_v40 = vsel %vm2735_vm3, %v6396_v41, %v5118_v7 }
  0xbc   : > { %2377 = vmatpush.bf16.msrb.mxu2 %v4440_v35  ;;  %2391 = vmatpush.bf16.msrb.mxu3 %v4444_v36  ;;  %5551 = vpow2.f32 %v3120_v54  ;;  %v3502_v23 = vadd.f32 %v3375_v40, %v3374_v11  ;;  %v4716_v41 = vor.u32 %v6510_v1, %v6513_v2  ;;  %v4448_v36 = vor.u32 %v6535_v18, %v6525_v10  ;;  %v6617_v11 = vld [vmem:[%s6022_s17 + $0x5b0] sm:$0xf0]  ;;  %v5421_v18 = vld [vmem:[%s6022_s17 + $0x3ac] sm:$0xf0] }
  0xbd   : > { %v2928_v29 = vmin.f32 %v6529_v12, 0.0  ;;  %v2929_v35 = vmin.f32 %v6532_v13, 0.0  ;;  %5089 = vmatmul.msk.bf16.vlgmr.msrb.gmra.mxu0 %vm1641_vm1, %v6355_v57  ;;  %5090 = vmatmul.msk.bf16.vlgmr.msrb.gmra.mxu1 %vm1641_vm1, %v6355_v57  ;;  %v1431_v52 = vpack.c.b16 %v1175_v22, %v1175_v22  ;;  %v6587_v30 = vadd.f32 %v1903_v14, %v6376_v21 }
  0xbe   : > { %2402 = vmatpush.bf16.msra.mxu0 %v6431_v16  ;;  %2416 = vmatpush.bf16.msra.mxu1 %v6434_v17  ;;  %v6538_v16 = vld [vmem:[%s6022_s17 + $0xa4] sm:$0xf]  ;;  %v1432_v60 = vpack.c.b16 %v1176_v46, %v1176_v46  ;;  %vm2799_vm7 = vcmp.gt.f32.partialorder %v6457_v28, 0.0  ;;  %v1782_v40 = vsel %vm1645_vm0, %v1430_v45, 0  ;;  %vm2800_vm8 = vcmp.gt.f32.partialorder %v6529_v12, 0.0 }
  0xbf   : > { %v6541_v17 = vld [vmem:[%s6022_s17 + $0x1a0] sm:$0xf0]  ;;  %v5546_v42 = vpop.eup %5545  ;;  %5091 = vmatmul.msk.bf16.vlgmr.msrb.gmra.mxu2 %vm1641_vm1, %v6355_v57  ;;  %5092 = vmatmul.msk.bf16.vlgmr.msrb.gmra.mxu3 %vm1641_vm1, %v6355_v57  ;;  %v3124_v51 = vmul.f32 1.442695, %v2929_v35  ;;  %v2866_v7 = vmin.f32 %v6587_v30, 0.0  ;;  %vm2801_vm9 = vcmp.gt.f32.partialorder %v6532_v13, 0.0 }
  0xc0   : > { %2430 = vmatpush.bf16.msra.mxu2 %v1773_v43  ;;  %2444 = vmatpush.bf16.msra.mxu3 %v1776_v44  ;;  %v4452_v39 = vor.u32 %v6538_v16, %v6541_v17  ;;  %v3122_v43 = vmul.f32 1.442695, %v2928_v29  ;;  %v1429_v44 = vpack.c.b16 %v1173_v3, %v1173_v3  ;;  %v5548_v47 = vpop.eup %5547  ;;  %v5119_v50 = vadd.f32 -1.0, %v5546_v42  ;;  %v6643_v42 = vld [vmem:[%s6022_s17 + $0x5b8] sm:$0xf0] }
  0xc1   : > { %v5550_v53 = vpop.eup %5549  ;;  %v5120_v54 = vadd.f32 -1.0, %v5548_v47  ;;  %v4456_v3 = vor.u32 %v5356_v59, %v4455_v58  ;;  %v1788_v22 = vsel %vm1645_vm0, %v1432_v60, 0  ;;  %v6654_v16 = vld [vmem:[%s6022_s17 + $0x6c0] sm:$0x33]  ;;  %v5422_v59 = vld [vmem:[%s6022_s17 + $0x3b4] sm:$0xf0] }
  0xc2   : > { %2403 = vmatpush.bf16.msra.mxu0 %v4960_v48  ;;  %2417 = vmatpush.bf16.msra.mxu1 %v4964_v49  ;;  %5553 = vpow2.f32 %v3122_v43  ;;  %v5552_v24 = vpop.eup %5551  ;;  %v3376_v25 = vsel %vm2736_vm4, %v6437_v19, %v5119_v50  ;;  %v5181_v26 = vadd.f32 -1.0, %v5550_v53  ;;  %v1931_v48 = vpop.f32.mrf.mxu2  ;;  %v5324_v19 = vld [vmem:[%s6022_s17 + $0xac] sm:$0xf]  ;;  %v1779_v9 = vsel %vm1645_vm0, %v1429_v44, 0  ;;  %v6646_v43 = vld [vmem:[%s6022_s17 + $0x2b0] sm:$0xf] }
  0xc3   : > { %5555 = vpow2.f32 %v3124_v51  ;;  %v1945_v49 = vpop.f32.mrf.mxu3  ;;  %v3504_v31 = vadd.f32 %v3502_v23, %v3376_v25  ;;  %v5182_v32 = vadd.f32 -1.0, %v5552_v24  ;;  %v1905_v37 = vpop.f32.mrf.mxu0  ;;  %v3377_v62 = vsel %vm2737_vm5, %v6440_v20, %v5120_v54  ;;  %v4975_v20 = vld [vmem:[%s6022_s17 + $0x4b0] sm:$0xf]  ;;  %v6627_v23 = vld [vmem:[%s6022_s17 + $0x5b4] sm:$0xf0] }
  0xc4   : > { %2431 = vmatpush.bf16.msra.mxu2 %v4968_v55  ;;  %2445 = vmatpush.bf16.msra.mxu3 %v4972_v56  ;;  %v6592_v55 = vadd.f32 %v1917_v15, %v6376_v21  ;;  %v1919_v38 = vpop.f32.mrf.mxu1  ;;  %v4457_v56 = vld [vmem:[%s6022_s17 + $0x1a8] sm:$0xf0]  ;;  %v3438_v63 = vsel %vm2798_vm6, %v6454_v27, %v5181_v26  ;;  %v6604_v0 = vadd.f32 %v1931_v48, %v6376_v21  ;;  %v5389_v51 = vld [vmem:[%s6022_s17 + $0x2b4] sm:$0xf]  ;;  %v4727_v26 = vld [vmem:[%s6022_s17 + $0x2b8] sm:$0xf] }
  0xc5   : > { %v6606_v1 = vadd.f32 %v3504_v31, %v3377_v62  ;;  %v3439_v2 = vsel %vm2799_vm7, %v6457_v28, %v5182_v32  ;;  %v4460_v8 = vor.u32 %v5324_v19, %v4457_v56  ;;  %v6620_v28 = vld [vmem:[%s6022_s17 + $0x4b8] sm:$0xf]  ;;  %v6631_v35 = vadd.f32 %v1945_v49, %v6376_v21  ;;  %v5390_v56 = vld [vmem:[%s6022_s17 + $0x2bc] sm:$0xf] }
  0xc6   : > { %2404 = vmatpush.bf16.msra.mxu0 %v4704_v61  ;;  %2418 = vmatpush.bf16.msra.mxu1 %v4708_v33  ;;  %v3503_v27 = vadd.f32 %v3439_v2, %v3438_v63  ;;  %v2867_v15 = vmin.f32 %v6592_v55, 0.0  ;;  %v1785_v61 = vsel %vm1645_vm0, %v1431_v52, 0  ;;  %v6650_v45 = vadd.f32 %v1905_v37, %v6423_v5  ;;  %v4721_v52 = vld [vmem:[%s6022_s17 + $0x3b0] sm:$0xf0]  ;;  %v4463_v63 = vld [vmem:[%s6022_s17 + $0xb0] sm:$0xf] }
  0xc7   : > { %v4976_v10 = vor.u32 %v5485_v4, %v4975_v20  ;;  %v4980_v50 = vor.u32 %v6612_v6, %v6617_v11  ;;  %v4984_v25 = vor.u32 %v6627_v23, %v6620_v28  ;;  %v2869_v58 = vmin.f32 %v6631_v35, 0.0  ;;  %v5357_v2 = vld [vmem:[%s6022_s17 + $0x1ac] sm:$0xf0] }
  0xc8   : > { %2432 = vmatpush.bf16.msra.mxu2 %v4712_v34  ;;  %2446 = vmatpush.bf16.msra.mxu3 %v4716_v41  ;;  %v5554_v14 = vpop.eup %5553  ;;  %v2868_v34 = vmin.f32 %v6604_v0, 0.0  ;;  %v6640_v41 = vld [vmem:[%s6022_s17 + $0x4bc] sm:$0xf]  ;;  %v1177_v31 = vunpack.c.l.b16 %v6654_v16  ;;  %v2930_v37 = vmin.f32 %v6650_v45, 0.0  ;;  %v4720_v19 = vor.u32 %v5421_v18, %v6646_v43 }
  0xc9   : > { %v5556_v29 = vpop.eup %5555  ;;  %v5183_v33 = vadd.f32 -1.0, %v5554_v14  ;;  %v4728_v20 = vor.u32 %v5422_v59, %v4727_v26  ;;  %v3004_v4 = vmul.f32 1.442695, %v2869_v58  ;;  %v4464_v14 = vor.u32 %v5357_v2, %v4463_v63 }
  0xca   : > { %2405 = vmatpush.bf16.msra.mxu0 %v4448_v36  ;;  %2419 = vmatpush.bf16.msra.mxu1 %v4452_v39  ;;  %v5184_v44 = vadd.f32 -1.0, %v5556_v29  ;;  %v2998_v36 = vmul.f32 1.442695, %v2866_v7  ;;  %v6658_v39 = vadd.f32 %v1919_v38, %v6423_v5  ;;  %v1933_v46 = vpop.f32.mrf.mxu2  ;;  %v3002_v49 = vmul.f32 1.442695, %v2868_v34 }
  0xcb   : > { %v3440_v17 = vsel %vm2800_vm8, %v6529_v12, %v5183_v33  ;;  %v6660_v47 = vpop.f32.mrf.mxu3  ;;  %v3000_v12 = vmul.f32 1.442695, %v2867_v15  ;;  %v1959_v54 = vpop.f32.mrf.mxu0  ;;  %v4988_v38 = vor.u32 %v6640_v41, %v6643_v42  ;;  %v4465_v7 = vld [vmem:[%s6022_s17 + $0x1b0] sm:$0xf0]  ;;  %v6702_v11 = vadd.f32 %v1933_v46, %v6423_v5  ;;  %v4471_v15 = vld [vmem:[%s6022_s17 + $0xb8] sm:$0xf] }
  0xcc   : > { %2433 = vmatpush.bf16.msra.mxu2 %v4456_v3  ;;  %2447 = vmatpush.bf16.msra.mxu3 %v4460_v8  ;;  %v3505_v53 = vadd.f32 %v3503_v27, %v3440_v17  ;;  %v1973_v24 = vpop.f32.mrf.mxu1  ;;  %v3441_v48 = vsel %vm2801_vm9, %v6532_v13, %v5184_v44  ;;  %v4729_v13 = vld [vmem:[%s6022_s17 + $0x3b8] sm:$0xf0]  ;;  %5557 = vpow2.f32 %v2998_v36  ;;  %v2931_v60 = vmin.f32 %v6658_v39, 0.0  ;;  %v5325_v27 = vld [vmem:[%s6022_s17 + $0xb4] sm:$0xf] }
  0xcd   : > { %v6684_v62 = vadd.f32 %v1959_v54, %v6376_v21  ;;  %5093 = vmatmul.msk.bf16.vlgmr.msra.gmra.mxu0 %vm1641_vm1, %v6355_v57  ;;  %5094 = vmatmul.msk.bf16.vlgmr.msra.gmra.mxu1 %vm1641_vm1, %v6355_v57  ;;  %5559 = vpow2.f32 %v3000_v12  ;;  %v4724_v3 = vor.u32 %v5389_v51, %v4721_v52  ;;  %v6697_v6 = vadd.f32 %v1973_v24, %v6376_v21 }
  0xce   : > { %2458 = vmatpush.bf16.msrb.mxu0 %v1779_v9  ;;  %2472 = vmatpush.bf16.msrb.mxu1 %v1782_v40  ;;  %v6674_v32 = vadd.f32 %v3505_v53, %v3441_v48  ;;  %5561 = vpow2.f32 %v3002_v49  ;;  %v1433_v8 = vpack.c.b16 %v1177_v31, %v1177_v31  ;;  %v3126_v9 = vmul.f32 1.442695, %v2930_v37  ;;  %v5358_v40 = vld [vmem:[%s6022_s17 + $0x1b4] sm:$0xf0] }
  0xcf   : > { %5095 = vmatmul.msk.bf16.vlgmr.msra.gmra.mxu2 %vm1641_vm1, %v6355_v57  ;;  %5096 = vmatmul.msk.bf16.vlgmr.msra.gmra.mxu3 %vm1641_vm1, %v6355_v57  ;;  %v4732_v28 = vor.u32 %v5390_v56, %v4729_v13  ;;  %5563 = vpow2.f32 %v3004_v4  ;;  %v2871_v44 = vmin.f32 %v6697_v6, 0.0  ;;  %v4472_v18 = vor.u32 %v5358_v40, %v4471_v15 }
  0xd0   : > { %2486 = vmatpush.bf16.msrb.mxu2 %v1785_v61  ;;  %2500 = vmatpush.bf16.msrb.mxu3 %v1788_v22  ;;  %v3128_v61 = vmul.f32 1.442695, %v2931_v60  ;;  %v2870_v22 = vmin.f32 %v6684_v62, 0.0  ;;  %v1791_v42 = vsel %vm1645_vm0, %v1433_v8, 0  ;;  %5565 = vpow2.f32 %v3126_v9  ;;  %v4473_v9 = vld [vmem:[%s6022_s17 + $0x1b8] sm:$0xf0] }
  0xd1   : > { %v2932_v36 = vmin.f32 %v6702_v11, 0.0  ;;  %v6715_v46 = vadd.f32 %v6660_v47, %v6423_v5  ;;  %vm2738_vm10 = vcmp.gt.f32.partialorder %v6587_v30, 0.0  ;;  %v1178_v54 = vunpack.c.h.b16 %v6654_v16 }
  0xd2   : > { %2459 = vmatpush.bf16.msrb.mxu0 %v4976_v10  ;;  %2473 = vmatpush.bf16.msrb.mxu1 %v4980_v50  ;;  %v1987_v23 = vpop.f32.mrf.mxu2  ;;  %v5558_v43 = vpop.eup %5557  ;;  %v4468_v10 = vor.u32 %v5325_v27, %v4465_v7  ;;  %5567 = vpow2.f32 %v3128_v61  ;;  %v3006_v51 = vmul.f32 1.442695, %v2870_v22  ;;  %vm2739_vm11 = vcmp.gt.f32.partialorder %v6592_v55, 0.0  ;;  %v4991_v61 = vld [vmem:[%s6022_s17 + $0x4c0] sm:$0xf] }
  0xd3   : > { %v2001_v29 = vpop.f32.mrf.mxu3  ;;  %v6708_v33 = vadd.f32 %v1987_v23, %v6376_v21  ;;  %v1961_v34 = vpop.f32.mrf.mxu0  ;;  %v5121_v12 = vadd.f32 -1.0, %v5558_v43  ;;  %v3008_v24 = vmul.f32 1.442695, %v2871_v44  ;;  %vm2740_vm12 = vcmp.gt.f32.partialorder %v6604_v0, 0.0  ;;  %v5455_v44 = vld [vmem:[%s6022_s17 + $0x4c4] sm:$0xf] }
  0xd4   : > { %2487 = vmatpush.bf16.msrb.mxu2 %v4984_v25  ;;  %2501 = vmatpush.bf16.msrb.mxu3 %v4988_v38  ;;  %v1975_v41 = vpop.f32.mrf.mxu1  ;;  %v5560_v17 = vpop.eup %5559  ;;  %v6719_v53 = vadd.f32 %v2001_v29, %v6376_v21  ;;  %v6725_v25 = vadd.f32 %v1961_v34, %v6423_v5  ;;  %v3130_v48 = vmul.f32 1.442695, %v2932_v36  ;;  %v2933_v49 = vmin.f32 %v6715_v46, 0.0 }
  0xd5   : > { %v5562_v50 = vpop.eup %5561  ;;  %v2872_v52 = vmin.f32 %v6708_v33, 0.0  ;;  %v5122_v47 = vadd.f32 -1.0, %v5560_v17  ;;  %5569 = vpow2.f32 %v3006_v51  ;;  %v6731_v31 = vadd.f32 %v1975_v41, %v6423_v5  ;;  %v497_v51 = vld [vmem:[%s6022_s17 + $0x6c8] sm:$0x33] }
  0xd6   : > { %2460 = vmatpush.bf16.msrb.mxu0 %v4720_v19  ;;  %2474 = vmatpush.bf16.msrb.mxu1 %v4724_v3  ;;  %v5123_v26 = vadd.f32 -1.0, %v5562_v50  ;;  %v5564_v58 = vpop.eup %5563  ;;  %v2873_v16 = vmin.f32 %v6719_v53, 0.0  ;;  %v3378_v56 = vsel %vm2738_vm10, %v6587_v30, %v5121_v12  ;;  %vm2741_vm13 = vcmp.gt.f32.partialorder %v6631_v35, 0.0  ;;  %v5326_v30 = vld [vmem:[%s6022_s17 + $0xbc] sm:$0xf] }
  0xd7   : > { %v3010_v59 = vmul.f32 1.442695, %v2872_v52  ;;  %v5566_v19 = vpop.eup %5565  ;;  %vm2802_vm14 = vcmp.gt.f32.partialorder %v6650_v45, 0.0  ;;  %v1434_v13 = vpack.c.b16 %v1178_v54, %v1178_v54  ;;  %v3379_v63 = vsel %vm2739_vm11, %v6592_v55, %v5122_v47 }
  0xd8   : > { %2488 = vmatpush.bf16.msrb.mxu2 %v4728_v20  ;;  %2502 = vmatpush.bf16.msrb.mxu3 %v4732_v28  ;;  %v5568_v60 = vpop.eup %5567  ;;  %5571 = vpow2.f32 %v3008_v24  ;;  %v2934_v2 = vmin.f32 %v6725_v25, 0.0  ;;  %v3380_v27 = vsel %vm2740_vm12, %v6604_v0, %v5123_v26  ;;  %v5124_v7 = vadd.f32 -1.0, %v5564_v58 }
  0xd9   : > { %5573 = vpow2.f32 %v3130_v48  ;;  %v3132_v8 = vmul.f32 1.442695, %v2933_v49  ;;  %v5185_v28 = vadd.f32 -1.0, %v5566_v19  ;;  %v3012_v55 = vmul.f32 1.442695, %v2873_v16 }
  0xda   : > { %2461 = vmatpush.bf16.msrb.mxu0 %v4464_v14  ;;  %2475 = vmatpush.bf16.msrb.mxu1 %v4468_v10  ;;  %v1989_v37 = vpop.f32.mrf.mxu2  ;;  %5575 = vpow2.f32 %v3010_v59  ;;  %v2935_v14 = vmin.f32 %v6731_v31, 0.0  ;;  %v3508_v15 = vadd.f32 %v3379_v63, %v3378_v56  ;;  %vm2803_vm15 = vcmp.gt.f32.partialorder %v6658_v39, 0.0  ;;  %v4993_v10 = vld [vmem:[%s6022_s17 + $0x5c0] sm:$0xf0] }
  0xdb   : > { %v2003_v38 = vpop.f32.mrf.mxu3  ;;  %v6743_v3 = vadd.f32 %v1989_v37, %v6423_v5  ;;  %v2015_v20 = vpop.f32.mrf.mxu0  ;;  %v5186_v0 = vadd.f32 -1.0, %v5568_v60  ;;  %v1794_v40 = vsel %vm1645_vm0, %v1434_v13, 0  ;;  %v3134_v23 = vmul.f32 1.442695, %v2934_v2  ;;  %v4735_v13 = vld [vmem:[%s6022_s17 + $0x2c0] sm:$0xf] }
  0xdc   : > { %2489 = vmatpush.bf16.msrb.mxu2 %v4472_v18  ;;  %v2029_v4 = vpop.f32.mrf.mxu1  ;;  %v5570_v22 = vpop.eup %5569  ;;  %v6762_v34 = vadd.f32 %v2003_v38, %v6423_v5  ;;  %v4476_v41 = vor.u32 %v5326_v30, %v4473_v9  ;;  %v3510_v43 = vadd.f32 %v3508_v15, %v3380_v27  ;;  %vm2804_vm2 = vcmp.gt.f32.partialorder %v6702_v11, 0.0  ;;  %v5423_v60 = vld [vmem:[%s6022_s17 + $0x3bc] sm:$0xf0] }
  0xdd   : > { %5097 = vmatmul.msk.bf16.vlgmr.msrb.gmra.mxu0 %vm1641_vm1, %v6355_v57  ;;  %5098 = vmatmul.msk.bf16.vlgmr.msrb.gmra.mxu1 %vm1641_vm1, %v6355_v57  ;;  %v2936_v29 = vmin.f32 %v6743_v3, 0.0  ;;  %5577 = vpow2.f32 %v3132_v8  ;;  %vm2742_vm3 = vcmp.gt.f32.partialorder %v6684_v62, 0.0  ;;  %vm2743_vm4 = vcmp.gt.f32.partialorder %v6697_v6, 0.0  ;;  %v4737_v8 = vld [vmem:[%s6022_s17 + $0x3c0] sm:$0xf0] }
  0xde   : > { %2514 = vmatpush.bf16.msra.mxu0 %v1791_v42  ;;  %2528 = vmatpush.bf16.msra.mxu1 %v1794_v40  ;;  %v5487_v42 = vld [vmem:[%s6022_s17 + $0x5bc] sm:$0xf0]  ;;  %v5572_v18 = vpop.eup %5571  ;;  %v3381_v17 = vsel %vm2741_vm13, %v6631_v35, %v5124_v7  ;;  %v3442_v36 = vsel %vm2802_vm14, %v6650_v45, %v5185_v28  ;;  %5579 = vpow2.f32 %v3012_v55  ;;  %v3136_v50 = vmul.f32 1.442695, %v2935_v14  ;;  %v5391_v7 = vld [vmem:[%s6022_s17 + $0x2c4] sm:$0xf] }
  0xdf   : > { %5099 = vmatmul.msk.bf16.vlgmr.msrb.gmra.mxu2 %vm1641_vm1, %v6355_v57  ;;  %2503 = vmatpush.bf16.msrb.mxu3 %v4476_v41  ;;  %v5574_v54 = vpop.eup %5573  ;;  %v3443_v47 = vsel %vm2803_vm15, %v6658_v39, %v5186_v0  ;;  %v5125_v24 = vadd.f32 -1.0, %v5570_v22  ;;  %v6783_v26 = vadd.f32 %v2015_v20, %v6376_v21  ;;  %v4992_v35 = vor.u32 %v5487_v42, %v4991_v61 }
  0xe0   : > { %v5576_v48 = vpop.eup %5575  ;;  %5581 = vpow2.f32 %v3134_v23  ;;  %v3138_v45 = vmul.f32 1.442695, %v2936_v29  ;;  %v2937_v49 = vmin.f32 %v6762_v34, 0.0  ;;  %v4996_v58 = vor.u32 %v5455_v44, %v4993_v10  ;;  %v4999_v44 = vld [vmem:[%s6022_s17 + $0x4c8] sm:$0xf] }
  0xe1   : > { %v5126_v59 = vadd.f32 -1.0, %v5572_v18  ;;  %v6787_v16 = vadd.f32 %v2029_v4, %v6376_v21  ;;  %v1179_v39 = vunpack.c.l.b16 %v497_v51  ;;  %v1180_v37 = vunpack.c.h.b16 %v497_v51  ;;  %v5488_v10 = vld [vmem:[%s6022_s17 + $0x5c4] sm:$0xf0]  ;;  %v5001_v18 = vld [vmem:[%s6022_s17 + $0x5c8] sm:$0xf0] }
  0xe2   : > { %v2043_v52 = vpop.f32.mrf.mxu2  ;;  %5100 = vmatmul.msk.bf16.vlgmr.msrb.gmra.mxu3 %vm1641_vm1, %v6355_v57  ;;  %2515 = vmatpush.bf16.msra.mxu0 %v4992_v35  ;;  %v6791_v38 = vadd.f32 %v3510_v43, %v3381_v17  ;;  %v3509_v19 = vadd.f32 %v3443_v47, %v3442_v36  ;;  %v5187_v56 = vadd.f32 -1.0, %v5574_v54  ;;  %5583 = vpow2.f32 %v3136_v50  ;;  %v6825_v17 = vld [vmem:[%s6022_s17 + $0x6d0] sm:$0x33]  ;;  %v4479_v51 = vld [vmem:[%s6022_s17 + $0xc0] sm:$0xf] }
  0xe3   : > { %v6777_v12 = vpop.f32.mrf.mxu3  ;;  %2529 = vmatpush.bf16.msra.mxu1 %v4996_v58  ;;  %v2017_v63 = vpop.f32.mrf.mxu0  ;;  %v5127_v4 = vadd.f32 -1.0, %v5576_v48  ;;  %v2874_v57 = vmin.f32 %v6783_v26, 0.0  ;;  %v1435_v30 = vpack.c.b16 %v1179_v39, %v1179_v39  ;;  %v1436_v27 = vpack.c.b16 %v1180_v37, %v1180_v37  ;;  %v5327_v54 = vld [vmem:[%s6022_s17 + $0xc4] sm:$0xf]  ;;  %v4743_v37 = vld [vmem:[%s6022_s17 + $0x2c8] sm:$0xf] }
  0xe4   : > { %v6795_v2 = vpop.f32.mrf.mxu1  ;;  %v5578_v20 = vpop.eup %5577  ;;  %v3382_v28 = vsel %vm2742_vm3, %v6684_v62, %v5125_v24  ;;  %5585 = vpow2.f32 %v3138_v45  ;;  %v3140_v55 = vmul.f32 1.442695, %v2937_v49  ;;  %v6804_v14 = vadd.f32 %v2043_v52, %v6376_v21  ;;  %v5359_v52 = vld [vmem:[%s6022_s17 + $0x1bc] sm:$0xf0]  ;;  %v4481_v45 = vld [vmem:[%s6022_s17 + $0x1c0] sm:$0xf0] }
  0xe5   : > { %v5580_v9 = vpop.eup %5579  ;;  %v3383_v15 = vsel %vm2743_vm4, %v6697_v6, %v5126_v59  ;;  %v2875_v0 = vmin.f32 %v6787_v16, 0.0  ;;  %v1797_v40 = vsel %vm1645_vm0, %v1435_v30, 0  ;;  %v1800_v61 = vsel %vm1645_vm0, %v1436_v27, 0 }
  0xe6   : > { %v5582_v62 = vpop.eup %5581  ;;  %v3444_v22 = vsel %vm2804_vm2, %v6702_v11, %v5187_v56  ;;  %vm2744_vm5 = vcmp.gt.f32.partialorder %v6708_v33, 0.0  ;;  %2542 = vmatpush.bf16.msra.mxu2 %v1797_v40  ;;  %2556 = vmatpush.bf16.msra.mxu3 %v1800_v61  ;;  %v4736_v6 = vor.u32 %v5423_v60, %v4735_v13  ;;  %v4740_v23 = vor.u32 %v5391_v7, %v4737_v8  ;;  %v5456_v11 = vld [vmem:[%s6022_s17 + $0x4cc] sm:$0xf]  ;;  %v5424_v56 = vld [vmem:[%s6022_s17 + $0x3c4] sm:$0xf0] }
  0xe7   : > { %v3384_v41 = vsel %vm2744_vm5, %v6708_v33, %v5127_v4  ;;  %vm2745_vm6 = vcmp.gt.f32.partialorder %v6719_v53, 0.0  ;;  %v5128_v42 = vadd.f32 -1.0, %v5580_v9  ;;  %v3014_v43 = vmul.f32 1.442695, %v2874_v57  ;;  %v5392_v4 = vld [vmem:[%s6022_s17 + $0x2cc] sm:$0xf] }
  0xe8   : > { %v5584_v36 = vpop.eup %5583  ;;  %vm2805_vm7 = vcmp.gt.f32.partialorder %v6715_v46, 0.0  ;;  %v3514_v50 = vadd.f32 %v3383_v15, %v3382_v28  ;;  %vm2806_vm8 = vcmp.gt.f32.partialorder %v6725_v25, 0.0  ;;  %5587 = vpow2.f32 %v3140_v55  ;;  %2516 = vmatpush.bf16.msra.mxu0 %v4736_v6  ;;  %2530 = vmatpush.bf16.msra.mxu1 %v4740_v23  ;;  %v4745_v57 = vld [vmem:[%s6022_s17 + $0x3c8] sm:$0xf0] }
  0xe9   : > { %v2876_v33 = vmin.f32 %v6804_v14, 0.0  ;;  %v3511_v24 = vadd.f32 %v3509_v19, %v3444_v22  ;;  %v5188_v35 = vadd.f32 -1.0, %v5578_v20  ;;  %vm2807_vm9 = vcmp.gt.f32.partialorder %v6731_v31, 0.0 }
  0xea   : > { %v6816_v29 = vpop.f32.mrf.mxu2  ;;  %v3016_v48 = vmul.f32 1.442695, %v2875_v0  ;;  %v5586_v49 = vpop.eup %5585  ;;  %v3516_v58 = vadd.f32 %v3514_v50, %v3384_v41  ;;  %v5189_v59 = vadd.f32 -1.0, %v5582_v62  ;;  %v6839_v39 = vadd.f32 %v6777_v12, %v6376_v21 }
  0xeb   : > { %v6833_v47 = vpop.f32.mrf.mxu3  ;;  %v1181_v13 = vunpack.c.l.b16 %v6825_v17  ;;  %v3385_v19 = vsel %vm2745_vm6, %v6719_v53, %v5128_v42  ;;  %v5190_v60 = vadd.f32 -1.0, %v5584_v36  ;;  %5589 = vpow2.f32 %v3014_v43  ;;  %v2071_v8 = vpop.f32.mrf.mxu0 }
  0xec   : > { %v6848_v20 = vadd.f32 %v2017_v63, %v6423_v5  ;;  %v3018_v30 = vmul.f32 1.442695, %v2876_v33  ;;  %v6854_v12 = vadd.f32 %v6795_v2, %v6423_v5  ;;  %v5000_v27 = vor.u32 %v5488_v10, %v4999_v44  ;;  %v6856_v9 = vpop.f32.mrf.mxu1  ;;  %v5328_v33 = vld [vmem:[%s6022_s17 + $0xcc] sm:$0xf] }
  0xed   : > { %v5004_v7 = vor.u32 %v5456_v11, %v5001_v18  ;;  %v5191_v28 = vadd.f32 -1.0, %v5586_v49  ;;  %5591 = vpow2.f32 %v3016_v48  ;;  %v4480_v53 = vor.u32 %v5359_v52, %v4479_v51  ;;  %v4487_v18 = vld [vmem:[%s6022_s17 + $0xc8] sm:$0xf]  ;;  %v4489_v51 = vld [vmem:[%s6022_s17 + $0x1c8] sm:$0xf0]  ;;  %v6896_v49 = vld [vmem:[%s8427_s1] sm:$0xff] }
  0xee   : > { %v4484_v55 = vor.u32 %v5327_v54, %v4481_v45  ;;  %v5588_v15 = vpop.eup %5587  ;;  %v2877_v63 = vmin.f32 %v6839_v39, 0.0  ;;  %2543 = vmatpush.bf16.msra.mxu2 %v5000_v27  ;;  %v4744_v0 = vor.u32 %v5424_v56, %v4743_v37  ;;  %v4748_v40 = vor.u32 %v5392_v4, %v4745_v57  ;;  %v5489_v45 = vld [vmem:[%s6022_s17 + $0x5cc] sm:$0xf0]  ;;  %v5457_v37 = vld [vmem:[%s6022_s17 + $0x4d4] sm:$0xf] }
  0xef   : > { %2557 = vmatpush.bf16.msra.mxu3 %v5004_v7  ;;  %v1437_v61 = vpack.c.b16 %v1181_v13, %v1181_v13  ;;  %v3518_v2 = vadd.f32 %v3516_v58, %v3385_v19  ;;  %v3446_v22 = vsel %vm2806_vm8, %v6725_v25, %v5189_v59  ;;  %v2938_v6 = vmin.f32 %v6848_v20, 0.0  ;;  %2517 = vmatpush.bf16.msra.mxu0 %v4480_v53  ;;  %v499_v4 = vld [vmem:[%s6022_s17 + $0x6d8] sm:$0x33]  ;;  %v4751_v7 = vld [vmem:[%s6022_s17 + $0x2d0] sm:$0xf] }
  0xf0   : > { %2531 = vmatpush.bf16.msra.mxu1 %v4484_v55  ;;  %v1182_v23 = vunpack.c.h.b16 %v6825_v17  ;;  %v3447_v41 = vsel %vm2807_vm9, %v6731_v31, %v5190_v60  ;;  %5593 = vpow2.f32 %v3018_v30  ;;  %v2939_v42 = vmin.f32 %v6854_v12, 0.0  ;;  %v5360_v31 = vld [vmem:[%s6022_s17 + $0x1c4] sm:$0xf0]  ;;  %v5009_v60 = vld [vmem:[%s6022_s17 + $0x5d0] sm:$0xf0] }
  0xf1   : > { %v1803_v43 = vsel %vm1645_vm0, %v1437_v61, 0  ;;  %v5590_v44 = vpop.eup %5589  ;;  %v3445_v25 = vsel %vm2805_vm7, %v6715_v46, %v5188_v35  ;;  %vm2808_vm10 = vcmp.gt.f32.partialorder %v6743_v3, 0.0  ;;  %v5192_v10 = vadd.f32 -1.0, %v5588_v15  ;;  %v5007_v46 = vld [vmem:[%s6022_s17 + $0x4d0] sm:$0xf] }
  0xf2   : > { %v6859_v62 = vpop.f32.mrf.mxu2  ;;  %v1438_v11 = vpack.c.b16 %v1182_v23, %v1182_v23  ;;  %v6877_v17 = vadd.f32 %v3511_v24, %v3445_v25  ;;  %v3448_v36 = vsel %vm2808_vm10, %v6743_v3, %v5191_v28  ;;  %vm2809_vm11 = vcmp.gt.f32.partialorder %v6762_v34, 0.0  ;;  %2544 = vmatpush.bf16.msra.mxu2 %v4744_v0  ;;  %5101 = vmatmul.msk.bf16.vlgmr.msra.gmra.mxu0 %vm1641_vm1, %v6896_v49  ;;  %v4753_v0 = vld [vmem:[%s6022_s17 + $0x3d0] sm:$0xf0] }
  0xf3   : > { %2570 = vmatpush.bf16.msrb.mxu0 %v1803_v43  ;;  %v3020_v50 = vmul.f32 1.442695, %v2877_v63  ;;  %2558 = vmatpush.bf16.msra.mxu3 %v4748_v40  ;;  %v6884_v52 = vpop.f32.mrf.mxu3  ;;  %v5592_v54 = vpop.eup %5591  ;;  %v3515_v35 = vadd.f32 %v3447_v41, %v3446_v22  ;;  %vm2746_vm12 = vcmp.gt.f32.partialorder %v6783_v26, 0.0  ;;  %v3142_v24 = vmul.f32 1.442695, %v2938_v6 }
  0xf4   : > { %v1806_v48 = vsel %vm1645_vm0, %v1438_v11, 0  ;;  %v6890_v3 = vadd.f32 %v6816_v29, %v6423_v5  ;;  %5102 = vmatmul.msk.bf16.vlgmr.msra.gmra.mxu1 %vm1641_vm1, %v6896_v49  ;;  %v6903_v58 = vpack.c.bf16 %v3518_v2, %v6791_v38  ;;  %vm2747_vm13 = vcmp.gt.f32.partialorder %v6787_v16, 0.0  ;;  %v2073_v28 = vpop.f32.mrf.mxu0  ;;  %v6926_v53 = vpop.f32.mrf.mxu1  ;;  %v5393_v63 = vld [vmem:[%s6022_s17 + $0x2d4] sm:$0xf]  ;;  %v5490_v11 = vld [vmem:[%s6022_s17 + $0x5d4] sm:$0xf0] }
  0xf5   : > { %v3144_v29 = vmul.f32 1.442695, %v2939_v42  ;;  %2584 = vmatpush.bf16.msrb.mxu1 %v1806_v48  ;;  %v6908_v59 = vadd.f32 %v6833_v47, %v6423_v5  ;;  %v3517_v56 = vadd.f32 %v3515_v35, %v3448_v36  ;;  %v3449_v13 = vsel %vm2809_vm11, %v6762_v34, %v5192_v10  ;;  %v5425_v34 = vld [vmem:[%s6022_s17 + $0x3cc] sm:$0xf0]  ;;  %v5015_v42 = vld [vmem:[%s6022_s17 + $0x4d8] sm:$0xf] }
  0xf6   : > { %v5129_v19 = vadd.f32 -1.0, %v5590_v44  ;;  %vm2748_vm14 = vcmp.gt.f32.partialorder %v6804_v14, 0.0  ;;  %v6916_v38 = vadd.f32 %v2071_v8, %v6376_v21  ;;  %v5594_v57 = vpop.eup %5593  ;;  %v5130_v30 = vadd.f32 -1.0, %v5592_v54 }
  0xf7   : > { %5595 = vpow2.f32 %v3020_v50  ;;  %v6922_v47 = vadd.f32 %v6856_v9, %v6376_v21  ;;  %v4488_v27 = vor.u32 %v5360_v31, %v4487_v18  ;;  %v2940_v8 = vmin.f32 %v6890_v3, 0.0  ;;  %v5458_v18 = vld [vmem:[%s6022_s17 + $0x4dc] sm:$0xf] }
  0xf8   : > { %5597 = vpow2.f32 %v3142_v24  ;;  %v4492_v55 = vor.u32 %v5328_v33, %v4489_v51  ;;  %v5008_v15 = vor.u32 %v5489_v45, %v5007_v46  ;;  %v2941_v9 = vmin.f32 %v6908_v59, 0.0  ;;  %v5017_v33 = vld [vmem:[%s6022_s17 + $0x5d8] sm:$0xf0] }
  0xf9   : > { %5599 = vpow2.f32 %v3144_v29  ;;  %2545 = vmatpush.bf16.msra.mxu2 %v4488_v27  ;;  %v5012_v61 = vor.u32 %v5457_v37, %v5009_v60  ;;  %v1183_v2 = vunpack.c.l.b16 %v499_v4  ;;  %v5131_v22 = vadd.f32 -1.0, %v5594_v57  ;;  %v5361_v37 = vld [vmem:[%s6022_s17 + $0x1cc] sm:$0xf0]  ;;  %v5329_v57 = vld [vmem:[%s6022_s17 + $0xd4] sm:$0xf] }
  0xfa   : > { %v6931_v40 = vpop.f32.mrf.mxu2  ;;  %v2878_v6 = vmin.f32 %v6916_v38, 0.0  ;;  %2559 = vmatpush.bf16.msra.mxu3 %v4492_v55  ;;  %2571 = vmatpush.bf16.msrb.mxu0 %v5008_v15  ;;  %v1184_v23 = vunpack.c.h.b16 %v499_v4  ;;  %v4752_v41 = vor.u32 %v5425_v34, %v4751_v7  ;;  %v2879_v43 = vmin.f32 %v6922_v47, 0.0  ;;  %v500_v34 = vld [vmem:[%s6022_s17 + $0x6e0] sm:$0x33] }
  0xfb   : > { %2585 = vmatpush.bf16.msrb.mxu1 %v5012_v61  ;;  %v1439_v44 = vpack.c.b16 %v1183_v2, %v1183_v2  ;;  %v4756_v25 = vor.u32 %v5393_v63, %v4753_v0  ;;  %v6939_v10 = vadd.f32 %v6859_v62, %v6376_v21  ;;  %v3519_v31 = vadd.f32 %v3517_v56, %v3449_v13  ;;  %v6956_v24 = vpop.f32.mrf.mxu3  ;;  %v5426_v0 = vld [vmem:[%s6022_s17 + $0x3d4] sm:$0xf0] }
  0xfc   : > { %vm2749_vm15 = vcmp.gt.f32.partialorder %v6839_v39, 0.0  ;;  %v3146_v36 = vmul.f32 1.442695, %v2940_v8  ;;  %v1440_v50 = vpack.c.b16 %v1184_v23, %v1184_v23  ;;  %5103 = vmatmul.msk.bf16.vlgmr.msra.gmra.mxu2 %vm1641_vm1, %v6896_v49  ;;  %v3386_v46 = vsel %vm2746_vm12, %v6783_v26, %v5129_v19  ;;  %v4759_v8 = vld [vmem:[%s6022_s17 + $0x2d8] sm:$0xf] }
  0xfd   : > { %v5596_v51 = vpop.eup %5595  ;;  %v3387_v62 = vsel %vm2747_vm13, %v6787_v16, %v5130_v30  ;;  %v3148_v54 = vmul.f32 1.442695, %v2941_v9  ;;  %v1809_v35 = vsel %vm1645_vm0, %v1439_v44, 0  ;;  %5104 = vmatmul.msk.bf16.vlgmr.msra.gmra.mxu3 %vm1641_vm1, %v6896_v49  ;;  %vm2810_vm2 = vcmp.gt.f32.partialorder %v6848_v20, 0.0  ;;  %v4495_v16 = vld [vmem:[%s6022_s17 + $0xd0] sm:$0xf]  ;;  %v6983_v9 = vpop.f32.mrf.mxu0 }
  0xfe   : > { %v5598_v48 = vpop.eup %5597  ;;  %v3022_v45 = vmul.f32 1.442695, %v2878_v6  ;;  %2598 = vmatpush.bf16.msrb.mxu2 %v1809_v35  ;;  %v1812_v26 = vsel %vm1645_vm0, %v1440_v50, 0  ;;  %2572 = vmatpush.bf16.msrb.mxu0 %v4752_v41  ;;  %v5016_v29 = vor.u32 %v5490_v11, %v5015_v42  ;;  %v3388_v13 = vsel %vm2748_vm14, %v6804_v14, %v5131_v22  ;;  %v4497_v14 = vld [vmem:[%s6022_s17 + $0x1d0] sm:$0xf0] }
  0xff   : > { %v5600_v56 = vpop.eup %5599  ;;  %vm2811_vm3 = vcmp.gt.f32.partialorder %v6854_v12, 0.0  ;;  %v3024_v19 = vmul.f32 1.442695, %v2879_v43  ;;  %2612 = vmatpush.bf16.msrb.mxu3 %v1812_v26  ;;  %2586 = vmatpush.bf16.msrb.mxu1 %v4756_v25  ;;  %v2880_v60 = vmin.f32 %v6939_v10, 0.0  ;;  %v5020_v4 = vor.u32 %v5458_v18, %v5017_v33  ;;  %v6995_v6 = vld [vmem:[%s6022_s17 + $0x6e8] sm:$0x33] }
 0x100   : > { %v6969_v30 = vpack.c.bf16 %v3519_v31, %v6877_v17  ;;  %v3520_v27 = vadd.f32 %v3387_v62, %v3386_v46  ;;  %5601 = vpow2.f32 %v3146_v36  ;;  %v6972_v7 = vadd.f32 %v2073_v28, %v6423_v5  ;;  %v5394_v17 = vld [vmem:[%s6022_s17 + $0x2dc] sm:$0xf]  ;;  %v6985_v28 = vpop.f32.mrf.mxu1  ;;  %v4503_v44 = vld [vmem:[%s6022_s17 + $0xd8] sm:$0xf]  ;;  %v7017_v35 = vld [vmem:[%s6022_s17 + $0x5dc] sm:$0xf0] }
 0x101   : > { %v5132_v55 = vadd.f32 -1.0, %v5596_v51  ;;  %v5193_v15 = vadd.f32 -1.0, %v5598_v48  ;;  %5603 = vpow2.f32 %v3148_v54  ;;  %v6979_v63 = vadd.f32 %v6884_v52, %v6376_v21  ;;  %v4761_v52 = vld [vmem:[%s6022_s17 + $0x3d8] sm:$0xf0]  ;;  %v5362_v25 = vld [vmem:[%s6022_s17 + $0x1d4] sm:$0xf0] }
 0x102   : > { %v6987_v61 = vadd.f32 %v3520_v27, %v3388_v13  ;;  %v5194_v2 = vadd.f32 -1.0, %v5600_v56  ;;  %5605 = vpow2.f32 %v3022_v45  ;;  %2599 = vmatpush.bf16.msrb.mxu2 %v5016_v29  ;;  %v6991_v22 = vadd.f32 %v6926_v53, %v6423_v5  ;;  %v6997_v23 = vpop.f32.mrf.mxu2  ;;  %v5330_v36 = vld [vmem:[%s6022_s17 + $0xdc] sm:$0xf]  ;;  %v7014_v54 = vld [vmem:[%s6022_s17 + $0x4e0] sm:$0xf] }
 0x103   : > { %5607 = vpow2.f32 %v3024_v19  ;;  %v3026_v41 = vmul.f32 1.442695, %v2880_v60  ;;  %2613 = vmatpush.bf16.msrb.mxu3 %v5020_v4  ;;  %v4496_v42 = vor.u32 %v5361_v37, %v4495_v16  ;;  %v4500_v43 = vor.u32 %v5329_v57, %v4497_v14  ;;  %v4505_v50 = vld [vmem:[%s6022_s17 + $0x1d8] sm:$0xf0]  ;;  %v5025_v29 = vld [vmem:[%s6022_s17 + $0x5e0] sm:$0xf0]  ;;  %v7029_v60 = vpop.f32.mrf.mxu3 }
 0x104   : > { %v2942_v11 = vmin.f32 %v6972_v7, 0.0  ;;  %v1185_v18 = vunpack.c.l.b16 %v500_v34  ;;  %v1186_v53 = vunpack.c.h.b16 %v500_v34  ;;  %v4760_v31 = vor.u32 %v5426_v0, %v4759_v8 }
 0x105   : > { %v7007_v33 = vsel %vm2749_vm15, %v6839_v39, %v5132_v55  ;;  %v3450_v51 = vsel %vm2810_vm2, %v6848_v20, %v5193_v15  ;;  %v2881_v46 = vmin.f32 %v6979_v63, 0.0  ;;  %2573 = vmatpush.bf16.msrb.mxu0 %v4496_v42  ;;  %2587 = vmatpush.bf16.msrb.mxu1 %v4500_v43  ;;  %v4764_v62 = vor.u32 %v5394_v17, %v4761_v52  ;;  %v5459_v20 = vld [vmem:[%s6022_s17 + $0x4e4] sm:$0xf]  ;;  %v4767_v52 = vld [vmem:[%s6022_s17 + $0x2e0] sm:$0xf] }
 0x106   : > { %v5602_v48 = vpop.eup %5601  ;;  %vm2812_vm4 = vcmp.gt.f32.partialorder %v6890_v3, 0.0  ;;  %vm2750_vm5 = vcmp.gt.f32.partialorder %v6916_v38, 0.0  ;;  %v2943_v39 = vmin.f32 %v6991_v22, 0.0  ;;  %v1441_v45 = vpack.c.b16 %v1185_v18, %v1185_v18  ;;  %2600 = vmatpush.bf16.msrb.mxu2 %v4760_v31  ;;  %v7056_v18 = vpop.f32.mrf.mxu0 }
 0x107   : > { %v1442_v26 = vpack.c.b16 %v1186_v53, %v1186_v53  ;;  %v7026_v16 = vadd.f32 %v6931_v40, %v6423_v5  ;;  %v5604_v37 = vpop.eup %5603  ;;  %5609 = vpow2.f32 %v3026_v41  ;;  %2614 = vmatpush.bf16.msrb.mxu3 %v4764_v62  ;;  %v4504_v56 = vor.u32 %v5362_v25, %v4503_v44  ;;  %v5427_v41 = vld [vmem:[%s6022_s17 + $0x3dc] sm:$0xf0]  ;;  %v5395_v25 = vld [vmem:[%s6022_s17 + $0x2e4] sm:$0xf]  ;;  %v5492_v62 = vld [vmem:[%s6022_s17 + $0x5e4] sm:$0xf0] }
 0x108   : > { %v4508_v13 = vor.u32 %v5330_v36, %v4505_v50  ;;  %v1187_v19 = vunpack.c.l.b16 %v6995_v6  ;;  %v5606_v4 = vpop.eup %5605  ;;  %v3451_v57 = vsel %vm2811_vm3, %v6854_v12, %v5194_v2  ;;  %v3150_v27 = vmul.f32 1.442695, %v2942_v11  ;;  %5105 = vmatmul.msk.bf16.vlgmr.msrb.gmra.mxu0 %vm1641_vm1, %v6896_v49  ;;  %5106 = vmatmul.msk.bf16.vlgmr.msrb.gmra.mxu1 %vm1641_vm1, %v6896_v49  ;;  %v4769_v11 = vld [vmem:[%s6022_s17 + $0x3e0] sm:$0xf0] }
 0x109   : > { %v1815_v14 = vsel %vm1645_vm0, %v1441_v45, 0  ;;  %v1818_v40 = vsel %vm1645_vm0, %v1442_v26, 0  ;;  %v5608_v34 = vpop.eup %5607  ;;  %v5024_v8 = vor.u32 %v7017_v35, %v7014_v54  ;;  %v5028_v12 = vor.u32 %v5459_v20, %v5025_v29  ;;  %v5460_v54 = vld [vmem:[%s6022_s17 + $0x4ec] sm:$0xf]  ;;  %v5363_v20 = vld [vmem:[%s6022_s17 + $0x1dc] sm:$0xf0] }
 0x10a   : > { %2626 = vmatpush.bf16.msra.mxu0 %v1815_v14  ;;  %2640 = vmatpush.bf16.msra.mxu1 %v1818_v40  ;;  %v2944_v55 = vmin.f32 %v7026_v16, 0.0  ;;  %v7045_v15 = vadd.f32 %v6956_v24, %v6423_v5  ;;  %vm2751_vm6 = vcmp.gt.f32.partialorder %v6922_v47, 0.0  ;;  %v3152_v0 = vmul.f32 1.442695, %v2943_v39  ;;  %v5033_v35 = vld [vmem:[%s6022_s17 + $0x5e8] sm:$0xf0] }
 0x10b   : > { %2601 = vmatpush.bf16.msrb.mxu2 %v4504_v56  ;;  %v1443_v17 = vpack.c.b16 %v1187_v19, %v1187_v19  ;;  %v1188_v2 = vunpack.c.h.b16 %v6995_v6  ;;  %v7051_v42 = vadd.f32 %v3451_v57, %v3450_v51  ;;  %v5195_v43 = vadd.f32 -1.0, %v5602_v48  ;;  %2615 = vmatpush.bf16.msrb.mxu3 %v4508_v13  ;;  %v7058_v6 = vpop.f32.mrf.mxu1  ;;  %v5031_v51 = vld [vmem:[%s6022_s17 + $0x4e8] sm:$0xf]  ;;  %v4511_v48 = vld [vmem:[%s6022_s17 + $0xe0] sm:$0xf] }
 0x10c   : > { %vm2813_vm7 = vcmp.gt.f32.partialorder %v6908_v59, 0.0  ;;  %v5133_v24 = vadd.f32 -1.0, %v5606_v4  ;;  %v3028_v44 = vmul.f32 1.442695, %v2881_v46  ;;  %v5134_v53 = vadd.f32 -1.0, %v5608_v34  ;;  %v7066_v46 = vpop.f32.mrf.mxu2 }
 0x10d   : > { %v3154_v31 = vmul.f32 1.442695, %v2944_v55  ;;  %v1821_v36 = vsel %vm1645_vm0, %v1443_v17, 0  ;;  %v1444_v50 = vpack.c.b16 %v1188_v2, %v1188_v2  ;;  %v5610_v39 = vpop.eup %5609  ;;  %v5196_v45 = vadd.f32 -1.0, %v5604_v37  ;;  %v5331_v13 = vld [vmem:[%s6022_s17 + $0xe4] sm:$0xf]  ;;  %v7100_v2 = vpop.f32.mrf.mxu3 }
 0x10e   : > { %vm2752_vm8 = vcmp.gt.f32.partialorder %v6939_v10, 0.0  ;;  %5611 = vpow2.f32 %v3150_v27  ;;  %2627 = vmatpush.bf16.msra.mxu0 %v5024_v8  ;;  %2641 = vmatpush.bf16.msra.mxu1 %v5028_v12  ;;  %v2945_v26 = vmin.f32 %v7045_v15, 0.0  ;;  %v7074_v56 = vadd.f32 %v6983_v9, %v6376_v21  ;;  %v4513_v19 = vld [vmem:[%s6022_s17 + $0x1e0] sm:$0xf0]  ;;  %v4775_v27 = vld [vmem:[%s6022_s17 + $0x2e8] sm:$0xf] }
 0x10f   : > { %5613 = vpow2.f32 %v3152_v0  ;;  %2654 = vmatpush.bf16.msra.mxu2 %v1821_v36  ;;  %v1824_v29 = vsel %vm1645_vm0, %v1444_v50, 0  ;;  %v7078_v37 = vadd.f32 %v6985_v28, %v6376_v21  ;;  %5108 = vmatmul.msk.bf16.vlgmr.msrb.gmra.mxu3 %vm1641_vm1, %v6896_v49  ;;  %v3452_v4 = vsel %vm2812_vm4, %v6890_v3, %v5195_v43  ;;  %v502_v28 = vld [vmem:[%s6022_s17 + $0x6f0] sm:$0x33]  ;;  %v5428_v14 = vld [vmem:[%s6022_s17 + $0x3e4] sm:$0xf0] }
 0x110   : > { %v3390_v9 = vsel %vm2750_vm5, %v6916_v38, %v5133_v24  ;;  %5615 = vpow2.f32 %v3028_v44  ;;  %2668 = vmatpush.bf16.msra.mxu3 %v1824_v29  ;;  %v4768_v57 = vor.u32 %v5427_v41, %v4767_v52  ;;  %5107 = vmatmul.msk.bf16.vlgmr.msrb.gmra.mxu2 %vm1641_vm1, %v6896_v49  ;;  %v3391_v40 = vsel %vm2751_vm6, %v6922_v47, %v5134_v53  ;;  %v5396_v8 = vld [vmem:[%s6022_s17 + $0x2ec] sm:$0xf] }
 0x111   : > { %v5135_v34 = vadd.f32 -1.0, %v5610_v39  ;;  %5617 = vpow2.f32 %v3154_v31  ;;  %v4772_v3 = vor.u32 %v5395_v25, %v4769_v11  ;;  %v4777_v12 = vld [vmem:[%s6022_s17 + $0x3e8] sm:$0xf0]  ;;  %v3156_v55 = vmul.f32 1.442695, %v2945_v26 }
 0x112   : > { %2628 = vmatpush.bf16.msra.mxu0 %v4768_v57  ;;  %v5032_v38 = vor.u32 %v5492_v62, %v5031_v51  ;;  %v5036_v0 = vor.u32 %v5460_v54, %v5033_v35  ;;  %v4512_v17 = vor.u32 %v5363_v20, %v4511_v48  ;;  %v2882_v52 = vmin.f32 %v7074_v56, 0.0  ;;  %v5039_v54 = vld [vmem:[%s6022_s17 + $0x4f0] sm:$0xf]  ;;  %v5461_v48 = vld [vmem:[%s6022_s17 + $0x4f4] sm:$0xf] }
 0x113   : > { %v2883_v41 = vmin.f32 %v7078_v37, 0.0  ;;  %2642 = vmatpush.bf16.msra.mxu1 %v4772_v3  ;;  %v4516_v43 = vor.u32 %v5331_v13, %v4513_v19  ;;  %v7106_v47 = vadd.f32 %v6997_v23, %v6376_v21  ;;  %v1189_v44 = vunpack.c.l.b16 %v502_v28  ;;  %v5493_v35 = vld [vmem:[%s6022_s17 + $0x5ec] sm:$0xf0]  ;;  %v5041_v39 = vld [vmem:[%s6022_s17 + $0x5f0] sm:$0xf0] }
 0x114   : > { %v5612_v24 = vpop.eup %5611  ;;  %2655 = vmatpush.bf16.msra.mxu2 %v5032_v38  ;;  %2669 = vmatpush.bf16.msra.mxu3 %v5036_v0  ;;  %v1190_v25 = vunpack.c.h.b16 %v502_v28  ;;  %v4776_v11 = vor.u32 %v5428_v14, %v4775_v27  ;;  %v4780_v53 = vor.u32 %v5396_v8, %v4777_v12  ;;  %v7109_v36 = vadd.f32 %v7051_v42, %v3452_v4  ;;  %v4519_v19 = vld [vmem:[%s6022_s17 + $0xe8] sm:$0xf]  ;;  %v5332_v8 = vld [vmem:[%s6022_s17 + $0xec] sm:$0xf] }
 0x115   : > { %v5614_v31 = vpop.eup %5613  ;;  %v7114_v23 = vsel %vm2813_vm7, %v6908_v59, %v5196_v45  ;;  %vm2753_vm9 = vcmp.gt.f32.partialorder %v6979_v63, 0.0  ;;  %vm2814_vm10 = vcmp.gt.f32.partialorder %v6972_v7, 0.0  ;;  %v3526_v51 = vadd.f32 %v3391_v40, %v3390_v9  ;;  %v7124_v59 = vpop.f32.mrf.mxu0  ;;  %v5364_v4 = vld [vmem:[%s6022_s17 + $0x1e4] sm:$0xf0]  ;;  %v503_v40 = vld [vmem:[%s6022_s17 + $0x6f8] sm:$0x33] }
 0x116   : > { %v5616_v50 = vpop.eup %5615  ;;  %vm2815_vm11 = vcmp.gt.f32.partialorder %v6991_v22, 0.0  ;;  %2629 = vmatpush.bf16.msra.mxu0 %v4512_v17  ;;  %v2884_v62 = vmin.f32 %v7106_v47, 0.0  ;;  %v1445_v42 = vpack.c.b16 %v1189_v44, %v1189_v44  ;;  %v7126_v45 = vpop.f32.mrf.mxu1  ;;  %v3392_v20 = vsel %vm2752_vm8, %v6939_v10, %v5135_v34  ;;  %v4521_v17 = vld [vmem:[%s6022_s17 + $0x1e8] sm:$0xf0] }
 0x117   : > { %v5618_v26 = vpop.eup %5617  ;;  %5619 = vpow2.f32 %v3156_v55  ;;  %v3030_v29 = vmul.f32 1.442695, %v2882_v52  ;;  %2643 = vmatpush.bf16.msra.mxu1 %v4516_v43  ;;  %v1446_v13 = vpack.c.b16 %v1190_v25, %v1190_v25  ;;  %v7133_v9 = vpop.f32.mrf.mxu2  ;;  %v5197_v57 = vadd.f32 -1.0, %v5612_v24 }
 0x118   : > { %v5198_v28 = vadd.f32 -1.0, %v5614_v31  ;;  %v3032_v27 = vmul.f32 1.442695, %v2883_v41  ;;  %v1827_v14 = vsel %vm1645_vm0, %v1445_v42, 0  ;;  %2656 = vmatpush.bf16.msra.mxu2 %v4776_v11  ;;  %2670 = vmatpush.bf16.msra.mxu3 %v4780_v53  ;;  %v5136_v3 = vadd.f32 -1.0, %v5616_v50  ;;  %v7163_v44 = vpop.f32.mrf.mxu3 }
 0x119   : > { %vm2816_vm12 = vcmp.gt.f32.partialorder %v7026_v16, 0.0  ;;  %v7140_v10 = vadd.f32 %v7029_v60, %v6376_v21  ;;  %v1830_v34 = vsel %vm1645_vm0, %v1446_v13, 0  ;;  %v3528_v12 = vadd.f32 %v3526_v51, %v3392_v20  ;;  %5109 = vmatmul.msk.bf16.vlgmr.msra.gmra.mxu0 %vm1641_vm1, %v6896_v49  ;;  %v4783_v51 = vld [vmem:[%s6022_s17 + $0x2f0] sm:$0xf]  ;;  %v5047_v13 = vld [vmem:[%s6022_s17 + $0x4f8] sm:$0xf] }
 0x11a   : > { %2682 = vmatpush.bf16.msrb.mxu0 %v1827_v14  ;;  %v5199_v55 = vadd.f32 -1.0, %v5618_v26  ;;  %v3034_v38 = vmul.f32 1.442695, %v2884_v62  ;;  %v7146_v0 = vadd.f32 %v7056_v18, %v6423_v5  ;;  %5621 = vpow2.f32 %v3030_v29  ;;  %5110 = vmatmul.msk.bf16.vlgmr.msra.gmra.mxu1 %vm1641_vm1, %v6896_v49 }
 0x11b   : > { %2696 = vmatpush.bf16.msrb.mxu1 %v1830_v34  ;;  %v5040_v52 = vor.u32 %v5493_v35, %v5039_v54  ;;  %v5044_v60 = vor.u32 %v5461_v48, %v5041_v39  ;;  %v4520_v41 = vor.u32 %v5364_v4, %v4519_v19  ;;  %v3454_v43 = vsel %vm2814_vm10, %v6972_v7, %v5197_v57  ;;  %v5429_v48 = vld [vmem:[%s6022_s17 + $0x3ec] sm:$0xf0]  ;;  %v5397_v39 = vld [vmem:[%s6022_s17 + $0x2f4] sm:$0xf]  ;;  %v5494_v19 = vld [vmem:[%s6022_s17 + $0x5f4] sm:$0xf0] }
 0x11c   : > { %v3455_v18 = vsel %vm2815_vm11, %v6991_v22, %v5198_v28  ;;  %5623 = vpow2.f32 %v3032_v27  ;;  %v7161_v24 = vadd.f32 %v7058_v6, %v6423_v5  ;;  %v2885_v11 = vmin.f32 %v7140_v10, 0.0 }
 0x11d   : > { %v5620_v25 = vpop.eup %5619  ;;  %2657 = vmatpush.bf16.msra.mxu2 %v4520_v41  ;;  %v4524_v7 = vor.u32 %v5332_v8, %v4521_v17  ;;  %v1191_v53 = vunpack.c.l.b16 %v503_v40  ;;  %v1192_v31 = vunpack.c.h.b16 %v503_v40  ;;  %v3393_v22 = vsel %vm2753_vm9, %v6979_v63, %v5136_v3  ;;  %v4785_v63 = vld [vmem:[%s6022_s17 + $0x3f0] sm:$0xf0]  ;;  %v7188_v4 = vpop.f32.mrf.mxu0  ;;  %v5049_v8 = vld [vmem:[%s6022_s17 + $0x5f8] sm:$0xf0]  ;;  %v4527_v17 = vld [vmem:[%s6022_s17 + $0xf0] sm:$0xf] }
 0x11e   : > { %2683 = vmatpush.bf16.msrb.mxu0 %v5040_v52  ;;  %v3456_v6 = vsel %vm2816_vm12, %v7026_v16, %v5199_v55  ;;  %5625 = vpow2.f32 %v3034_v38  ;;  %v2946_v50 = vmin.f32 %v7146_v0, 0.0  ;;  %v3530_v62 = vadd.f32 %v3528_v12, %v3393_v22  ;;  %v7190_v57 = vpop.f32.mrf.mxu1  ;;  %v5365_v52 = vld [vmem:[%s6022_s17 + $0x1ec] sm:$0xf0] }
 0x11f   : > { %2697 = vmatpush.bf16.msrb.mxu1 %v5044_v60  ;;  %v3527_v42 = vadd.f32 %v3455_v18, %v3454_v43  ;;  %2671 = vmatpush.bf16.msra.mxu3 %v4524_v7  ;;  %v1447_v54 = vpack.c.b16 %v1191_v53, %v1191_v53  ;;  %v1448_v35 = vpack.c.b16 %v1192_v31, %v1192_v31  ;;  %v5200_v20 = vadd.f32 -1.0, %v5620_v25  ;;  %v7195_v14 = vpop.f32.mrf.mxu2 }
 0x120   : > { %v3524_v26 = vadd.f32 %v6987_v61, %v7007_v33  ;;  %v7181_v16 = vadd.f32 %v7109_v36, %v7114_v23  ;;  %v2947_v29 = vmin.f32 %v7161_v24, 0.0  ;;  %5111 = vmatmul.msk.bf16.vlgmr.msra.gmra.mxu2 %vm1641_vm1, %v6896_v49  ;;  %v5622_v28 = vpop.eup %5621  ;;  %v3036_v61 = vmul.f32 1.442695, %v2885_v11  ;;  %v5462_v23 = vld [vmem:[%s6022_s17 + $0x4fc] sm:$0xf] }
 0x121   : > { %v3529_v27 = vadd.f32 %v3527_v42, %v3456_v6  ;;  %v1833_v33 = vsel %vm1645_vm0, %v1447_v54, 0  ;;  %v1836_v36 = vsel %vm1645_vm0, %v1448_v35, 0  ;;  %vm2817_vm13 = vcmp.gt.f32.partialorder %v7045_v15, 0.0  ;;  %v4529_v11 = vld [vmem:[%s6022_s17 + $0x1f0] sm:$0xf0] }
 0x122   : > { %v5624_v40 = vpop.eup %5623  ;;  %vm2754_vm14 = vcmp.gt.f32.partialorder %v7074_v56, 0.0  ;;  %v3158_v3 = vmul.f32 1.442695, %v2946_v50  ;;  %2710 = vmatpush.bf16.msrb.mxu2 %v1833_v33  ;;  %v4784_v34 = vor.u32 %v5429_v48, %v4783_v51  ;;  %v7200_v12 = vpack.c.bf16 %v3530_v62, %v3524_v26  ;;  %5112 = vmatmul.msk.bf16.vlgmr.msra.gmra.mxu3 %vm1641_vm1, %v6896_v49  ;;  %v4791_v6 = vld [vmem:[%s6022_s17 + $0x2f8] sm:$0xf]  ;;  %v7230_v51 = vpop.f32.mrf.mxu3 }
 0x123   : > { %2724 = vmatpush.bf16.msrb.mxu3 %v1836_v36  ;;  %vm2755_vm0 = vcmp.gt.f32.partialorder %v7078_v37, 0.0  ;;  %v7205_v55 = vadd.f32 %v7066_v46, %v6423_v5  ;;  %v4788_v38 = vor.u32 %v5397_v39, %v4785_v63  ;;  %v3457_v41 = vsel %vm2817_vm13, %v7045_v15, %v5200_v20  ;;  %v5333_v46 = vld [vmem:[%s6022_s17 + $0xf4] sm:$0xf]  ;;  %v5430_v50 = vld [vmem:[%s6022_s17 + $0x3f4] sm:$0xf0] }
 0x124   : > { %v5626_v60 = vpop.eup %5625  ;;  %v3160_v43 = vmul.f32 1.442695, %v2947_v29  ;;  %v7214_v18 = vadd.f32 %v7100_v2, %v6423_v5  ;;  %2684 = vmatpush.bf16.msrb.mxu0 %v4784_v34  ;;  %v5048_v25 = vor.u32 %v5494_v19, %v5047_v13  ;;  %v7218_v7 = vadd.f32 %v3529_v27, %v3457_v41  ;;  %v5398_v48 = vld [vmem:[%s6022_s17 + $0x2fc] sm:$0xf] }
 0x125   : > { %v5137_v53 = vadd.f32 -1.0, %v5622_v28  ;;  %5627 = vpow2.f32 %v3036_v61  ;;  %2698 = vmatpush.bf16.msrb.mxu1 %v4788_v38  ;;  %v7222_v15 = vadd.f32 %v7124_v59, %v6376_v21  ;;  %v5138_v31 = vadd.f32 -1.0, %v5624_v40  ;;  %v4793_v59 = vld [vmem:[%s6022_s17 + $0x3f8] sm:$0xf0]  ;;  %v7247_v33 = vpop.f32.mrf.mxu0 }
 0x126   : > { %5629 = vpow2.f32 %v3158_v3  ;;  %v7226_v2 = vadd.f32 %v7126_v45, %v6376_v21  ;;  %2711 = vmatpush.bf16.msrb.mxu2 %v5048_v25  ;;  %v5052_v22 = vor.u32 %v5462_v23, %v5049_v8  ;;  %v5139_v62 = vadd.f32 -1.0, %v5626_v60  ;;  %v7249_v36 = vpop.f32.mrf.mxu1 }
 0x127   : > { %v2948_v42 = vmin.f32 %v7205_v55, 0.0  ;;  %v4528_v54 = vor.u32 %v5365_v52, %v4527_v17  ;;  %v4532_v35 = vor.u32 %v5333_v46, %v4529_v11  ;;  %5631 = vpow2.f32 %v3160_v43  ;;  %v7260_v3 = vpop.f32.mrf.mxu2 }
 0x128   : > { %v2949_v39 = vmin.f32 %v7214_v18, 0.0  ;;  %2725 = vmatpush.bf16.msrb.mxu3 %v5052_v22  ;;  %v3634_v45 = vunpack.c.l.b16 %v6903_v58  ;;  %v3650_v63 = vunpack.c.l.b16 %v6969_v30  ;;  %v2886_v26 = vmin.f32 %v7222_v15, 0.0 }
 0x129   : > { %2685 = vmatpush.bf16.msrb.mxu0 %v4528_v54  ;;  %2699 = vmatpush.bf16.msrb.mxu1 %v4532_v35  ;;  %v3635_v20 = vunpack.c.h.b16 %v6903_v58  ;;  %v3651_v29 = vunpack.c.h.b16 %v6969_v30  ;;  %v4792_v13 = vor.u32 %v5430_v50, %v4791_v6  ;;  %v3394_v19 = vsel %vm2754_vm14, %v7074_v56, %v5137_v53  ;;  %v4535_v53 = vld [vmem:[%s6022_s17 + $0xf8] sm:$0xf] }
 0x12a   : > { %v2887_v28 = vmin.f32 %v7226_v2, 0.0  ;;  %v7245_v27 = vpack.c.b16 %v3650_v63, %v3634_v45  ;;  %v4796_v61 = vor.u32 %v5398_v48, %v4793_v59  ;;  %v3395_v58 = vsel %vm2755_vm0, %v7078_v37, %v5138_v31  ;;  %v5366_v6 = vld [vmem:[%s6022_s17 + $0x1f4] sm:$0xf0] }
 0x12b   : > { %v5628_v23 = vpop.eup %5627  ;;  %v3162_v30 = vmul.f32 1.442695, %v2948_v42  ;;  %v7254_v40 = vpack.c.b16 %v3651_v29, %v3635_v20  ;;  %2712 = vmatpush.bf16.msrb.mxu2 %v4792_v13  ;;  %v7258_v56 = vadd.f32 %v7133_v9, %v6376_v21  ;;  %vm2756_vm15 = vcmp.gt.f32.partialorder %v7106_v47, 0.0  ;;  %v4537_v42 = vld [vmem:[%s6022_s17 + $0x1f8] sm:$0xf0] }
 0x12c   : > { %v5630_v34 = vpop.eup %5629  ;;  %v3164_v8 = vmul.f32 1.442695, %v2949_v39  ;;  %2726 = vmatpush.bf16.msrb.mxu3 %v4796_v61  ;;  %v7266_v37 = vadd.f32 %v7163_v44, %v6376_v21  ;;  %v3396_v38 = vsel %vm2756_vm15, %v7106_v47, %v5139_v62  ;;  %v3038_v17 = vmul.f32 1.442695, %v2886_v26  ;;  %5113 = vmatmul.msk.bf16.vlgmr.msrb.gmra.mxu0 %vm1641_vm1, %v6896_v49  ;;  %v5334_v62 = vld [vmem:[%s6022_s17 + $0xfc] sm:$0xf] }
 0x12d   : > { %3734 = vmatpush.bf16.msra.mxu0 %v7245_v27  ;;  %3748 = vmatpush.bf16.msra.mxu1 %v7254_v40  ;;  %v2888_v9 = vmin.f32 %v7258_v56, 0.0  ;;  %v7273_v52 = vadd.f32 %v7188_v4, %v6423_v5  ;;  %v5632_v60 = vpop.eup %5631  ;;  %v3532_v41 = vadd.f32 %v3395_v58, %v3394_v19  ;;  %v3040_v43 = vmul.f32 1.442695, %v2887_v28  ;;  %v7286_v4 = vpop.f32.mrf.mxu3  ;;  %s4213_s17 = sshll.u32 %s271_s16, 4  ;;  %s4214_s17 = int_to_ptr.vmem [resolvable:$true] %s4213_s17 }
 0x12e   : > { %v5928_v44 = vmov 0.0   ;;  %v7282_v25 = vadd.f32 %v7190_v57, %v6423_v5  ;;  %5114 = vmatmul.msk.bf16.vlgmr.msrb.gmra.mxu1 %vm1641_vm1, %v6896_v49  ;;  %v3609_v46 = vpack.c.bf16 %v7218_v7, %v7181_v16  ;;  %vm2757_vm2 = vcmp.gt.f32.partialorder %v7140_v10, 0.0  ;;  %v7303_v48 = vpop.f32.mrf.mxu0  ;;  %v7305_v59 = vpop.f32.mrf.mxu1 }
 0x12f   : > { %v7278_v47 = vpack.c.bf16 %v6606_v1, %v5928_v44  ;;  %5633 = vpow2.f32 %v3162_v30  ;;  %v2889_v1 = vmin.f32 %v7266_v37, 0.0  ;;  %v3607_v11 = vpack.c.bf16 %v6674_v32, %v5928_v44  ;;  %v7307_v20 = vpop.f32.mrf.mxu2 }
 0x130   : > { %v3534_v57 = vadd.f32 %v3532_v41, %v3396_v38  ;;  %v5140_v31 = vadd.f32 -1.0, %v5628_v23  ;;  %5635 = vpow2.f32 %v3164_v8  ;;  %v3042_v22 = vmul.f32 1.442695, %v2888_v9 }
 0x131   : > { %vm2818_vm3 = vcmp.gt.f32.partialorder %v7146_v0, 0.0  ;;  %5637 = vpow2.f32 %v3038_v17  ;;  %v3633_v16 = vunpack.c.h.b16 %v7278_v47  ;;  %v3649_v7 = vunpack.c.h.b16 %v3607_v11  ;;  %3749 = vmatpush.bf16.msra.mxu1 %v7245_v27 }
 0x132   : > { %v2950_v50 = vmin.f32 %v7273_v52, 0.0  ;;  %v5201_v54 = vadd.f32 -1.0, %v5630_v34  ;;  %vm2819_vm4 = vcmp.gt.f32.partialorder %v7161_v24, 0.0  ;;  %v5202_v32 = vadd.f32 -1.0, %v5632_v60 }
 0x133   : > { %5639 = vpow2.f32 %v3040_v43  ;;  %v2951_v35 = vmin.f32 %v7282_v25, 0.0  ;;  %v3044_v39 = vmul.f32 1.442695, %v2889_v1  ;;  %v3665_v45 = vpack.c.b16 %v3649_v7, %v3633_v16 }
 0x134   : > { %v3166_v63 = vmul.f32 1.442695, %v2950_v50  ;;  %v4536_v26 = vor.u32 %v5366_v6, %v4535_v53  ;;  %5641 = vpow2.f32 %v3042_v22  ;;  %v4540_v13 = vor.u32 %v5334_v62, %v4537_v42 }
 0x135   : > { %v3168_v29 = vmul.f32 1.442695, %v2951_v35  ;;  %v3636_v19 = vunpack.c.l.b16 %v7200_v12  ;;  %v5634_v28 = vpop.eup %5633  ;;  %3735 = vmatpush.bf16.msra.mxu0 %v3665_v45  ;;  %v3652_v61 = vunpack.c.l.b16 %v3609_v46  ;;  %v3637_v23 = vunpack.c.h.b16 %v7200_v12  ;;  %3750 = vmatpush.bf16.msra.mxu1 %v3665_v45  ;;  %v7316_v17 = vpop.f32.mrf.mxu3 }
 0x136   : > { %5643 = vpow2.f32 %v3166_v63  ;;  %2713 = vmatpush.bf16.msrb.mxu2 %v4536_v26  ;;  %v3653_v58 = vunpack.c.h.b16 %v3609_v46  ;;  %v5636_v30 = vpop.eup %5635  ;;  %2727 = vmatpush.bf16.msrb.mxu3 %v4540_v13  ;;  %v3632_v34 = vunpack.c.l.b16 %v7278_v47  ;;  %v3648_v8 = vunpack.c.l.b16 %v3607_v11  ;;  %v7353_v22 = vpop.f32.mrf.mxu0 }
 0x137   : > { %5645 = vpow2.f32 %v3168_v29  ;;  %v7314_v38 = vadd.f32 %v7195_v14, %v6423_v5  ;;  %v5638_v9 = vpop.eup %5637  ;;  %v7318_v60 = vpack.c.b16 %v3652_v61, %v3636_v19  ;;  %v7324_v12 = vadd.f32 %v7230_v51, %v6423_v5  ;;  %v7355_v6 = vpop.f32.mrf.mxu1 }
 0x138   : > { %v7320_v41 = vpack.c.b16 %v3653_v58, %v3637_v23  ;;  %v7328_v43 = vadd.f32 %v7247_v33, %v6376_v21  ;;  %v3397_v14 = vsel %vm2757_vm2, %v7140_v10, %v5140_v31  ;;  %v5203_v47 = vadd.f32 -1.0, %v5634_v28 }
 0x139   : > { %v5640_v44 = vpop.eup %5639  ;;  %v3664_v46 = vpack.c.b16 %v3648_v8, %v3632_v34  ;;  %v2952_v1 = vmin.f32 %v7314_v38, 0.0  ;;  %5115 = vmatmul.msk.bf16.vlgmr.msrb.gmra.mxu2 %vm1641_vm1, %v6896_v49  ;;  %v7336_v11 = vadd.f32 %v3534_v57, %v3397_v14  ;;  %vm2820_vm5 = vcmp.gt.f32.partialorder %v7205_v55, 0.0  ;;  %5116 = vmatmul.msk.bf16.vlgmr.msrb.gmra.mxu3 %vm1641_vm1, %v6896_v49 }
 0x13a   : > { %vm2758_vm6 = vcmp.gt.f32.partialorder %v7222_v15, 0.0  ;;  %3762 = vmatpush.bf16.msra.mxu2 %v7318_v60  ;;  %3776 = vmatpush.bf16.msra.mxu3 %v7320_v41  ;;  %v2953_v51 = vmin.f32 %v7324_v12, 0.0  ;;  %v5642_v10 = vpop.eup %5641  ;;  %v3458_v33 = vsel %vm2818_vm3, %v7146_v0, %v5201_v54  ;;  %v2890_v57 = vmin.f32 %v7328_v43, 0.0 }
 0x13b   : > { %3736 = vmatpush.bf16.msra.mxu0 %v3664_v46  ;;  %v3170_v53 = vmul.f32 1.442695, %v2952_v1  ;;  %v7349_v31 = vadd.f32 %v7249_v36, %v6376_v21  ;;  %v3459_v0 = vsel %vm2819_vm4, %v7161_v24, %v5202_v32  ;;  %5647 = vpow2.f32 %v3044_v39  ;;  %v7364_v36 = vpop.f32.mrf.mxu2 }
 0x13c   : > { %v5644_v16 = vpop.eup %5643  ;;  %v3172_v7 = vmul.f32 1.442695, %v2953_v51  ;;  %v7362_v50 = vadd.f32 %v7260_v3, %v6376_v21  ;;  %v3460_v49 = vsel %vm2820_vm5, %v7205_v55, %v5203_v47  ;;  %v5141_v42 = vadd.f32 -1.0, %v5638_v9 }
 0x13d   : > { %v5646_v62 = vpop.eup %5645  ;;  %vm2759_vm1 = vcmp.gt.f32.partialorder %v7226_v2, 0.0  ;;  %5649 = vpow2.f32 %v3170_v53  ;;  %vm2821_vm7 = vcmp.gt.f32.partialorder %v7214_v18, 0.0  ;;  %v5142_v24 = vadd.f32 -1.0, %v5640_v44  ;;  %v7374_v55 = vpop.f32.mrf.mxu3 }
 0x13e   : > { %3763 = vmatpush.bf16.msra.mxu2 %v7254_v40  ;;  %3777 = vmatpush.bf16.msra.mxu3 %v7318_v60  ;;  %5651 = vpow2.f32 %v3172_v7  ;;  %v3046_v3 = vmul.f32 1.442695, %v2890_v57  ;;  %v2891_v54 = vmin.f32 %v7349_v31, 0.0  ;;  %v3533_v32 = vadd.f32 %v3459_v0, %v3458_v33  ;;  %v7402_v34 = vpop.f32.mrf.mxu0 }
 0x13f   : > { %v5204_v35 = vadd.f32 -1.0, %v5636_v30  ;;  %v5205_v39 = vadd.f32 -1.0, %v5644_v16  ;;  %v5206_v45 = vadd.f32 -1.0, %v5646_v62  ;;  %v5143_v63 = vadd.f32 -1.0, %v5642_v10 }
 0x140   : > { %v3048_v26 = vmul.f32 1.442695, %v2891_v54  ;;  %v2892_v29 = vmin.f32 %v7362_v50, 0.0  ;;  %v7379_v13 = vadd.f32 %v7286_v4, %v6376_v21  ;;  %v3535_v19 = vadd.f32 %v3533_v32, %v3460_v49 }
 0x141   : > { %vm2760_vm8 = vcmp.gt.f32.partialorder %v7258_v56, 0.0  ;;  %vm2822_vm9 = vcmp.gt.f32.partialorder %v7273_v52, 0.0  ;;  %v7385_v28 = vadd.f32 %v7303_v48, %v6423_v5  ;;  %v5648_v61 = vpop.eup %5647  ;;  %v3398_v23 = vsel %vm2758_vm6, %v7222_v15, %v5141_v42 }
 0x142   : > { %v3399_v58 = vsel %vm2759_vm1, %v7226_v2, %v5142_v24  ;;  %vm2823_vm10 = vcmp.gt.f32.partialorder %v7282_v25, 0.0  ;;  %5653 = vpow2.f32 %v3046_v3  ;;  %3764 = vmatpush.bf16.msra.mxu2 %v7245_v27  ;;  %3778 = vmatpush.bf16.msra.mxu3 %v7254_v40  ;;  %v3462_v48 = vsel %vm2822_vm9, %v7273_v52, %v5205_v39  ;;  %v7404_v2 = vpop.f32.mrf.mxu1 }
 0x143   : > { %v5650_v4 = vpop.eup %5649  ;;  %v3463_v30 = vsel %vm2823_vm10, %v7282_v25, %v5206_v45  ;;  %5655 = vpow2.f32 %v3048_v26  ;;  %v7400_v15 = vadd.f32 %v7305_v59, %v6423_v5  ;;  %v3400_v27 = vsel %vm2760_vm8, %v7258_v56, %v5143_v63  ;;  %v7410_v44 = vpop.f32.mrf.mxu2 }
 0x144   : > { %v5652_v8 = vpop.eup %5651  ;;  %v5207_v40 = vadd.f32 -1.0, %v5650_v4  ;;  %v3050_v9 = vmul.f32 1.442695, %v2892_v29  ;;  %v2893_v52 = vmin.f32 %v7379_v13, 0.0  ;;  %v3538_v25 = vadd.f32 %v3399_v58, %v3398_v23 }
 0x145   : > { %vm2824_vm11 = vcmp.gt.f32.partialorder %v7314_v38, 0.0  ;;  %v2954_v59 = vmin.f32 %v7385_v28, 0.0  ;;  %v7416_v14 = vadd.f32 %v7307_v20, %v6423_v5  ;;  %vm2761_vm12 = vcmp.gt.f32.partialorder %v7266_v37, 0.0  ;;  %v7424_v0 = vpop.f32.mrf.mxu3 }
 0x146   : > { %v5144_v47 = vadd.f32 -1.0, %v5648_v61  ;;  %v3539_v46 = vadd.f32 %v3463_v30, %v3462_v48  ;;  %v3464_v56 = vsel %vm2824_vm11, %v7314_v38, %v5207_v40  ;;  %v3461_v1 = vsel %vm2821_vm7, %v7214_v18, %v5204_v35 }
 0x147   : > { %v3540_v51 = vadd.f32 %v3538_v25, %v3400_v27  ;;  %v5208_v10 = vadd.f32 -1.0, %v5652_v8  ;;  %v2955_v33 = vmin.f32 %v7400_v15, 0.0  ;;  %v3537_v57 = vadd.f32 %v3535_v19, %v3461_v1 }
 0x148   : > { %v5654_v53 = vpop.eup %5653  ;;  %v3541_v16 = vadd.f32 %v3539_v46, %v3464_v56  ;;  %5657 = vpow2.f32 %v3050_v9  ;;  %v3052_v20 = vmul.f32 1.442695, %v2893_v52  ;;  %v3174_v62 = vmul.f32 1.442695, %v2954_v59 }
 0x149   : > { %v5656_v7 = vpop.eup %5655  ;;  %v2956_v49 = vmin.f32 %v7416_v14, 0.0  ;;  %v7429_v38 = vadd.f32 %v7316_v17, %v6423_v5  ;;  %v7433_v18 = vadd.f32 %v7353_v22, %v6376_v21  ;;  %v3401_v42 = vsel %vm2761_vm12, %v7266_v37, %v5144_v47  ;;  %v7449_v37 = vpop.f32.mrf.mxu0 }
 0x14a   : > { %vm2825_vm13 = vcmp.gt.f32.partialorder %v7324_v12, 0.0  ;;  %v7441_v24 = vadd.f32 %v7355_v6, %v6376_v21  ;;  %v7445_v3 = vadd.f32 %v7364_v36, %v6376_v21  ;;  %v3542_v17 = vadd.f32 %v3540_v51, %v3401_v42  ;;  %v7451_v63 = vpop.f32.mrf.mxu1 }
 0x14b   : > { %v3465_v54 = vsel %vm2825_vm13, %v7324_v12, %v5208_v10  ;;  %v3176_v32 = vmul.f32 1.442695, %v2955_v33  ;;  %v2894_v22 = vmin.f32 %v7433_v18, 0.0  ;;  %v5145_v39 = vadd.f32 -1.0, %v5654_v53  ;;  %v7455_v29 = vpop.f32.mrf.mxu2 }
 0x14c   : > { %v3543_v35 = vadd.f32 %v3541_v16, %v3465_v54  ;;  %v5146_v45 = vadd.f32 -1.0, %v5656_v7  ;;  %5659 = vpow2.f32 %v3052_v20  ;;  %v3178_v6 = vmul.f32 1.442695, %v2956_v49 }
 0x14d   : > { %5661 = vpow2.f32 %v3174_v62  ;;  %v2957_v26 = vmin.f32 %v7429_v38, 0.0  ;;  %v2895_v36 = vmin.f32 %v7441_v24, 0.0  ;;  %vm2762_vm14 = vcmp.gt.f32.partialorder %v7328_v43, 0.0  ;;  %v7468_v27 = vpop.f32.mrf.mxu3 }
 0x14e   : > { %v5658_v12 = vpop.eup %5657  ;;  %vm2763_vm0 = vcmp.gt.f32.partialorder %v7349_v31, 0.0  ;;  %v3054_v19 = vmul.f32 1.442695, %v2894_v22  ;;  %v2896_v61 = vmin.f32 %v7445_v3, 0.0  ;;  %v3601_v23 = vpack.c.bf16 %v3542_v17, %v7336_v11 }
 0x14f   : > { %vm2764_vm15 = vcmp.gt.f32.partialorder %v7362_v50, 0.0  ;;  %5663 = vpow2.f32 %v3176_v32  ;;  %v3056_v58 = vmul.f32 1.442695, %v2895_v36  ;;  %v3610_v4 = vpack.c.bf16 %v3543_v35, %v3537_v57 }
 0x150   : > { %v3402_v48 = vsel %vm2762_vm14, %v7328_v43, %v5145_v39  ;;  %v3403_v30 = vsel %vm2763_vm0, %v7349_v31, %v5146_v45  ;;  %v7466_v8 = vadd.f32 %v7374_v55, %v6376_v21  ;;  %v5147_v40 = vadd.f32 -1.0, %v5658_v12 }
 0x151   : > { %vm2765_vm2 = vcmp.gt.f32.partialorder %v7379_v13, 0.0  ;;  %5665 = vpow2.f32 %v3178_v6  ;;  %v3180_v11 = vmul.f32 1.442695, %v2957_v26  ;;  %vm2826_vm3 = vcmp.gt.f32.partialorder %v7385_v28, 0.0  ;;  %v7483_v1 = vpop.f32.mrf.mxu0 }
 0x152   : > { %v5660_v9 = vpop.eup %5659  ;;  %5667 = vpow2.f32 %v3054_v19  ;;  %v3058_v52 = vmul.f32 1.442695, %v2896_v61  ;;  %v7474_v43 = vadd.f32 %v7402_v34, %v6423_v5  ;;  %v3544_v25 = vadd.f32 %v3403_v30, %v3402_v48  ;;  %v7485_v51 = vpop.f32.mrf.mxu1 }
 0x153   : > { %v5662_v31 = vpop.eup %5661  ;;  %vm2827_vm4 = vcmp.gt.f32.partialorder %v7400_v15, 0.0  ;;  %5669 = vpow2.f32 %v3056_v58  ;;  %v7479_v55 = vadd.f32 %v7404_v2, %v6423_v5  ;;  %v2897_v59 = vmin.f32 %v7466_v8, 0.0  ;;  %v7491_v53 = vpop.f32.mrf.mxu2 }
 0x154   : > { %v2958_v47 = vmin.f32 %v7474_v43, 0.0  ;;  %v3638_v46 = vunpack.c.l.b16 %v3601_v23  ;;  %v3654_v56 = vunpack.c.l.b16 %v3610_v4  ;;  %v3404_v10 = vsel %vm2764_vm15, %v7362_v50, %v5147_v40 }
 0x155   : > { %v5664_v34 = vpop.eup %5663  ;;  %v5148_v33 = vadd.f32 -1.0, %v5660_v9  ;;  %5671 = vpow2.f32 %v3180_v11  ;;  %v2959_v2 = vmin.f32 %v7479_v55, 0.0  ;;  %v5209_v57 = vadd.f32 -1.0, %v5662_v31  ;;  %v7505_v35 = vpop.f32.mrf.mxu3 }
 0x156   : > { %vm2828_vm5 = vcmp.gt.f32.partialorder %v7416_v14, 0.0  ;;  %5673 = vpow2.f32 %v3058_v52  ;;  %v3182_v16 = vmul.f32 1.442695, %v2958_v47  ;;  %v7494_v20 = vpack.c.b16 %v3654_v56, %v3638_v46 }
 0x157   : > { %v5666_v7 = vpop.eup %5665  ;;  %v3184_v62 = vmul.f32 1.442695, %v2959_v2  ;;  %v3639_v49 = vunpack.c.h.b16 %v3601_v23  ;;  %v3655_v42 = vunpack.c.h.b16 %v3610_v4  ;;  %v7498_v50 = vadd.f32 %v7410_v44, %v6423_v5 }
 0x158   : > { %v5668_v17 = vpop.eup %5667  ;;  %v5210_v54 = vadd.f32 -1.0, %v5664_v34  ;;  %v3060_v32 = vmul.f32 1.442695, %v2897_v59  ;;  %5675 = vpow2.f32 %v3182_v16  ;;  %3790 = vmatpush.bf16.msrb.mxu0 %v7494_v20  ;;  %v7503_v22 = vadd.f32 %v7424_v0, %v6423_v5 }
 0x159   : > { %v5670_v39 = vpop.eup %5669  ;;  %vm2766_vm6 = vcmp.gt.f32.partialorder %v7433_v18, 0.0  ;;  %vm2767_vm1 = vcmp.gt.f32.partialorder %v7441_v24, 0.0  ;;  %5677 = vpow2.f32 %v3184_v62  ;;  %v7509_v44 = vpack.c.b16 %v3655_v42, %v3639_v49  ;;  %v2407_v48 = vpop.f32.mrf.mxu0 }
 0x15a   : > { %v3546_v45 = vadd.f32 %v3544_v25, %v3404_v10  ;;  %v3405_v6 = vsel %vm2765_vm2, %v7379_v13, %v5148_v33  ;;  %v2960_v26 = vmin.f32 %v7498_v50, 0.0  ;;  %v2961_v0 = vmin.f32 %v7503_v22, 0.0 }
 0x15b   : > { %v5672_v36 = vpop.eup %5671  ;;  %v3466_v12 = vsel %vm2826_vm3, %v7385_v28, %v5209_v57  ;;  %v5211_v19 = vadd.f32 -1.0, %v5666_v7  ;;  %3804 = vmatpush.bf16.msrb.mxu1 %v7509_v44  ;;  %v7522_v61 = vadd.f32 %v7449_v37, %v6376_v21  ;;  %v7526_v23 = vadd.f32 %v7451_v63, %v6376_v21  ;;  %v7536_v37 = vpop.f32.mrf.mxu1 }
 0x15c   : > { %v5674_v13 = vpop.eup %5673  ;;  %v3467_v58 = vsel %vm2827_vm4, %v7400_v15, %v5210_v54  ;;  %5679 = vpow2.f32 %v3060_v32  ;;  %3791 = vmatpush.bf16.msrb.mxu0 %v7320_v41  ;;  %v3186_v28 = vmul.f32 1.442695, %v2960_v26  ;;  %v7534_v4 = vadd.f32 %v7455_v29, %v6376_v21  ;;  %v7539_v9 = vpop.f32.mrf.mxu2 }
 0x15d   : > { %v5149_v30 = vadd.f32 -1.0, %v5668_v17  ;;  %v5150_v40 = vadd.f32 -1.0, %v5670_v39  ;;  %v3188_v63 = vmul.f32 1.442695, %v2961_v0  ;;  %v2898_v11 = vmin.f32 %v7522_v61, 0.0  ;;  %v7556_v2 = vpop.f32.mrf.mxu3 }
 0x15e   : > { %v5676_v52 = vpop.eup %5675  ;;  %v7541_v15 = vadd.f32 %v3546_v45, %v3405_v6  ;;  %vm2829_vm7 = vcmp.gt.f32.partialorder %v7429_v38, 0.0  ;;  %vm2768_vm8 = vcmp.gt.f32.partialorder %v7445_v3, 0.0  ;;  %5681 = vpow2.f32 %v3186_v28 }
 0x15f   : > { %v2899_v29 = vmin.f32 %v7526_v23, 0.0  ;;  %v5678_v31 = vpop.eup %5677  ;;  %v3545_v25 = vadd.f32 %v3467_v58, %v3466_v12  ;;  %v3468_v59 = vsel %vm2828_vm5, %v7416_v14, %v5211_v19  ;;  %v5212_v47 = vadd.f32 -1.0, %v5672_v36  ;;  %3805 = vmatpush.bf16.msrb.mxu1 %v7494_v20 }
 0x160   : > { %v3062_v46 = vmul.f32 1.442695, %v2898_v11  ;;  %v5151_v56 = vadd.f32 -1.0, %v5674_v13  ;;  %3792 = vmatpush.bf16.msrb.mxu0 %v7318_v60  ;;  %v2900_v10 = vmin.f32 %v7534_v4, 0.0  ;;  %v7554_v33 = vadd.f32 %v7468_v27, %v6376_v21 }
 0x161   : > { %v3064_v34 = vmul.f32 1.442695, %v2899_v29  ;;  %v3406_v14 = vsel %vm2766_vm6, %v7433_v18, %v5149_v30  ;;  %v3407_v57 = vsel %vm2767_vm1, %v7441_v24, %v5150_v40  ;;  %vm2769_vm9 = vcmp.gt.f32.partialorder %v7466_v8, 0.0  ;;  %v7580_v54 = vpop.f32.mrf.mxu0 }
 0x162   : > { %5683 = vpow2.f32 %v3188_v63  ;;  %v7567_v60 = vadd.f32 %v7483_v1, %v6423_v5  ;;  %v5680_v16 = vpop.eup %5679  ;;  %v5213_v27 = vadd.f32 -1.0, %v5676_v52  ;;  %v5214_v7 = vadd.f32 -1.0, %v5678_v31 }
 0x163   : > { %5685 = vpow2.f32 %v3062_v46  ;;  %v3066_v62 = vmul.f32 1.442695, %v2900_v10  ;;  %v3547_v49 = vadd.f32 %v3545_v25, %v3468_v59  ;;  %vm2830_vm10 = vcmp.gt.f32.partialorder %v7474_v43, 0.0  ;;  %3806 = vmatpush.bf16.msrb.mxu1 %v7320_v41  ;;  %v7582_v32 = vpop.f32.mrf.mxu1 }
 0x164   : > { %5687 = vpow2.f32 %v3064_v34  ;;  %v2901_v18 = vmin.f32 %v7554_v33, 0.0  ;;  %v5682_v24 = vpop.eup %5681  ;;  %v3408_v42 = vsel %vm2768_vm8, %v7445_v3, %v5151_v56  ;;  %v2962_v1 = vmin.f32 %v7567_v60, 0.0  ;;  %v7589_v3 = vpop.f32.mrf.mxu2 }
 0x165   : > { %5689 = vpow2.f32 %v3066_v62  ;;  %v7578_v17 = vadd.f32 %v7485_v51, %v6423_v5  ;;  %v3550_v39 = vadd.f32 %v3407_v57, %v3406_v14  ;;  %vm2831_vm11 = vcmp.gt.f32.partialorder %v7479_v55, 0.0  ;;  %v7610_v63 = vpop.f32.mrf.mxu3 }
 0x166   : > { %v5215_v41 = vadd.f32 -1.0, %v5682_v24  ;;  %v7587_v45 = vadd.f32 %v7491_v53, %v6423_v5  ;;  %v5152_v6 = vadd.f32 -1.0, %v5680_v16  ;;  %v3470_v51 = vsel %vm2830_vm10, %v7474_v43, %v5213_v27 }
 0x167   : > { %v3471_v26 = vsel %vm2831_vm11, %v7479_v55, %v5214_v7  ;;  %v7596_v0 = vadd.f32 %v2407_v48, %v6376_v21  ;;  %v3469_v12 = vsel %vm2829_vm7, %v7429_v38, %v5212_v47  ;;  %v3552_v19 = vadd.f32 %v3550_v39, %v3408_v42 }
 0x168   : > { %v5684_v36 = vpop.eup %5683  ;;  %vm2832_vm12 = vcmp.gt.f32.partialorder %v7498_v50, 0.0  ;;  %v3068_v53 = vmul.f32 1.442695, %v2901_v18  ;;  %v3190_v28 = vmul.f32 1.442695, %v2962_v1  ;;  %v2963_v43 = vmin.f32 %v7578_v17, 0.0 }
 0x169   : > { %v5686_v13 = vpop.eup %5685  ;;  %v3472_v58 = vsel %vm2832_vm12, %v7498_v50, %v5215_v41  ;;  %v7606_v55 = vadd.f32 %v7505_v35, %v6423_v5  ;;  %v3549_v30 = vadd.f32 %v3547_v49, %v3469_v12  ;;  %v3551_v40 = vadd.f32 %v3471_v26, %v3470_v51  ;;  %v2463_v14 = vpop.f32.mrf.mxu0 }
 0x16a   : > { %v5688_v48 = vpop.eup %5687  ;;  %vm2833_vm13 = vcmp.gt.f32.partialorder %v7503_v22, 0.0  ;;  %v2964_v38 = vmin.f32 %v7587_v45, 0.0  ;;  %v3409_v50 = vsel %vm2769_vm9, %v7466_v8, %v5152_v6  ;;  %v5216_v52 = vadd.f32 -1.0, %v5684_v36 }
 0x16b   : > { %v5690_v11 = vpop.eup %5689  ;;  %vm2770_vm14 = vcmp.gt.f32.partialorder %v7522_v61, 0.0  ;;  %v2902_v35 = vmin.f32 %v7596_v0, 0.0  ;;  %v3554_v29 = vadd.f32 %v3552_v19, %v3409_v50  ;;  %v3553_v31 = vadd.f32 %v3551_v40, %v3472_v58  ;;  %v7626_v57 = vpop.f32.mrf.mxu1 }
 0x16c   : > { %v5153_v25 = vadd.f32 -1.0, %v5686_v13  ;;  %5691 = vpow2.f32 %v3068_v53  ;;  %v5154_v59 = vadd.f32 -1.0, %v5688_v48  ;;  %v3192_v47 = vmul.f32 1.442695, %v2963_v43  ;;  %v7633_v7 = vpop.f32.mrf.mxu2 }
 0x16d   : > { %5693 = vpow2.f32 %v3190_v28  ;;  %v2965_v46 = vmin.f32 %v7606_v55, 0.0  ;;  %v5155_v56 = vadd.f32 -1.0, %v5690_v11  ;;  %v3194_v34 = vmul.f32 1.442695, %v2964_v38  ;;  %v7647_v41 = vpop.f32.mrf.mxu3 }
 0x16e   : > { %v7620_v10 = vadd.f32 %v7536_v37, %v6376_v21  ;;  %v7624_v8 = vadd.f32 %v7539_v9, %v6376_v21  ;;  %v3473_v16 = vsel %vm2833_vm13, %v7503_v22, %v5216_v52  ;;  %vm2771_vm0 = vcmp.gt.f32.partialorder %v7526_v23, 0.0 }
 0x16f   : > { %vm2772_vm15 = vcmp.gt.f32.partialorder %v7534_v4, 0.0  ;;  %v3070_v27 = vmul.f32 1.442695, %v2902_v35  ;;  %v3602_v37 = vpack.c.bf16 %v3554_v29, %v7541_v15  ;;  %v3555_v62 = vadd.f32 %v3553_v31, %v3473_v16 }
 0x170   : > { %v3410_v9 = vsel %vm2770_vm14, %v7522_v61, %v5153_v25  ;;  %v2903_v49 = vmin.f32 %v7620_v10, 0.0  ;;  %v3411_v18 = vsel %vm2771_vm0, %v7526_v23, %v5154_v59  ;;  %5695 = vpow2.f32 %v3192_v47 }
 0x171   : > { %v3196_v22 = vmul.f32 1.442695, %v2965_v46  ;;  %v2904_v24 = vmin.f32 %v7624_v8, 0.0  ;;  %v3412_v1 = vsel %vm2772_vm15, %v7534_v4, %v5155_v56  ;;  %5697 = vpow2.f32 %v3194_v34 }
 0x172   : > { %v5692_v42 = vpop.eup %5691  ;;  %v3072_v39 = vmul.f32 1.442695, %v2903_v49  ;;  %v7645_v15 = vadd.f32 %v7580_v54, %v6423_v5  ;;  %5699 = vpow2.f32 %v3070_v27  ;;  %v7651_v23 = vadd.f32 %v7556_v2, %v6376_v21  ;;  %v7663_v2 = vpop.f32.mrf.mxu0 }
 0x173   : > { %v5694_v61 = vpop.eup %5693  ;;  %v3074_v6 = vmul.f32 1.442695, %v2904_v24  ;;  %v7655_v51 = vadd.f32 %v7582_v32, %v6423_v5  ;;  %v3611_v4 = vpack.c.bf16 %v3555_v62, %v3549_v30  ;;  %v3556_v26 = vadd.f32 %v3411_v18, %v3410_v9  ;;  %v7665_v32 = vpop.f32.mrf.mxu1 }
 0x174   : > { %5701 = vpow2.f32 %v3072_v39  ;;  %v2966_v36 = vmin.f32 %v7645_v15, 0.0  ;;  %vm2773_vm2 = vcmp.gt.f32.partialorder %v7554_v33, 0.0  ;;  %vm2834_vm3 = vcmp.gt.f32.partialorder %v7567_v60, 0.0  ;;  %v7672_v38 = vpop.f32.mrf.mxu2 }
 0x175   : > { %5703 = vpow2.f32 %v3196_v22  ;;  %v7660_v54 = vadd.f32 %v3556_v26, %v3412_v1  ;;  %v5156_v12 = vadd.f32 -1.0, %v5692_v42  ;;  %v5217_v19 = vadd.f32 -1.0, %v5694_v61  ;;  %v7688_v46 = vpop.f32.mrf.mxu3 }
 0x176   : > { %vm2835_vm4 = vcmp.gt.f32.partialorder %v7578_v17, 0.0  ;;  %v5696_v53 = vpop.eup %5695  ;;  %vm2836_vm5 = vcmp.gt.f32.partialorder %v7587_v45, 0.0  ;;  %vm2774_vm6 = vcmp.gt.f32.partialorder %v7596_v0, 0.0  ;;  %5705 = vpow2.f32 %v3074_v6 }
 0x177   : > { %v2905_v13 = vmin.f32 %v7651_v23, 0.0  ;;  %v3198_v58 = vmul.f32 1.442695, %v2966_v36  ;;  %v2967_v28 = vmin.f32 %v7655_v51, 0.0  ;;  %v5698_v43 = vpop.eup %5697  ;;  %vm2775_vm1 = vcmp.gt.f32.partialorder %v7620_v10, 0.0 }
 0x178   : > { %v3640_v48 = vunpack.c.l.b16 %v3602_v37  ;;  %v3656_v30 = vunpack.c.l.b16 %v3611_v4  ;;  %v3641_v40 = vunpack.c.h.b16 %v3602_v37  ;;  %v5700_v11 = vpop.eup %5699  ;;  %v3657_v52 = vunpack.c.h.b16 %v3611_v4 }
 0x179   : > { %5707 = vpow2.f32 %v3198_v58  ;;  %v3200_v50 = vmul.f32 1.442695, %v2967_v28  ;;  %v7676_v35 = vadd.f32 %v7589_v3, %v6423_v5  ;;  %v5218_v31 = vadd.f32 -1.0, %v5696_v53 }
 0x17a   : > { %v5702_v29 = vpop.eup %5701  ;;  %vm2837_vm7 = vcmp.gt.f32.partialorder %v7606_v55, 0.0  ;;  %v7679_v25 = vpack.c.b16 %v3656_v30, %v3640_v48  ;;  %v7683_v59 = vadd.f32 %v7610_v63, %v6423_v5  ;;  %v7686_v47 = vadd.f32 %v2463_v14, %v6376_v21  ;;  %v7710_v1 = vpop.f32.mrf.mxu0 }
 0x17b   : > { %v5704_v56 = vpop.eup %5703  ;;  %v7693_v3 = vsel %vm2773_vm2, %v7554_v33, %v5156_v12  ;;  %v3076_v34 = vmul.f32 1.442695, %v2905_v13  ;;  %5709 = vpow2.f32 %v3200_v50  ;;  %v7695_v16 = vpack.c.b16 %v3657_v52, %v3641_v40  ;;  %v7712_v39 = vpop.f32.mrf.mxu1 }
 0x17c   : > { %v5219_v27 = vadd.f32 -1.0, %v5698_v43  ;;  %v5157_v37 = vadd.f32 -1.0, %v5700_v11  ;;  %vm2776_vm8 = vcmp.gt.f32.partialorder %v7624_v8, 0.0  ;;  %3818 = vmatpush.bf16.msrb.mxu2 %v7679_v25  ;;  %v2968_v63 = vmin.f32 %v7676_v35, 0.0  ;;  %v5706_v62 = vpop.eup %5705 }
 0x17d   : > { %v2969_v14 = vmin.f32 %v7683_v59, 0.0  ;;  %v3474_v33 = vsel %vm2834_vm3, %v7567_v60, %v5217_v19  ;;  %v5158_v9 = vadd.f32 -1.0, %v5702_v29  ;;  %vm2838_vm9 = vcmp.gt.f32.partialorder %v7645_v15, 0.0  ;;  %3832 = vmatpush.bf16.msrb.mxu3 %v7695_v16 }
 0x17e   : > { %v2906_v49 = vmin.f32 %v7686_v47, 0.0  ;;  %v3475_v18 = vsel %vm2835_vm4, %v7578_v17, %v5218_v31  ;;  %v5220_v22 = vadd.f32 -1.0, %v5704_v56  ;;  %v3202_v24 = vmul.f32 1.442695, %v2968_v63 }
 0x17f   : > { %v3204_v42 = vmul.f32 1.442695, %v2969_v14  ;;  %v5708_v61 = vpop.eup %5707  ;;  %5711 = vpow2.f32 %v3076_v34  ;;  %v7716_v6 = vadd.f32 %v7626_v57, %v6376_v21  ;;  %v7720_v4 = vadd.f32 %v7633_v7, %v6376_v21  ;;  %v2547_v13 = vpop.f32.mrf.mxu2 }
 0x180   : > { %v3078_v60 = vmul.f32 1.442695, %v2906_v49  ;;  %v3476_v17 = vsel %vm2836_vm5, %v7587_v45, %v5219_v27  ;;  %v3414_v26 = vsel %vm2774_vm6, %v7596_v0, %v5157_v37  ;;  %v5159_v36 = vadd.f32 -1.0, %v5706_v62  ;;  %3819 = vmatpush.bf16.msrb.mxu2 %v7509_v44  ;;  %v7746_v43 = vpop.f32.mrf.mxu3 }
 0x181   : > { %5713 = vpow2.f32 %v3202_v24  ;;  %v5710_v12 = vpop.eup %5709  ;;  %v3415_v57 = vsel %vm2775_vm1, %v7620_v10, %v5158_v9  ;;  %3833 = vmatpush.bf16.msrb.mxu3 %v7679_v25  ;;  %v2907_v7 = vmin.f32 %v7716_v6, 0.0  ;;  %v7736_v45 = vadd.f32 %v7647_v41, %v6376_v21 }
 0x182   : > { %5715 = vpow2.f32 %v3204_v42  ;;  %v3557_v19 = vadd.f32 %v3475_v18, %v3474_v33  ;;  %v5221_v0 = vadd.f32 -1.0, %v5708_v61  ;;  %v5222_v53 = vadd.f32 -1.0, %v5710_v12  ;;  %v2521_v63 = vpop.f32.mrf.mxu0 }
 0x183   : > { %5717 = vpow2.f32 %v3078_v60  ;;  %v7741_v58 = vsel %vm2837_vm7, %v7606_v55, %v5220_v22  ;;  %vm2777_vm10 = vcmp.gt.f32.partialorder %v7651_v23, 0.0  ;;  %vm2839_vm11 = vcmp.gt.f32.partialorder %v7655_v51, 0.0  ;;  %v2535_v14 = vpop.f32.mrf.mxu1 }
 0x184   : > { %v3080_v10 = vmul.f32 1.442695, %v2907_v7  ;;  %v2908_v28 = vmin.f32 %v7720_v4, 0.0  ;;  %v7748_v41 = vadd.f32 %v3557_v19, %v3476_v17  ;;  %v3562_v48 = vadd.f32 %v3415_v57, %v3414_v26  ;;  %3820 = vmatpush.bf16.msrb.mxu2 %v7494_v20 }
 0x185   : > { %v7753_v30 = vadd.f32 %v7663_v2, %v6423_v5  ;;  %v7757_v55 = vadd.f32 %v7665_v32, %v6423_v5  ;;  %v5712_v40 = vpop.eup %5711  ;;  %v3416_v11 = vsel %vm2776_vm8, %v7624_v8, %v5159_v36  ;;  %3834 = vmatpush.bf16.msrb.mxu3 %v7509_v44  ;;  %v2909_v52 = vmin.f32 %v7736_v45, 0.0 }
 0x186   : > { %5719 = vpow2.f32 %v3080_v10  ;;  %v3082_v50 = vmul.f32 1.442695, %v2908_v28  ;;  %v3478_v2 = vsel %vm2838_vm9, %v7645_v15, %v5221_v0  ;;  %v3479_v32 = vsel %vm2839_vm11, %v7655_v51, %v5222_v53 }
 0x187   : > { %v5714_v20 = vpop.eup %5713  ;;  %v2970_v29 = vmin.f32 %v7753_v30, 0.0  ;;  %v2971_v31 = vmin.f32 %v7757_v55, 0.0  ;;  %v7774_v44 = vadd.f32 %v7672_v38, %v6423_v5  ;;  %v7778_v34 = vadd.f32 %v7688_v46, %v6423_v5  ;;  %v7785_v60 = vpop.f32.mrf.mxu2 }
 0x188   : > { %v5716_v8 = vpop.eup %5715  ;;  %v5223_v56 = vadd.f32 -1.0, %v5714_v20  ;;  %5721 = vpow2.f32 %v3082_v50  ;;  %v3564_v27 = vadd.f32 %v3562_v48, %v3416_v11  ;;  %v5160_v37 = vadd.f32 -1.0, %v5712_v40  ;;  %v7800_v7 = vpop.f32.mrf.mxu3 }
 0x189   : > { %v5718_v15 = vpop.eup %5717  ;;  %vm2840_vm12 = vcmp.gt.f32.partialorder %v7676_v35, 0.0  ;;  %v3206_v51 = vmul.f32 1.442695, %v2970_v29  ;;  %v3563_v62 = vadd.f32 %v3479_v32, %v3478_v2  ;;  %v3084_v9 = vmul.f32 1.442695, %v2909_v52 }
 0x18a   : > { %v3480_v33 = vsel %vm2840_vm12, %v7676_v35, %v5223_v56  ;;  %v2972_v49 = vmin.f32 %v7774_v44, 0.0  ;;  %vm2841_vm13 = vcmp.gt.f32.partialorder %v7683_v59, 0.0  ;;  %v5224_v38 = vadd.f32 -1.0, %v5716_v8  ;;  %v7822_v52 = vpop.f32.mrf.mxu0 }
 0x18b   : > { %v5161_v18 = vadd.f32 -1.0, %v5718_v15  ;;  %v3208_v46 = vmul.f32 1.442695, %v2971_v31  ;;  %v3565_v24 = vadd.f32 %v3563_v62, %v3480_v33  ;;  %5723 = vpow2.f32 %v3206_v51  ;;  %v7824_v20 = vpop.f32.mrf.mxu1 }
 0x18c   : > { %v5720_v22 = vpop.eup %5719  ;;  %v3210_v42 = vmul.f32 1.442695, %v2972_v49  ;;  %v2973_v61 = vmin.f32 %v7778_v34, 0.0  ;;  %v3417_v35 = vsel %vm2777_vm10, %v7651_v23, %v5160_v37  ;;  %v7792_v26 = vadd.f32 %v7710_v1, %v6376_v21 }
 0x18d   : > { %v5162_v17 = vadd.f32 -1.0, %v5720_v22  ;;  %v7796_v36 = vadd.f32 %v7712_v39, %v6376_v21  ;;  %v3566_v57 = vadd.f32 %v3564_v27, %v3417_v35  ;;  %vm2778_vm14 = vcmp.gt.f32.partialorder %v7686_v47, 0.0 }
 0x18e   : > { %v5722_v12 = vpop.eup %5721  ;;  %vm2779_vm0 = vcmp.gt.f32.partialorder %v7716_v6, 0.0  ;;  %5725 = vpow2.f32 %v3084_v9  ;;  %v3481_v23 = vsel %vm2841_vm13, %v7683_v59, %v5224_v38  ;;  %v3418_v1 = vsel %vm2778_vm14, %v7686_v47, %v5161_v18 }
 0x18f   : > { %5727 = vpow2.f32 %v3208_v46  ;;  %v7807_v19 = vadd.f32 %v2547_v13, %v6376_v21  ;;  %v3567_v39 = vadd.f32 %v3565_v24, %v3481_v23  ;;  %v3212_v0 = vmul.f32 1.442695, %v2973_v61 }
 0x190   : > { %5729 = vpow2.f32 %v3210_v42  ;;  %v2910_v53 = vmin.f32 %v7792_v26, 0.0  ;;  %v3419_v10 = vsel %vm2779_vm0, %v7716_v6, %v5162_v17  ;;  %v5163_v28 = vadd.f32 -1.0, %v5722_v12 }
 0x191   : > { %v2911_v48 = vmin.f32 %v7796_v36, 0.0  ;;  %v7814_v40 = vadd.f32 %v7746_v43, %v6376_v21  ;;  %v5724_v59 = vpop.eup %5723  ;;  %v3560_v47 = vadd.f32 %v7660_v54, %v7693_v3  ;;  %v3561_v13 = vadd.f32 %v7748_v41, %v7741_v58  ;;  %v7830_v54 = vld [vmem:[%s8429_s3] sm:$0xff] }
 0x192   : > { %v3086_v11 = vmul.f32 1.442695, %v2910_v53  ;;  %vm2780_vm15 = vcmp.gt.f32.partialorder %v7720_v4, 0.0  ;;  %v2912_v6 = vmin.f32 %v7807_v19, 0.0  ;;  %v3568_v29 = vadd.f32 %v3419_v10, %v3418_v1  ;;  %v2577_v53 = vpop.f32.mrf.mxu0 }
 0x193   : > { %v3088_v50 = vmul.f32 1.442695, %v2911_v48  ;;  %v3603_v43 = vpack.c.bf16 %v3566_v57, %v3560_v47  ;;  %v3612_v32 = vpack.c.bf16 %v3567_v39, %v3561_v13  ;;  %vm2781_vm2 = vcmp.gt.f32.partialorder %v7736_v45, 0.0  ;;  %v2603_v37 = vpop.f32.mrf.mxu2  ;;  %v2591_v10 = vpop.f32.mrf.mxu1 }
 0x194   : > { %v5726_v2 = vpop.eup %5725  ;;  %5731 = vpow2.f32 %v3212_v0  ;;  %v3420_v58 = vsel %vm2780_vm15, %v7720_v4, %v5163_v28  ;;  %v5225_v41 = vadd.f32 -1.0, %v5724_v59  ;;  %v2913_v31 = vmin.f32 %v7814_v40, 0.0 }
 0x195   : > { %v5728_v3 = vpop.eup %5727  ;;  %5733 = vpow2.f32 %v3086_v11  ;;  %v3090_v56 = vmul.f32 1.442695, %v2912_v6  ;;  %v7835_v15 = vadd.f32 %v2521_v63, %v6423_v5  ;;  %v7838_v27 = vadd.f32 %v2535_v14, %v6423_v5  ;;  %v7849_v63 = vpop.f32.mrf.mxu3 }
 0x196   : > { %v5730_v8 = vpop.eup %5729  ;;  %5735 = vpow2.f32 %v3088_v50  ;;  %vm2842_vm3 = vcmp.gt.f32.partialorder %v7753_v30, 0.0  ;;  %vm2843_vm4 = vcmp.gt.f32.partialorder %v7757_v55, 0.0  ;;  %vm2844_vm5 = vcmp.gt.f32.partialorder %v7774_v44, 0.0 }
 0x197   : > { %vm3725_vm6 = vcmask 392192   ;;  %v3570_v4 = vadd.f32 %v3568_v29, %v3420_v58  ;;  %v5164_v51 = vadd.f32 -1.0, %v5726_v2  ;;  %v5226_v62 = vadd.f32 -1.0, %v5728_v3 }
 0x198   : > { %vm2845_vm1 = vcmp.gt.f32.partialorder %v7778_v34, 0.0  ;;  %v2974_v33 = vmin.f32 %v7835_v15, 0.0  ;;  %5249 = vmatmul.msk.bf16.vlgmr.msra.gmra.mxu0 %vm3725_vm6, %v7830_v54  ;;  %5250 = vmatmul.msk.bf16.vlgmr.msra.gmra.mxu1 %vm3725_vm6, %v7830_v54  ;;  %v3482_v14 = vsel %vm2842_vm3, %v7753_v30, %v5225_v41  ;;  %v5227_v9 = vadd.f32 -1.0, %v5730_v8 }
 0x199   : > { %vm2782_vm7 = vcmp.gt.f32.partialorder %v7792_v26, 0.0  ;;  %v3092_v49 = vmul.f32 1.442695, %v2913_v31  ;;  %v2975_v38 = vmin.f32 %v7838_v27, 0.0  ;;  %5251 = vmatmul.msk.bf16.vlgmr.msra.gmra.mxu2 %vm3725_vm6, %v7830_v54  ;;  %5252 = vmatmul.msk.bf16.vlgmr.msra.gmra.mxu3 %vm3725_vm6, %v7830_v54  ;;  %vm2783_vm8 = vcmp.gt.f32.partialorder %v7796_v36, 0.0 }
 0x19a   : > { %v5732_v18 = vpop.eup %5731  ;;  %5737 = vpow2.f32 %v3090_v56  ;;  %v3214_v46 = vmul.f32 1.442695, %v2974_v33  ;;  %v3642_v22 = vunpack.c.l.b16 %v3603_v43  ;;  %v3658_v24 = vunpack.c.l.b16 %v3612_v32 }
 0x19b   : > { %v5734_v30 = vpop.eup %5733  ;;  %v3216_v42 = vmul.f32 1.442695, %v2975_v38  ;;  %v3643_v61 = vunpack.c.h.b16 %v3603_v43  ;;  %v3659_v35 = vunpack.c.h.b16 %v3612_v32  ;;  %v7861_v17 = vadd.f32 %v7785_v60, %v6423_v5  ;;  %v2605_v2 = vpop.f32.mrf.mxu2 }
 0x19c   : > { %v5736_v12 = vpop.eup %5735  ;;  %v3483_v57 = vsel %vm2843_vm4, %v7757_v55, %v5226_v62  ;;  %5739 = vpow2.f32 %v3214_v46  ;;  %v7866_v23 = vpack.c.b16 %v3658_v24, %v3642_v22  ;;  %v7870_v1 = vadd.f32 %v7800_v7, %v6423_v5  ;;  %v2631_v22 = vpop.f32.mrf.mxu0 }
 0x19d   : > { %v3421_v39 = vsel %vm2781_vm2, %v7736_v45, %v5164_v51  ;;  %v5228_v0 = vadd.f32 -1.0, %v5732_v18  ;;  %5741 = vpow2.f32 %v3216_v42  ;;  %v7875_v60 = vpack.c.b16 %v3659_v35, %v3643_v61  ;;  %v2619_v41 = vpop.f32.mrf.mxu3  ;;  %v2645_v24 = vpop.f32.mrf.mxu1 }
 0x19e   : > { %v3484_v55 = vsel %vm2844_vm5, %v7774_v44, %v5227_v9  ;;  %v5165_v28 = vadd.f32 -1.0, %v5734_v30  ;;  %vm2784_vm9 = vcmp.gt.f32.partialorder %v7807_v19, 0.0  ;;  %5743 = vpow2.f32 %v3092_v49  ;;  %3846 = vmatpush.bf16.msra.mxu0 %v7866_v23 }
 0x19f   : > { %v2976_v7 = vmin.f32 %v7861_v17, 0.0  ;;  %v3569_v48 = vadd.f32 %v3483_v57, %v3482_v14  ;;  %v5166_v45 = vadd.f32 -1.0, %v5736_v12  ;;  %3860 = vmatpush.bf16.msra.mxu1 %v7875_v60  ;;  %v2977_v59 = vmin.f32 %v7870_v1, 0.0 }
 0x1a0   : > { %v7887_v47 = vadd.f32 %v7822_v52, %v6376_v21  ;;  %v5738_v13 = vpop.eup %5737  ;;  %v7889_v44 = vadd.f32 %v3570_v4, %v3421_v39  ;;  %v7893_v50 = vadd.f32 %v7824_v20, %v6376_v21  ;;  %v7896_v6 = vadd.f32 %v2603_v37, %v6376_v21 }
 0x1a1   : > { %v3218_v11 = vmul.f32 1.442695, %v2976_v7  ;;  %v3571_v43 = vadd.f32 %v3569_v48, %v3484_v55  ;;  %v3485_v32 = vsel %vm2845_vm1, %v7778_v34, %v5228_v0  ;;  %vm2846_vm10 = vcmp.gt.f32.partialorder %v7835_v15, 0.0 }
 0x1a2   : > { %v3220_v52 = vmul.f32 1.442695, %v2977_v59  ;;  %v5740_v29 = vpop.eup %5739  ;;  %v3422_v3 = vsel %vm2782_vm7, %v7792_v26, %v5165_v28  ;;  %3847 = vmatpush.bf16.msra.mxu0 %v7695_v16  ;;  %v2914_v20 = vmin.f32 %v7887_v47, 0.0  ;;  %v2915_v58 = vmin.f32 %v7893_v50, 0.0 }
 0x1a3   : > { %5745 = vpow2.f32 %v3218_v11  ;;  %v5742_v31 = vpop.eup %5741  ;;  %v3423_v34 = vsel %vm2783_vm8, %v7796_v36, %v5166_v45  ;;  %v5167_v8 = vadd.f32 -1.0, %v5738_v13  ;;  %vm2785_vm11 = vcmp.gt.f32.partialorder %v7814_v40, 0.0  ;;  %3861 = vmatpush.bf16.msra.mxu1 %v7866_v23  ;;  %v2659_v0 = vpop.f32.mrf.mxu2 }
 0x1a4   : > { %v5229_v56 = vadd.f32 -1.0, %v5740_v29  ;;  %5747 = vpow2.f32 %v3220_v52  ;;  %v5744_v26 = vpop.eup %5743  ;;  %v5230_v37 = vadd.f32 -1.0, %v5742_v31  ;;  %v3094_v4 = vmul.f32 1.442695, %v2914_v20 }
 0x1a5   : > { %v3096_v51 = vmul.f32 1.442695, %v2915_v58  ;;  %v2916_v62 = vmin.f32 %v7896_v6, 0.0  ;;  %v7914_v33 = vadd.f32 %v3571_v43, %v3485_v32  ;;  %vm2847_vm12 = vcmp.gt.f32.partialorder %v7838_v27, 0.0  ;;  %v2673_v13 = vpop.f32.mrf.mxu3 }
 0x1a6   : > { %v7919_v36 = vadd.f32 %v7849_v63, %v6376_v21  ;;  %v7922_v14 = vadd.f32 %v2577_v53, %v6423_v5  ;;  %v3574_v9 = vadd.f32 %v3423_v34, %v3422_v3  ;;  %5749 = vpow2.f32 %v3094_v4  ;;  %3848 = vmatpush.bf16.msra.mxu0 %v7679_v25  ;;  %v3709_v4 = vld [vmem:[%s8430_s4 + $0x8] sm:$0xff] }
 0x1a7   : > { %v3098_v49 = vmul.f32 1.442695, %v2916_v62  ;;  %v7926_v38 = vadd.f32 %v2591_v10, %v6423_v5  ;;  %v3424_v18 = vsel %vm2784_vm9, %v7807_v19, %v5167_v8  ;;  %v5168_v46 = vadd.f32 -1.0, %v5744_v26  ;;  %3862 = vmatpush.bf16.msra.mxu1 %v7695_v16  ;;  %v3708_v16 = vld [vmem:[%s8430_s4] sm:$0xff]  ;;  %v2633_v26 = vpop.f32.mrf.mxu0 }
 0x1a8   : > { %5751 = vpow2.f32 %v3096_v51  ;;  %v2917_v63 = vmin.f32 %v7919_v36, 0.0  ;;  %v3486_v25 = vsel %vm2846_vm10, %v7835_v15, %v5229_v56  ;;  %v3487_v42 = vsel %vm2847_vm12, %v7838_v27, %v5230_v37  ;;  %5253 = vmatmul.msk.bf16.vlgmr.msrb.gmra.mxu0 %vm3725_vm6, %v7830_v54  ;;  %5254 = vmatmul.msk.bf16.vlgmr.msrb.gmra.mxu1 %vm3725_vm6, %v7830_v54  ;;  %v2647_v37 = vpop.f32.mrf.mxu1 }
 0x1a9   : > { %v5746_v30 = vpop.eup %5745  ;;  %5753 = vpow2.f32 %v3098_v49  ;;  %v2978_v19 = vmin.f32 %v7922_v14, 0.0  ;;  %v2979_v12 = vmin.f32 %v7926_v38, 0.0  ;;  %v7949_v27 = vadd.f32 %v2605_v2, %v6423_v5  ;;  %5255 = vmatmul.msk.bf16.vlgmr.msrb.gmra.mxu2 %vm3725_vm6, %v7830_v54  ;;  %5256 = vmatmul.msk.bf16.vlgmr.msrb.gmra.mxu3 %vm3725_vm6, %v7830_v54 }
 0x1aa   : > { %v5748_v61 = vpop.eup %5747  ;;  %v5231_v35 = vadd.f32 -1.0, %v5746_v30  ;;  %v3100_v15 = vmul.f32 1.442695, %v2917_v63  ;;  %v3576_v57 = vadd.f32 %v3574_v9, %v3424_v18  ;;  %vm2848_vm13 = vcmp.gt.f32.partialorder %v7861_v17, 0.0  ;;  %3712 = vperm.xlu1 %5539, %v3708_v16  }
 0x1ab   : > { %vm2849_vm14 = vcmp.gt.f32.partialorder %v7870_v1, 0.0  ;;  %v3222_v39 = vmul.f32 1.442695, %v2978_v19  ;;  %v3224_v10 = vmul.f32 1.442695, %v2979_v12  ;;  %v7959_v55 = vadd.f32 %v2619_v41, %v6423_v5 }
 0x1ac   : > { %v3488_v53 = vsel %vm2848_vm13, %v7861_v17, %v5231_v35  ;;  %v7962_v28 = vadd.f32 %v2631_v22, %v6376_v21  ;;  %v5750_v7 = vpop.eup %5749  ;;  %v3425_v48 = vsel %vm2785_vm11, %v7814_v40, %v5168_v46  ;;  %v3575_v45 = vadd.f32 %v3487_v42, %v3486_v25  ;;  %v2661_v22 = vpop.f32.mrf.mxu2 }
 0x1ad   : > { %5755 = vpow2.f32 %v3100_v15  ;;  %v2980_v59 = vmin.f32 %v7949_v27, 0.0  ;;  %v5232_v2 = vadd.f32 -1.0, %v5748_v61  ;;  %vm2786_vm0 = vcmp.gt.f32.partialorder %v7887_v47, 0.0  ;;  %v2675_v61 = vpop.f32.mrf.mxu3 }
 0x1ae   : > { %v5752_v11 = vpop.eup %5751  ;;  %v5169_v17 = vadd.f32 -1.0, %v5750_v7  ;;  %5757 = vpow2.f32 %v3222_v39  ;;  %v3577_v32 = vadd.f32 %v3575_v45, %v3488_v53  ;;  %vm2787_vm15 = vcmp.gt.f32.partialorder %v7893_v50, 0.0 }
 0x1af   : > { %v5754_v43 = vpop.eup %5753  ;;  %v5170_v52 = vadd.f32 -1.0, %v5752_v11  ;;  %v3226_v29 = vmul.f32 1.442695, %v2980_v59  ;;  %5759 = vpow2.f32 %v3224_v10  ;;  %v2981_v40 = vmin.f32 %v7959_v55, 0.0 }
 0x1b0   : > { %v5171_v3 = vadd.f32 -1.0, %v5754_v43  ;;  %v2918_v20 = vmin.f32 %v7962_v28, 0.0  ;;  %v3578_v58 = vadd.f32 %v3576_v57, %v3425_v48  ;;  %v3426_v41 = vsel %vm2786_vm0, %v7887_v47, %v5169_v17  ;;  %v2687_v43 = vpop.f32.mrf.mxu0 }
 0x1b1   : > { %v3427_v31 = vsel %vm2787_vm15, %v7893_v50, %v5170_v52  ;;  %v7975_v34 = vadd.f32 %v2645_v24, %v6376_v21  ;;  %v3489_v8 = vsel %vm2849_vm14, %v7870_v1, %v5232_v2  ;;  %vm2788_vm2 = vcmp.gt.f32.partialorder %v7896_v6, 0.0 }
 0x1b2   : > { %5761 = vpow2.f32 %v3226_v29  ;;  %v3102_v56 = vmul.f32 1.442695, %v2918_v20  ;;  %v3579_v51 = vadd.f32 %v3577_v32, %v3489_v8  ;;  %v3428_v50 = vsel %vm2788_vm2, %v7896_v6, %v5171_v3  ;;  %3717 = vperm.xlu1 %5539, %v3709_v4   ;;  %v2701_v32 = vpop.f32.mrf.mxu1 }
 0x1b3   : > { %v5756_v47 = vpop.eup %5755  ;;  %v2919_v62 = vmin.f32 %v7975_v34, 0.0  ;;  %v7987_v9 = vadd.f32 %v2659_v0, %v6376_v21  ;;  %v3580_v49 = vadd.f32 %v3427_v31, %v3426_v41  ;;  %v3228_v18 = vmul.f32 1.442695, %v2981_v40 }
 0x1b4   : > { %v5758_v1 = vpop.eup %5757  ;;  %5763 = vpow2.f32 %v3102_v56  ;;  %v7990_v46 = vadd.f32 %v2673_v13, %v6376_v21  ;;  %v3604_v63 = vpack.c.bf16 %v3578_v58, %v7889_v44  ;;  %vm2789_vm3 = vcmp.gt.f32.partialorder %v7919_v36, 0.0 }
 0x1b5   : > { %vm2850_vm4 = vcmp.gt.f32.partialorder %v7922_v14, 0.0  ;;  %v3104_v6 = vmul.f32 1.442695, %v2919_v62  ;;  %v5760_v24 = vpop.eup %5759  ;;  %v3582_v30 = vadd.f32 %v3580_v49, %v3428_v50  ;;  %v5172_v25 = vadd.f32 -1.0, %v5756_v47 }
 0x1b6   : > { %vm2851_vm5 = vcmp.gt.f32.partialorder %v7926_v38, 0.0  ;;  %v2920_v42 = vmin.f32 %v7987_v9, 0.0  ;;  %v5233_v19 = vadd.f32 -1.0, %v5758_v1  ;;  %vm2852_vm1 = vcmp.gt.f32.partialorder %v7949_v27, 0.0 }
 0x1b7   : > { %5765 = vpow2.f32 %v3104_v6  ;;  %v2921_v16 = vmin.f32 %v7990_v46, 0.0  ;;  %v8000_v44 = vadd.f32 %v2633_v26, %v6423_v5  ;;  %v3613_v15 = vpack.c.bf16 %v3579_v51, %v7914_v33 }
 0x1b8   : > { %v5762_v35 = vpop.eup %5761  ;;  %5767 = vpow2.f32 %v3228_v18  ;;  %vm2790_vm7 = vcmp.gt.f32.partialorder %v7962_v28, 0.0  ;;  %v3106_v12 = vmul.f32 1.442695, %v2920_v42  ;;  %v8005_v57 = vadd.f32 %v2647_v37, %v6423_v5  ;;  %5257 = vmatmul.msk.bf16.vlgmr.msra.gmra.mxu0 %vm3725_vm6, %v7830_v54  ;;  %5258 = vmatmul.msk.bf16.vlgmr.msra.gmra.mxu1 %vm3725_vm6, %v7830_v54 }
 0x1b9   : > { %v5234_v39 = vadd.f32 -1.0, %v5760_v24  ;;  %vm2791_vm8 = vcmp.gt.f32.partialorder %v7975_v34, 0.0  ;;  %v3108_v0 = vmul.f32 1.442695, %v2921_v16  ;;  %v2982_v53 = vmin.f32 %v8000_v44, 0.0 }
 0x1ba   : > { %v5764_v33 = vpop.eup %5763  ;;  %v3429_v10 = vsel %vm2789_vm3, %v7919_v36, %v5172_v25  ;;  %vm2792_vm9 = vcmp.gt.f32.partialorder %v7987_v9, 0.0  ;;  %5769 = vpow2.f32 %v3106_v12  ;;  %v2983_v7 = vmin.f32 %v8005_v57, 0.0 }
 0x1bb   : > { %v8018_v48 = vadd.f32 %v3582_v30, %v3429_v10  ;;  %v3490_v45 = vsel %vm2850_vm4, %v7922_v14, %v5233_v19  ;;  %v5235_v59 = vadd.f32 -1.0, %v5762_v35  ;;  %5771 = vpow2.f32 %v3108_v0 }
 0x1bc   : > { %v3230_v13 = vmul.f32 1.442695, %v2982_v53  ;;  %v3232_v11 = vmul.f32 1.442695, %v2983_v7  ;;  %v3644_v2 = vunpack.c.l.b16 %v3604_v63  ;;  %v3660_v17 = vunpack.c.l.b16 %v3613_v15  ;;  %v2715_v56 = vpop.f32.mrf.mxu2  ;;  %v2729_v18 = vpop.f32.mrf.mxu3 }
 0x1bd   : > { %v5766_v36 = vpop.eup %5765  ;;  %v3491_v52 = vsel %vm2851_vm5, %v7926_v38, %v5234_v39  ;;  %v5173_v29 = vadd.f32 -1.0, %v5764_v33  ;;  %v3645_v3 = vunpack.c.h.b16 %v3604_v63  ;;  %v3661_v40 = vunpack.c.h.b16 %v3613_v15  ;;  %v2689_v53 = vpop.f32.mrf.mxu0 }
 0x1be   : > { %v5768_v20 = vpop.eup %5767  ;;  %v5174_v58 = vadd.f32 -1.0, %v5766_v36  ;;  %5773 = vpow2.f32 %v3230_v13  ;;  %v8026_v14 = vpack.c.b16 %v3660_v17, %v3644_v2  ;;  %v8029_v41 = vadd.f32 %v2661_v22, %v6423_v5  ;;  %v2703_v33 = vpop.f32.mrf.mxu1 }
 0x1bf   : > { %vm2853_vm10 = vcmp.gt.f32.partialorder %v7959_v55, 0.0  ;;  %5775 = vpow2.f32 %v3232_v11  ;;  %v8032_v31 = vpack.c.b16 %v3661_v40, %v3645_v3  ;;  %v8035_v8 = vadd.f32 %v2675_v61, %v6423_v5 }
 0x1c0   : > { %v8038_v38 = vadd.f32 %v2687_v43, %v6376_v21  ;;  %v5770_v26 = vpop.eup %5769  ;;  %v3581_v37 = vadd.f32 %v3491_v52, %v3490_v45  ;;  %v3492_v4 = vsel %vm2852_vm1, %v7949_v27, %v5235_v59  ;;  %3874 = vmatpush.bf16.msra.mxu2 %v8026_v14  ;;  %v2984_v47 = vmin.f32 %v8029_v41, 0.0 }
 0x1c1   : > { %v8046_v51 = vadd.f32 %v2701_v32, %v6376_v21  ;;  %v5772_v50 = vpop.eup %5771  ;;  %v3430_v62 = vsel %vm2790_vm7, %v7962_v28, %v5173_v29  ;;  %v3431_v1 = vsel %vm2791_vm8, %v7975_v34, %v5174_v58  ;;  %v5175_v49 = vadd.f32 -1.0, %v5770_v26  ;;  %3888 = vmatpush.bf16.msra.mxu3 %v8032_v31 }
 0x1c2   : > { %v2985_v27 = vmin.f32 %v8035_v8, 0.0  ;;  %v5236_v63 = vadd.f32 -1.0, %v5768_v20  ;;  %vm2793_vm11 = vcmp.gt.f32.partialorder %v7990_v46, 0.0  ;;  %v3234_v6 = vmul.f32 1.442695, %v2984_v47 }
 0x1c3   : > { %v2922_v22 = vmin.f32 %v8038_v38, 0.0  ;;  %v3583_v24 = vadd.f32 %v3581_v37, %v3492_v4  ;;  %v3432_v28 = vsel %vm2792_vm9, %v7987_v9, %v5175_v49  ;;  %v2923_v34 = vmin.f32 %v8046_v51, 0.0 }
 0x1c4   : > { %v3236_v30 = vmul.f32 1.442695, %v2985_v27  ;;  %v5774_v25 = vpop.eup %5773  ;;  %v3586_v42 = vadd.f32 %v3431_v1, %v3430_v62  ;;  %v5176_v19 = vadd.f32 -1.0, %v5772_v50  ;;  %3875 = vmatpush.bf16.msra.mxu2 %v7875_v60  ;;  %5777 = vpow2.f32 %v3234_v6  ;;  %v2717_v13 = vpop.f32.mrf.mxu2 }
 0x1c5   : > { %v3110_v16 = vmul.f32 1.442695, %v2922_v22  ;;  %v5776_v61 = vpop.eup %5775  ;;  %v5237_v35 = vadd.f32 -1.0, %v5774_v25  ;;  %3889 = vmatpush.bf16.msra.mxu3 %v8026_v14  ;;  %v3112_v15 = vmul.f32 1.442695, %v2923_v34  ;;  %v8065_v12 = vadd.f32 %v2715_v56, %v6376_v21  ;;  %v2731_v43 = vpop.f32.mrf.mxu3 }
 0x1c6   : > { %5779 = vpow2.f32 %v3236_v30  ;;  %v3588_v9 = vadd.f32 %v3586_v42, %v3432_v28  ;;  %v5238_v39 = vadd.f32 -1.0, %v5776_v61  ;;  %v8068_v0 = vadd.f32 %v2729_v18, %v6376_v21 }
 0x1c7   : > { %5781 = vpow2.f32 %v3110_v16  ;;  %vm2854_vm12 = vcmp.gt.f32.partialorder %v8000_v44, 0.0  ;;  %vm2855_vm13 = vcmp.gt.f32.partialorder %v8005_v57, 0.0  ;;  %v2924_v10 = vmin.f32 %v8065_v12, 0.0 }
 0x1c8   : > { %5783 = vpow2.f32 %v3112_v15  ;;  %v3493_v7 = vsel %vm2853_vm10, %v7959_v55, %v5236_v63  ;;  %v3433_v45 = vsel %vm2793_vm11, %v7990_v46, %v5176_v19  ;;  %v3494_v21 = vsel %vm2854_vm12, %v8000_v44, %v5237_v35  ;;  %3876 = vmatpush.bf16.msra.mxu2 %v7866_v23 }
 0x1c9   : > { %v2925_v59 = vmin.f32 %v8068_v0, 0.0  ;;  %v3495_v11 = vsel %vm2855_vm13, %v8005_v57, %v5238_v39  ;;  %3890 = vmatpush.bf16.msra.mxu3 %v7875_v60  ;;  %v3114_v2 = vmul.f32 1.442695, %v2924_v10  ;;  %v8085_v17 = vadd.f32 %v2689_v53, %v6423_v5 }
 0x1ca   : > { %v8088_v55 = vadd.f32 %v2703_v33, %v6423_v5  ;;  %v5778_v46 = vpop.eup %5777  ;;  %v3585_v32 = vadd.f32 %v3583_v24, %v3493_v7  ;;  %v3590_v44 = vadd.f32 %v3588_v9, %v3433_v45  ;;  %vm2856_vm14 = vcmp.gt.f32.partialorder %v8029_v41, 0.0 }
 0x1cb   : > { %v3116_v23 = vmul.f32 1.442695, %v2925_v59  ;;  %v5239_v52 = vadd.f32 -1.0, %v5778_v46  ;;  %5785 = vpow2.f32 %v3114_v2  ;;  %v2986_v57 = vmin.f32 %v8085_v17, 0.0  ;;  %5259 = vmatmul.msk.bf16.vlgmr.msra.gmra.mxu2 %vm3725_vm6, %v7830_v54 }
 0x1cc   : > { %v5780_v36 = vpop.eup %5779  ;;  %v8095_v60 = vadd.f32 %v2717_v13, %v6423_v5  ;;  %v3587_v3 = vadd.f32 %v3495_v11, %v3494_v21  ;;  %v2987_v20 = vmin.f32 %v8088_v55, 0.0  ;;  %v8099_v58 = vadd.f32 %v2731_v43, %v6423_v5  ;;  %5260 = vmatmul.msk.bf16.vlgmr.msra.gmra.mxu3 %vm3725_vm6, %v7830_v54 }
 0x1cd   : > { %v5782_v29 = vpop.eup %5781  ;;  %v5240_v40 = vadd.f32 -1.0, %v5780_v36  ;;  %v3496_v26 = vsel %vm2856_vm14, %v8029_v41, %v5239_v52  ;;  %5787 = vpow2.f32 %v3116_v23  ;;  %v3238_v4 = vmul.f32 1.442695, %v2986_v57 }
 0x1ce   : > { %v5784_v56 = vpop.eup %5783  ;;  %v5177_v37 = vadd.f32 -1.0, %v5782_v29  ;;  %v3589_v47 = vadd.f32 %v3587_v3, %v3496_v26  ;;  %vm2857_vm0 = vcmp.gt.f32.partialorder %v8035_v8, 0.0  ;;  %v3240_v62 = vmul.f32 1.442695, %v2987_v20 }
 0x1cf   : > { %v5178_v50 = vadd.f32 -1.0, %v5784_v56  ;;  %v3605_v1 = vpack.c.bf16 %v3590_v44, %v8018_v48  ;;  %v3497_v49 = vsel %vm2857_vm0, %v8035_v8, %v5240_v40  ;;  %5789 = vpow2.f32 %v3238_v4 }
 0x1d0   : > { %v2988_v5 = vmin.f32 %v8095_v60, 0.0  ;;  %v3591_v27 = vadd.f32 %v3589_v47, %v3497_v49  ;;  %vm2794_vm15 = vcmp.gt.f32.partialorder %v8038_v38, 0.0  ;;  %5791 = vpow2.f32 %v3240_v62 }
 0x1d1   : > { %v2989_v41 = vmin.f32 %v8099_v58, 0.0  ;;  %v5786_v18 = vpop.eup %5785  ;;  %v3434_v63 = vsel %vm2794_vm15, %v8038_v38, %v5177_v37  ;;  %vm2795_vm2 = vcmp.gt.f32.partialorder %v8046_v51, 0.0  ;;  %vm2796_vm3 = vcmp.gt.f32.partialorder %v8065_v12, 0.0 }
 0x1d2   : > { %v3242_v6 = vmul.f32 1.442695, %v2988_v5  ;;  %v3614_v22 = vpack.c.bf16 %v3591_v27, %v3585_v32  ;;  %v3435_v48 = vsel %vm2795_vm2, %v8046_v51, %v5178_v50  ;;  %v5179_v24 = vadd.f32 -1.0, %v5786_v18 }
 0x1d3   : > { %v3244_v8 = vmul.f32 1.442695, %v2989_v41  ;;  %v5788_v28 = vpop.eup %5787  ;;  %v3646_v30 = vunpack.c.l.b16 %v3605_v1  ;;  %v3647_v34 = vunpack.c.h.b16 %v3605_v1  ;;  %v3592_v16 = vadd.f32 %v3435_v48, %v3434_v63 }
 0x1d4   : > { %5793 = vpow2.f32 %v3242_v6  ;;  %v3436_v25 = vsel %vm2796_vm3, %v8065_v12, %v5179_v24  ;;  %v3662_v42 = vunpack.c.l.b16 %v3614_v22  ;;  %v3663_v19 = vunpack.c.h.b16 %v3614_v22 }
 0x1d5   : > { %5795 = vpow2.f32 %v3244_v8  ;;  %v5790_v38 = vpop.eup %5789  ;;  %v5180_v35 = vadd.f32 -1.0, %v5788_v28  ;;  %v3594_v39 = vadd.f32 %v3592_v16, %v3436_v25  ;;  %vm2858_vm4 = vcmp.gt.f32.partialorder %v8085_v17, 0.0 }
 0x1d6   : > { %v5792_v61 = vpop.eup %5791  ;;  %v5241_v15 = vadd.f32 -1.0, %v5790_v38  ;;  %v3678_v9 = vpack.c.b16 %v3662_v42, %v3646_v30  ;;  %v3679_v51 = vpack.c.b16 %v3663_v19, %v3647_v34  ;;  %vm2859_vm5 = vcmp.gt.f32.partialorder %v8088_v55, 0.0 }
 0x1d7   : > { %v5242_v53 = vadd.f32 -1.0, %v5792_v61  ;;  %vm2797_vm1 = vcmp.gt.f32.partialorder %v8068_v0, 0.0  ;;  %vm2860_vm7 = vcmp.gt.f32.partialorder %v8095_v60, 0.0  ;;  %vm2861_vm8 = vcmp.gt.f32.partialorder %v8099_v58, 0.0 }
 0x1d8   : > { %v3498_v33 = vsel %vm2858_vm4, %v8085_v17, %v5241_v15  ;;  %3902 = vmatpush.bf16.msrb.mxu0 %v3678_v9  ;;  %3916 = vmatpush.bf16.msrb.mxu1 %v3679_v51  ;;  %v3437_v45 = vsel %vm2797_vm1, %v8068_v0, %v5180_v35 }
 0x1d9   : > { %v3499_v10 = vsel %vm2859_vm5, %v8088_v55, %v5242_v53  ;;  %v3596_v59 = vadd.f32 %v3594_v39, %v3437_v45 }
 0x1da   : > { %v5794_v12 = vpop.eup %5793  ;;  %v3593_v13 = vadd.f32 %v3499_v10, %v3498_v33 }
 0x1db   : > { %v5796_v7 = vpop.eup %5795  ;;  %v5243_v21 = vadd.f32 -1.0, %v5794_v12  ;;  %v3606_v55 = vpack.c.bf16 0.0, %v3596_v59 }
 0x1dc   : > { %v5244_v11 = vadd.f32 -1.0, %v5796_v7  ;;  %3903 = vmatpush.bf16.msrb.mxu0 %v8032_v31  ;;  %3917 = vmatpush.bf16.msrb.mxu1 %v3678_v9 }
 0x1dd   : > { %v3500_v2 = vsel %vm2860_vm7, %v8095_v60, %v5243_v21  ;;  %v3698_v32 = vunpack.c.l.b16 %v3606_v55  ;;  %v3702_v44 = vunpack.c.h.b16 %v3606_v55 }
 0x1de   : > { %v3595_v17 = vadd.f32 %v3593_v13, %v3500_v2  ;;  %v3501_v43 = vsel %vm2861_vm8, %v8099_v58, %v5244_v11 }
 0x1e0   : > { %v3597_v46 = vadd.f32 %v3595_v17, %v3501_v43  ;;  %3904 = vmatpush.bf16.msrb.mxu0 %v8026_v14  ;;  %3918 = vmatpush.bf16.msrb.mxu1 %v8032_v31 }
 0x1e2   : > { %v3615_v0 = vpack.c.bf16 0.0, %v3597_v46 }
 0x1e3   : > { %5261 = vmatmul.msk.bf16.vlgmr.msrb.gmra.mxu0 %vm3725_vm6, %v7830_v54  ;;  %5262 = vmatmul.msk.bf16.vlgmr.msrb.gmra.mxu1 %vm3725_vm6, %v7830_v54 }
 0x1e4   : > { %v3699_v23 = vunpack.c.l.b16 %v3615_v0  ;;  %v3703_v36 = vunpack.c.h.b16 %v3615_v0 }
 0x1e6   : > { %v3700_v52 = vpack.c.b16 %v3699_v23, %v3698_v32  ;;  %v3704_v57 = vpack.c.b16 %v3703_v36, %v3702_v44 }
 0x1e8   : > { %3930 = vmatpush.bf16.msrb.mxu2 %v3700_v52  ;;  %3944 = vmatpush.bf16.msrb.mxu3 %v3704_v57 }
 0x1ec   : > { %3931 = vmatpush.bf16.msrb.mxu2 %v3679_v51  ;;  %3945 = vmatpush.bf16.msrb.mxu3 %v3700_v52 }
 0x1f0   : > { %3932 = vmatpush.bf16.msrb.mxu2 %v3678_v9  ;;  %3946 = vmatpush.bf16.msrb.mxu3 %v3679_v51 }
 0x1f3   : > { %5263 = vmatmul.msk.bf16.vlgmr.msrb.gmra.mxu2 %vm3725_vm6, %v7830_v54  ;;  %5264 = vmatmul.msk.bf16.vlgmr.msrb.gmra.mxu3 %vm3725_vm6, %v7830_v54 }
 0x215   : > { %v3738_v14 = vpop.f32.mrf.mxu0  ;;  %v3752_v31 = vpop.f32.mrf.mxu1 }
 0x21c   : > { %v3766_v29 = vpop.f32.mrf.mxu2  ;;  %v3780_v3 = vpop.f32.mrf.mxu3 }
 0x21d   : > { %v3740_v60 = vpop.f32.mrf.mxu0  ;;  %v3754_v40 = vpop.f32.mrf.mxu1 }
 0x21e   : > { %v8136_v26 = vpop.permute.xlu1 %3712 }
 0x21f   : > { %v3739_v4 = vadd.f32 %v3738_v14, %v8136_v26  ;;  %v3753_v47 = vadd.f32 %v3752_v31, %v8136_v26  ;;  %v8141_v54 = vadd.f32 %v3766_v29, %v8136_v26  ;;  %v8144_v41 = vadd.f32 %v3780_v3, %v8136_v26 }
 0x221   : > { %v3985_v50 = vmin.f32 %v3739_v4, 0.0  ;;  %v3986_v1 = vmin.f32 %v3753_v47, 0.0  ;;  %v3987_v18 = vmin.f32 %v8141_v54, 0.0  ;;  %v3988_v48 = vmin.f32 %v8144_v41, 0.0 }
 0x222   : > { %vm3953_vm6 = vcmp.gt.f32.partialorder %v3739_v4, 0.0  ;;  %vm3954_vm9 = vcmp.gt.f32.partialorder %v3753_v47, 0.0  ;;  %vm3955_vm10 = vcmp.gt.f32.partialorder %v8141_v54, 0.0  ;;  %vm3956_vm11 = vcmp.gt.f32.partialorder %v8144_v41, 0.0 }
 0x223   : > { %v4017_v5 = vmul.f32 1.442695, %v3985_v50  ;;  %v4019_v63 = vmul.f32 1.442695, %v3986_v1  ;;  %v4021_v24 = vmul.f32 1.442695, %v3987_v18 }
 0x224   : > { %v3768_v58 = vpop.f32.mrf.mxu2  ;;  %v3782_v56 = vpop.f32.mrf.mxu3  ;;  %v4023_v34 = vmul.f32 1.442695, %v3988_v48 }
 0x225   : > { %v3794_v20 = vpop.f32.mrf.mxu0  ;;  %v3808_v37 = vpop.f32.mrf.mxu1  ;;  %5797 = vpow2.f32 %v4017_v5 }
 0x226   : > { %5799 = vpow2.f32 %v4019_v63  ;;  %v8151_v8 = vadd.f32 %v3794_v20, %v8136_v26  ;;  %v8155_v30 = vpop.permute.xlu1 %3717  ;;  %v8158_v25 = vadd.f32 %v3808_v37, %v8136_v26 }
 0x227   : > { %5801 = vpow2.f32 %v4021_v24  ;;  %v8164_v35 = vadd.f32 %v3740_v60, %v8155_v30  ;;  %v8167_v15 = vadd.f32 %v3754_v40, %v8155_v30  ;;  %v8175_v21 = vadd.f32 %v3768_v58, %v8155_v30 }
 0x228   : > { %v3989_v38 = vmin.f32 %v8151_v8, 0.0  ;;  %5803 = vpow2.f32 %v4023_v34  ;;  %v3990_v9 = vmin.f32 %v8158_v25, 0.0  ;;  %v8183_v2 = vadd.f32 %v3782_v56, %v8155_v30 }
 0x229   : > { %v4001_v7 = vmin.f32 %v8164_v35, 0.0  ;;  %v4002_v59 = vmin.f32 %v8167_v15, 0.0  ;;  %v4003_v57 = vmin.f32 %v8175_v21, 0.0  ;;  %vm3957_vm12 = vcmp.gt.f32.partialorder %v8151_v8, 0.0 }
 0x22a   : > { %v4025_v51 = vmul.f32 1.442695, %v3989_v38  ;;  %v4027_v13 = vmul.f32 1.442695, %v3990_v9  ;;  %v4004_v3 = vmin.f32 %v8183_v2, 0.0  ;;  %vm3958_vm13 = vcmp.gt.f32.partialorder %v8158_v25, 0.0 }
 0x22b   : > { %v5798_v19 = vpop.eup %5797  ;;  %v4049_v44 = vmul.f32 1.442695, %v4001_v7  ;;  %v4051_v14 = vmul.f32 1.442695, %v4002_v59  ;;  %v4053_v1 = vmul.f32 1.442695, %v4003_v57 }
 0x22c   : > { %v3822_v49 = vpop.f32.mrf.mxu2  ;;  %v3836_v27 = vpop.f32.mrf.mxu3  ;;  %v5265_v39 = vadd.f32 -1.0, %v5798_v19  ;;  %5805 = vpow2.f32 %v4025_v51  ;;  %vm3969_vm14 = vcmp.gt.f32.partialorder %v8164_v35, 0.0  ;;  %vm3970_vm0 = vcmp.gt.f32.partialorder %v8167_v15, 0.0 }
 0x22d   : > { %v3796_v62 = vpop.f32.mrf.mxu0  ;;  %v8147_v6 = vpop.f32.mrf.mxu1  ;;  %v8171_v10 = vadd.f32 %v3822_v49, %v8136_v26  ;;  %v8180_v11 = vadd.f32 %v3836_v27, %v8136_v26  ;;  %5807 = vpow2.f32 %v4027_v13  ;;  %vm3971_vm15 = vcmp.gt.f32.partialorder %v8175_v21, 0.0 }
 0x22e   : > { %v5800_v61 = vpop.eup %5799  ;;  %v4113_v43 = vsel %vm3953_vm6, %v3739_v4, %v5265_v39  ;;  %v8191_v52 = vadd.f32 %v3796_v62, %v8155_v30  ;;  %5809 = vpow2.f32 %v4049_v44  ;;  %vm3972_vm2 = vcmp.gt.f32.partialorder %v8183_v2, 0.0 }
 0x22f   : > { %v5266_v53 = vadd.f32 -1.0, %v5800_v61  ;;  %v5802_v12 = vpop.eup %5801  ;;  %v3991_v32 = vmin.f32 %v8171_v10, 0.0  ;;  %v3992_v29 = vmin.f32 %v8180_v11, 0.0  ;;  %5811 = vpow2.f32 %v4051_v14 }
 0x230   : > { %v5267_v17 = vadd.f32 -1.0, %v5802_v12  ;;  %v5804_v0 = vpop.eup %5803  ;;  %v4005_v62 = vmin.f32 %v8191_v52, 0.0  ;;  %vm3973_vm1 = vcmp.gt.f32.partialorder %v8191_v52, 0.0 }
 0x231   : > { %v4114_v55 = vsel %vm3954_vm9, %v3753_v47, %v5266_v53  ;;  %v5268_v20 = vadd.f32 -1.0, %v5804_v0  ;;  %v4029_v4 = vmul.f32 1.442695, %v3991_v32 }
 0x232   : > { %v4145_v60 = vadd.f32 %v4114_v55, %v4113_v43  ;;  %v4115_v58 = vsel %vm3955_vm10, %v8141_v54, %v5267_v17  ;;  %v5806_v50 = vpop.eup %5805  ;;  %v4031_v54 = vmul.f32 1.442695, %v3992_v29 }
 0x233   : > { %v4116_v63 = vsel %vm3956_vm11, %v8144_v41, %v5268_v20  ;;  %v5269_v34 = vadd.f32 -1.0, %v5806_v50  ;;  %5813 = vpow2.f32 %v4029_v4  ;;  %v5808_v61 = vpop.eup %5807  ;;  %v4057_v41 = vmul.f32 1.442695, %v4005_v62 }
 0x234   : > { %v8153_v28 = vpop.f32.mrf.mxu2  ;;  %v8161_v16 = vpop.f32.mrf.mxu3  ;;  %v4147_v5 = vadd.f32 %v4145_v60, %v4115_v58  ;;  %5815 = vpow2.f32 %v4053_v1  ;;  %v5270_v17 = vadd.f32 -1.0, %v5808_v61  ;;  %vm3959_vm11 = vcmp.gt.f32.partialorder %v8171_v10, 0.0 }
 0x235   : > { %v3850_v22 = vpop.f32.mrf.mxu0  ;;  %v3864_v42 = vpop.f32.mrf.mxu1  ;;  %5817 = vpow2.f32 %v4031_v54  ;;  %v8232_v12 = vadd.f32 %v8153_v28, %v8155_v30  ;;  %v4117_v0 = vsel %vm3957_vm12, %v8151_v8, %v5269_v34  ;;  %v8264_v4 = vadd.f32 %v8161_v16, %v8155_v30 }
 0x236   : > { %v8188_v23 = vadd.f32 %v3850_v22, %v8136_v26  ;;  %v8195_v31 = vadd.f32 %v3864_v42, %v8136_v26  ;;  %v4055_v22 = vmul.f32 1.442695, %v4004_v3  ;;  %v8225_v42 = vadd.f32 %v8147_v6, %v8155_v30  ;;  %v5810_v53 = vpop.eup %5809 }
 0x237   : > { %v5812_v6 = vpop.eup %5811  ;;  %v4007_v14 = vmin.f32 %v8232_v12, 0.0  ;;  %v8270_v62 = vsel %vm3958_vm13, %v8158_v25, %v5270_v17  ;;  %v4008_v61 = vmin.f32 %v8264_v4, 0.0 }
 0x238   : > { %v3993_v47 = vmin.f32 %v8188_v23, 0.0  ;;  %v3994_v49 = vmin.f32 %v8195_v31, 0.0  ;;  %5819 = vpow2.f32 %v4055_v22  ;;  %v4006_v43 = vmin.f32 %v8225_v42, 0.0 }
 0x239   : > { %v5282_v57 = vadd.f32 -1.0, %v5812_v6  ;;  %v4061_v22 = vmul.f32 1.442695, %v4007_v14  ;;  %vm3961_vm3 = vcmp.gt.f32.partialorder %v8188_v23, 0.0  ;;  %vm3962_vm4 = vcmp.gt.f32.partialorder %v8195_v31, 0.0 }
 0x23a   : > { %v4033_v19 = vmul.f32 1.442695, %v3993_v47  ;;  %v4035_v9 = vmul.f32 1.442695, %v3994_v49  ;;  %vm3974_vm6 = vcmp.gt.f32.partialorder %v8225_v42, 0.0 }
 0x23b   : > { %v4130_v16 = vsel %vm3970_vm0, %v8167_v15, %v5282_v57 }
 0x23c   : > { %5821 = vpow2.f32 %v4033_v19 }
 0x23d   : > { %v3852_v33 = vpop.f32.mrf.mxu0  ;;  %v3866_v36 = vpop.f32.mrf.mxu1  ;;  %5823 = vpow2.f32 %v4035_v9 }
 0x23e   : > { %v8200_v40 = vadd.f32 %v3852_v33, %v8155_v30  ;;  %v8206_v56 = vadd.f32 %v3866_v36, %v8155_v30  ;;  %v4149_v33 = vadd.f32 %v4147_v5, %v4116_v63  ;;  %v5281_v36 = vadd.f32 -1.0, %v5810_v53 }
 0x240   : > { %v4009_v27 = vmin.f32 %v8200_v40, 0.0  ;;  %v4010_v24 = vmin.f32 %v8206_v56, 0.0  ;;  %v8260_v58 = vadd.f32 %v4149_v33, %v4117_v0  ;;  %vm3977_vm5 = vcmp.gt.f32.partialorder %v8200_v40, 0.0 }
 0x241   : > { %vm3978_vm7 = vcmp.gt.f32.partialorder %v8206_v56, 0.0 }
 0x242   : > { %v4065_v7 = vmul.f32 1.442695, %v4009_v27  ;;  %v4067_v13 = vmul.f32 1.442695, %v4010_v24  ;;  %v4129_v27 = vsel %vm3969_vm14, %v8164_v35, %v5281_v36 }
 0x243   : > { %v4146_v9 = vadd.f32 %v4130_v16, %v4129_v27 }
 0x244   : > { %5825 = vpow2.f32 %v4065_v7 }
 0x245   : > { %5827 = vpow2.f32 %v4067_v13 }
 0x246   : > { %5829 = vpow2.f32 %v4057_v41 }
 0x24e   : > { %v3878_v45 = vpop.f32.mrf.mxu2 }
 0x24f   : > { %v3892_v46 = vpop.f32.mrf.mxu3  ;;  %v8220_v48 = vadd.f32 %v3878_v45, %v8136_v26 }
 0x250   : > { %v8237_v59 = vadd.f32 %v3892_v46, %v8136_v26  ;;  %v8250_v46 = vpop.eup %5813 }
 0x251   : > { %v3995_v45 = vmin.f32 %v8220_v48, 0.0  ;;  %v5816_v60 = vpop.eup %5815  ;;  %vm3963_vm8 = vcmp.gt.f32.partialorder %v8220_v48, 0.0 }
 0x252   : > { %v3996_v3 = vmin.f32 %v8237_v59, 0.0  ;;  %v8258_v20 = vpop.eup %5817  ;;  %v5283_v54 = vadd.f32 -1.0, %v5816_v60  ;;  %vm3964_vm10 = vcmp.gt.f32.partialorder %v8237_v59, 0.0 }
 0x253   : > { %v4037_v29 = vmul.f32 1.442695, %v3995_v45  ;;  %v5820_v50 = vpop.eup %5819 }
 0x254   : > { %v5822_v5 = vpop.eup %5821  ;;  %v4039_v24 = vmul.f32 1.442695, %v3996_v3  ;;  %v4131_v53 = vsel %vm3971_vm15, %v8175_v21, %v5283_v54  ;;  %vm3960_vm15 = vcmp.gt.f32.partialorder %v8180_v11, 0.0 }
 0x255   : > { %v5824_v25 = vpop.eup %5823  ;;  %5831 = vpow2.f32 %v4037_v29  ;;  %v5273_v6 = vadd.f32 -1.0, %v5822_v5 }
 0x256   : > { %v3880_v18 = vpop.f32.mrf.mxu2  ;;  %v5826_v19 = vpop.eup %5825  ;;  %v5274_v13 = vadd.f32 -1.0, %v5824_v25  ;;  %v4063_v25 = vmul.f32 1.442695, %v4008_v61 }
 0x257   : > { %v8228_v51 = vadd.f32 %v3880_v18, %v8155_v30  ;;  %v3894_v39 = vpop.f32.mrf.mxu3  ;;  %v5828_v41 = vpop.eup %5827  ;;  %v5289_v17 = vadd.f32 -1.0, %v5826_v19 }
 0x258   : > { %v8241_v55 = vadd.f32 %v3894_v39, %v8155_v30  ;;  %v5284_v39 = vadd.f32 -1.0, %v5820_v50  ;;  %v5830_v7 = vpop.eup %5829  ;;  %v4122_v50 = vsel %vm3962_vm4, %v8195_v31, %v5274_v13  ;;  %v4176_v31 = vld [vmem:[%s8432_s6] sm:$0xf] }
 0x259   : > { %v4011_v32 = vmin.f32 %v8228_v51, 0.0  ;;  %vm3979_vm9 = vcmp.gt.f32.partialorder %v8228_v51, 0.0  ;;  %4179 = vperm.xlu2 %5540, %v4176_v31  }
 0x25a   : > { %v4012_v47 = vmin.f32 %v8241_v55, 0.0  ;;  %v4132_v60 = vsel %vm3972_vm2, %v8183_v2, %v5284_v39  ;;  %vm3980_vm12 = vcmp.gt.f32.partialorder %v8241_v55, 0.0  ;;  %vm3975_vm2 = vcmp.gt.f32.partialorder %v8232_v12, 0.0 }
 0x25b   : > { %v4069_v1 = vmul.f32 1.442695, %v4011_v32  ;;  %v5832_v32 = vpop.eup %5831 }
 0x25c   : > { %v4071_v35 = vmul.f32 1.442695, %v4012_v47  ;;  %v4121_v47 = vsel %vm3961_vm3, %v8188_v23, %v5273_v6  ;;  %v5275_v2 = vadd.f32 -1.0, %v5832_v32  ;;  %vm3976_vm3 = vcmp.gt.f32.partialorder %v8264_v4, 0.0 }
 0x25e   : > { %v4123_v19 = vsel %vm3963_vm8, %v8220_v48, %v5275_v2 }
 0x260   : > { %v3906_v37 = vpop.f32.mrf.mxu0  ;;  %v3920_v38 = vpop.f32.mrf.mxu1 }
 0x261   : > { %v8248_v44 = vadd.f32 %v3906_v37, %v8136_v26  ;;  %v4059_v37 = vmul.f32 1.442695, %v4006_v43  ;;  %v8280_v18 = vadd.f32 %v3920_v38, %v8136_v26  ;;  %v5290_v43 = vadd.f32 -1.0, %v5828_v41 }
 0x263   : > { %v3997_v49 = vmin.f32 %v8248_v44, 0.0  ;;  %5833 = vpow2.f32 %v4059_v37  ;;  %v3998_v33 = vmin.f32 %v8280_v18, 0.0  ;;  %v4148_v37 = vadd.f32 %v4146_v9, %v4131_v53 }
 0x264   : > { %5835 = vpow2.f32 %v4069_v1  ;;  %v4137_v1 = vsel %vm3977_vm5, %v8200_v40, %v5289_v17  ;;  %v4138_v5 = vsel %vm3978_vm7, %v8206_v56, %v5290_v43  ;;  %v4159_v40 = vadd.f32 %v4122_v50, %v4121_v47 }
 0x265   : > { %v4041_v15 = vmul.f32 1.442695, %v3997_v49  ;;  %5837 = vpow2.f32 %v4039_v24  ;;  %v4043_v29 = vmul.f32 1.442695, %v3998_v33  ;;  %vm3965_vm13 = vcmp.gt.f32.partialorder %v8248_v44, 0.0 }
 0x266   : > { %5839 = vpow2.f32 %v4071_v35  ;;  %v4160_v35 = vadd.f32 %v4138_v5, %v4137_v1  ;;  %vm3966_vm0 = vcmp.gt.f32.partialorder %v8280_v18, 0.0 }
 0x267   : > { %5841 = vpow2.f32 %v4041_v15 }
 0x268   : > { %v3908_v28 = vpop.f32.mrf.mxu0  ;;  %v3922_v63 = vpop.f32.mrf.mxu1  ;;  %5843 = vpow2.f32 %v4061_v22 }
 0x269   : > { %v8256_v8 = vadd.f32 %v3908_v28, %v8155_v30  ;;  %v8286_v38 = vadd.f32 %v3922_v63, %v8155_v30  ;;  %v8302_v14 = vpop.eup %5833  ;;  %v5285_v63 = vadd.f32 -1.0, %v5830_v7 }
 0x26a   : > { %v5836_v3 = vpop.eup %5835 }
 0x26b   : > { %v4013_v34 = vmin.f32 %v8256_v8, 0.0  ;;  %v4014_v21 = vmin.f32 %v8286_v38, 0.0  ;;  %v5838_v49 = vpop.eup %5837  ;;  %v5291_v22 = vadd.f32 -1.0, %v5836_v3  ;;  %v5286_v3 = vadd.f32 -1.0, %v8302_v14 }
 0x26c   : > { %v5840_v16 = vpop.eup %5839  ;;  %v5276_v61 = vadd.f32 -1.0, %v5838_v49  ;;  %vm3981_vm14 = vcmp.gt.f32.partialorder %v8256_v8, 0.0  ;;  %vm3982_vm5 = vcmp.gt.f32.partialorder %v8286_v38, 0.0 }
 0x26d   : > { %v4073_v45 = vmul.f32 1.442695, %v4013_v34  ;;  %v4075_v54 = vmul.f32 1.442695, %v4014_v21  ;;  %v5842_v24 = vpop.eup %5841  ;;  %v4150_v34 = vadd.f32 %v4148_v37, %v4132_v60  ;;  %v4139_v48 = vsel %vm3979_vm9, %v8228_v51, %v5291_v22 }
 0x26e   : > { %v5844_v56 = vpop.eup %5843  ;;  %v5292_v7 = vadd.f32 -1.0, %v5840_v16  ;;  %v5277_v6 = vadd.f32 -1.0, %v5842_v24  ;;  %v4124_v51 = vsel %vm3964_vm10, %v8237_v59, %v5276_v61  ;;  %v4162_v32 = vadd.f32 %v4160_v35, %v4139_v48 }
 0x26f   : > { %5845 = vpow2.f32 %v4073_v45  ;;  %v4161_v45 = vadd.f32 %v4159_v40, %v4123_v19  ;;  %v5287_v14 = vadd.f32 -1.0, %v5844_v56  ;;  %v5272_v16 = vadd.f32 -1.0, %v8258_v20 }
 0x270   : > { %5847 = vpow2.f32 %v4043_v29  ;;  %v5271_v29 = vadd.f32 -1.0, %v8250_v46  ;;  %v4140_v37 = vsel %vm3980_vm12, %v8241_v55, %v5292_v7 }
 0x271   : > { %v4164_v1 = vadd.f32 %v4162_v32, %v4140_v37  ;;  %v4135_v31 = vsel %vm3975_vm2, %v8232_v12, %v5287_v14 }
 0x275   : > { %v5846_v15 = vpop.eup %5845 }
 0x276   : > { %v3934_v28 = vpop.f32.mrf.mxu2  ;;  %v3948_v0 = vpop.f32.mrf.mxu3 }
 0x277   : > { %v8297_v36 = vadd.f32 %v3934_v28, %v8136_v26  ;;  %v8300_v57 = vadd.f32 %v3948_v0, %v8136_v26  ;;  %v5848_v43 = vpop.eup %5847  ;;  %v5293_v28 = vadd.f32 -1.0, %v5846_v15 }
 0x278   : > { %v5278_v50 = vadd.f32 -1.0, %v5848_v43 }
 0x279   : > { %v3999_v26 = vmin.f32 %v8297_v36, 0.0  ;;  %v4000_v23 = vmin.f32 %v8300_v57, 0.0  ;;  %v4141_v2 = vsel %vm3981_vm14, %v8256_v8, %v5293_v28  ;;  %v4153_v8 = vadd.f32 %v8260_v58, %v8270_v62 }
 0x27a   : > { %vm3967_vm4 = vcmp.gt.f32.partialorder %v8297_v36, 0.0  ;;  %vm3968_vm7 = vcmp.gt.f32.partialorder %v8300_v57, 0.0 }
 0x27b   : > { %v4045_v27 = vmul.f32 1.442695, %v3999_v26  ;;  %v4047_v39 = vmul.f32 1.442695, %v4000_v23  ;;  %v4163_v26 = vadd.f32 %v4161_v45, %v4124_v51  ;;  %v4119_v23 = vsel %vm3959_vm11, %v8171_v10, %v5271_v29 }
 0x27d   : > { %5849 = vpow2.f32 %v4045_v27  ;;  %v4166_v27 = vadd.f32 %v4164_v1, %v4141_v2 }
 0x27e   : > { %v3936_v41 = vpop.f32.mrf.mxu2  ;;  %v3950_v9 = vpop.f32.mrf.mxu3  ;;  %5851 = vpow2.f32 %v4075_v54 }
 0x27f   : > { %v8332_v53 = vadd.f32 %v3936_v41, %v8155_v30  ;;  %v8335_v33 = vadd.f32 %v3950_v9, %v8155_v30  ;;  %v4133_v30 = vsel %vm3973_vm1, %v8191_v52, %v5285_v63  ;;  %5853 = vpow2.f32 %v4063_v25 }
 0x280   : > { %5855 = vpow2.f32 %v4047_v39  ;;  %v4125_v52 = vsel %vm3965_vm13, %v8248_v44, %v5277_v6  ;;  %v4152_v59 = vadd.f32 %v4150_v34, %v4133_v30  ;;  %v4134_v44 = vsel %vm3974_vm6, %v8225_v42, %v5286_v3 }
 0x281   : > { %v4015_v13 = vmin.f32 %v8332_v53, 0.0  ;;  %v4016_v17 = vmin.f32 %v8335_v33, 0.0  ;;  %v4165_v49 = vadd.f32 %v4163_v26, %v4125_v52  ;;  %v4126_v42 = vsel %vm3966_vm0, %v8280_v18, %v5278_v50 }
 0x282   : > { %v4154_v22 = vadd.f32 %v4152_v59, %v4134_v44  ;;  %vm3983_vm1 = vcmp.gt.f32.partialorder %v8332_v53, 0.0  ;;  %v4155_v18 = vadd.f32 %v4153_v8, %v4119_v23  ;;  %vm3984_vm8 = vcmp.gt.f32.partialorder %v8335_v33, 0.0 }
 0x283   : > { %v5850_v0 = vpop.eup %5849  ;;  %v4077_v21 = vmul.f32 1.442695, %v4015_v13  ;;  %v4079_v60 = vmul.f32 1.442695, %v4016_v17  ;;  %v4167_v58 = vadd.f32 %v4165_v49, %v4126_v42  ;;  %vm4182_vm6 = vcmask 261120  }
 0x284   : > { %v5852_v47 = vpop.eup %5851  ;;  %v5279_v46 = vadd.f32 -1.0, %v5850_v0  ;;  %v4156_v61 = vadd.f32 %v4154_v22, %v4135_v31 }
 0x285   : > { %5857 = vpow2.f32 %v4077_v21  ;;  %v5854_v55 = vpop.eup %5853  ;;  %v5294_v5 = vadd.f32 -1.0, %v5852_v47 }
 0x286   : > { %5859 = vpow2.f32 %v4079_v60  ;;  %v5856_v54 = vpop.eup %5855  ;;  %v4127_v63 = vsel %vm3967_vm4, %v8297_v36, %v5279_v46  ;;  %v5288_v24 = vadd.f32 -1.0, %v5854_v55 }
 0x287   : > { %v4142_v34 = vsel %vm3982_vm5, %v8286_v38, %v5294_v5  ;;  %v5280_v40 = vadd.f32 -1.0, %v5856_v54  ;;  %v4169_v19 = vadd.f32 %v4167_v58, %v4127_v63  ;;  %v4120_v38 = vsel %vm3960_vm15, %v8180_v11, %v5272_v16  ;;  %v4175_v11 = vld [vmem:[%s8431_s5] sm:$0x3] }
 0x288   : > { %v4168_v10 = vadd.f32 %v4166_v27, %v4142_v34  ;;  %v4136_v35 = vsel %vm3976_vm3, %v8264_v4, %v5288_v24  ;;  %v4157_v48 = vadd.f32 %v4155_v18, %v4120_v38 }
 0x289   : > { %v4128_v41 = vsel %vm3968_vm7, %v8300_v57, %v5280_v40  ;;  %v4158_v7 = vadd.f32 %v4156_v61, %v4136_v35 }
 0x28a   : > { %v4171_v15 = vadd.f32 %v4169_v19, %v4128_v41 }
 0x28b   : > { %v5858_v25 = vpop.eup %5857  ;;  %v4173_v6 = vpack.c.bf16 %v4158_v7, %v4157_v48 }
 0x28c   : > { %v5860_v62 = vpop.eup %5859  ;;  %v5295_v56 = vadd.f32 -1.0, %v5858_v25 }
 0x28d   : > { %v5296_v20 = vadd.f32 -1.0, %v5860_v62 }
 0x28e   : > { %v4143_v36 = vsel %vm3983_vm1, %v8332_v53, %v5295_v56 }
 0x28f   : > { %v4170_v12 = vadd.f32 %v4168_v10, %v4143_v36  ;;  %v4144_v9 = vsel %vm3984_vm8, %v8335_v33, %v5296_v20 }
 0x291   : > { %v4172_v39 = vadd.f32 %v4170_v12, %v4144_v9 }
 0x293   : > { %v4174_v53 = vpack.c.bf16 %v4172_v39, %v4171_v15 }
 0x295   : > { %4192 = vmatpush.bf16.msra.mxu0 %v4174_v53 }
 0x299   : > { %4193 = vmatpush.bf16.msra.mxu0 %v4173_v6 }
 0x29c   : > { %5297 = vmatmul.msk.bf16.vlgmr.msra.gmra.mxu0 %vm4182_vm6, %v4175_v11 }
 0x2b3   : > { %v4180_v4 = vpop.permute.xlu2 %4179 }
 0x319   : > { %v4195_v57 = vpop.f32.mrf.mxu0 }
 0x31a   : > { %v4196_v33 = vadd.f32 %v4195_v57, %v4180_v4 }
 0x31c   : > { %4199 = vst [vmem:[%s271_s16] sm:$0xf] %v4196_v33 }
 0x31d   : > { %5890 = shalt.err (!%p5887_p3)
}
 0x31e   : > { %5497 = dma.vmem_to_hbm [thread:$0]  (%p6007_p5), %s4214_s17, 64, %s4216_s18, %s4201_s19  }
 0x321   : > { %v4197_v45 = vpop.f32.mrf.mxu0 }
 0x322 PF: > { %p5503_p4 = scmp.ge.s32.totalorder %s5925_s27, 2  ;;  %s4227_s29 = sand.u32 1, %s5913_s24  }
 0x323   : > { %s4228_s13 = scalar_lea.sflag [#allocation3], %s4227_s29 }
 0x324   : > { %p5500_p7 = pnand %p5503_p4, %p6011_p6 }
 0x326   : > { %p5501_p8 = pneg %p5500_p7 }
 0x328   : > { %5908 = dma.done.wait (%p5501_p8), %s4228_s13, 64  }
 0x329   : > { %5910 = vsyncadd (%p5501_p8), %s4228_s13, 4294967232  ;;  %p17_p9 = scmp.ge.s32.totalorder %s5994_s30, 4   ;;  %s8436_s24 = smov %s5917_s25 }
 0x32a   : > { %s8437_s25 = smov %s5921_s26  ;;  %s8438_s26 = smov %s6005_s10 }
 0x32b   : > { %s8439_s27 = smov %s5994_s30  ;;  %19 = sbr.rel (!%p17_p9) target bundleno = 3 (0x3), region = 83 }
 0x330   :  { %4234 = vsyncpa [#allocation3], 1 }
 0x331   :  { %4236 = vsyncpa [#allocation3 + $0x1], 1 }

</bundles_post_ra>
